<compile_context>
chip_gen: v7x
topology: tpu7x:2x2x1
jax: 0.10.0
libtpu: 0.0.40
codegen_flags: <defaults>
</compile_context>

<pallas_src>
import jax
import jax.numpy as jnp
import numpy as np
from jax import lax
from jax.experimental import pallas as pl
from jax.experimental.pallas import tpu as pltpu


# ------------------------------ fused LSTM kernel ------------------------------
def make_encoder_kernel(num_layers):
    """Kernel refs: emb, (wih, whh, b) * L, hid_out, cell_out, gx_sc, hseq_sc, h_sc, c_sc."""

    def kernel(*refs):
        emb_ref = refs[0]
        w_refs = refs[1:1 + 3 * num_layers]
        hid_ref = refs[1 + 3 * num_layers]
        cell_ref = refs[2 + 3 * num_layers]
        gx_sc, hseq_sc, h_sc, c_sc = refs[3 + 3 * num_layers:]

        T = emb_ref.shape[0]
        B, H = h_sc.shape

        for layer in range(num_layers):           # trace-time loop (static L)
            wih_ref = w_refs[3 * layer + 0]       # (Din, 4H), gate cols (i,f,o,g)
            whh_ref = w_refs[3 * layer + 1]       # (H,   4H)
            b_ref = w_refs[3 * layer + 2]         # (1,   4H)
            x_src = emb_ref if layer == 0 else hseq_sc   # (T, B, Din)

            # ---- hoisted, time-independent input projection: gx[t] = x_t @ W_ih + b ----
            wih = wih_ref[...]
            bias = jnp.broadcast_to(b_ref[...], (B, 4 * H))   # broadcast hoisted out of loop

            def project(t, carry):
                gx_sc[t] = jnp.dot(x_src[t], wih,
                                   preferred_element_type=jnp.float32) + bias
                return carry

            lax.fori_loop(0, T, project, 0, unroll=True)

            # ---- serial recurrence: only h_{t-1} @ W_hh on the critical path ----
            h_sc[...] = jnp.zeros_like(h_sc)
            c_sc[...] = jnp.zeros_like(c_sc)
            whh = whh_ref[...]

            def step(t, carry):
                gates = gx_sc[t] + jnp.dot(h_sc[...], whh,
                                           preferred_element_type=jnp.float32)  # (B, 4H)
                # gate columns pre-ordered (i, f, o, g): one wide sigmoid + one tanh
                sig = jax.nn.sigmoid(gates[:, :3 * H])
                i_g = sig[:, 0 * H:1 * H]
                f_g = sig[:, 1 * H:2 * H]
                o_g = sig[:, 2 * H:3 * H]
                g_g = jnp.tanh(gates[:, 3 * H:])
                c_new = f_g * c_sc[...] + i_g * g_g
                h_new = o_g * jnp.tanh(c_new)
                h_sc[...] = h_new
                c_sc[...] = c_new
                hseq_sc[t] = h_new                # layer output sequence stays in VMEM
                return carry

            lax.fori_loop(0, T, step, 0, unroll=True)

            # final states: written once per layer (not every timestep)
            hid_ref[layer] = h_sc[...]
            cell_ref[layer] = c_sc[...]

    return kernel


def _to_ifog(w):
    """Permute gate columns from PyTorch (i, f, g, o) to (i, f, o, g)."""
    H = w.shape[-1] // 4
    return jnp.concatenate([w[..., :2 * H], w[..., 3 * H:4 * H], w[..., 2 * H:3 * H]],
                           axis=-1)


# ------------------------------ Encoder wrapper ------------------------------
def lstm_encoder_forward(x_tokens, params):
    """x_tokens: (T, B) int32. Returns (hidden, cell), each (L, B, H)."""
    table = params["embedding"]                       # (V, E)
    # nn.Embedding: data-dependent row gather -> XLA take (review-endorsed).
    emb = jnp.take(table, x_tokens, axis=0).astype(jnp.float32)   # (T, B, E)
    # nn.Dropout in eval mode is identity.

    T, B, E = emb.shape
    layers = params["lstm"]
    L = len(layers)
    H = layers[0]["whh_t"].shape[0]
    G = 4 * H

    w_args = []
    in_specs = [pl.BlockSpec((T, B, E), lambda i: (0, 0, 0))]
    for layer in layers:
        wih = _to_ifog(layer["wih_t"])                # (Din, 4H)
        whh = _to_ifog(layer["whh_t"])                # (H,   4H)
        b = _to_ifog(layer["bias"])                   # (1,   4H)
        w_args += [wih, whh, b]
        din = wih.shape[0]
        in_specs += [
            pl.BlockSpec((din, G), lambda i: (0, 0)),
            pl.BlockSpec((H, G), lambda i: (0, 0)),
            pl.BlockSpec((1, G), lambda i: (0, 0)),
        ]

    grid_spec = pltpu.PrefetchScalarGridSpec(
        num_scalar_prefetch=0,
        grid=(1,),                                    # whole sequence handled in-kernel
        in_specs=in_specs,
        out_specs=[
            pl.BlockSpec((L, B, H), lambda i: (0, 0, 0)),
            pl.BlockSpec((L, B, H), lambda i: (0, 0, 0)),
        ],
        scratch_shapes=[
            pltpu.VMEM((T, B, G), jnp.float32),       # gx: hoisted input projection
            pltpu.VMEM((T, B, H), jnp.float32),       # per-layer output sequence
            pltpu.VMEM((B, H), jnp.float32),          # h state
            pltpu.VMEM((B, H), jnp.float32),          # c state
        ],
    )

    hidden, cell = pl.pallas_call(
        make_encoder_kernel(L),
        out_shape=(jax.ShapeDtypeStruct((L, B, H), jnp.float32),
                   jax.ShapeDtypeStruct((L, B, H), jnp.float32)),
        grid_spec=grid_spec,
        compiler_params=pltpu.CompilerParams(dimension_semantics=("arbitrary",)),
    )(emb, *w_args)
    return hidden, cell


# ------------------------------ Reference (JAX) ------------------------------
def lstm_encoder_reference(x_tokens, params):
    emb = params["embedding"][x_tokens]               # (T, B, E)
    layer_in = emb
    hs, cs = [], []
    for layer in params["lstm"]:
        wih_t, whh_t, bias = layer["wih_t"], layer["whh_t"], layer["bias"]
        H = whh_t.shape[0]
        B = layer_in.shape[1]

        def step(carry, x_t):
            h, c = carry
            gates = x_t @ wih_t + h @ whh_t + bias
            i = jax.nn.sigmoid(gates[:, 0 * H:1 * H])
            f = jax.nn.sigmoid(gates[:, 1 * H:2 * H])
            g = jnp.tanh(gates[:, 2 * H:3 * H])
            o = jax.nn.sigmoid(gates[:, 3 * H:4 * H])
            c = f * c + i * g
            h = o * jnp.tanh(c)
            return (h, c), h

        (h_f, c_f), outs = jax.lax.scan(
            step, (jnp.zeros((B, H), jnp.float32), jnp.zeros((B, H), jnp.float32)),
            layer_in)
        hs.append(h_f)
        cs.append(c_f)
        layer_in = outs
    return jnp.stack(hs, 0), jnp.stack(cs, 0)


# --------------------------------- Params ------------------------------------
def init_params(key, input_size, emb_size, hidden_size, layer_count):
    keys = jax.random.split(key, 1 + 4 * layer_count)
    params = {}
    params["embedding"] = jax.random.normal(
        keys[0], (input_size, emb_size), jnp.float32) * 0.1
    bound = 1.0 / np.sqrt(hidden_size)
    layers = []
    for l in range(layer_count):
        din = emb_size if l == 0 else hidden_size
        k = keys[1 + 4 * l: 1 + 4 * (l + 1)]
        w_ih = jax.random.uniform(k[0], (4 * hidden_size, din),
                                  jnp.float32, -bound, bound)
        w_hh = jax.random.uniform(k[1], (4 * hidden_size, hidden_size),
                                  jnp.float32, -bound, bound)
        b_ih = jax.random.uniform(k[2], (4 * hidden_size,),
                                  jnp.float32, -bound, bound)
        b_hh = jax.random.uniform(k[3], (4 * hidden_size,),
                                  jnp.float32, -bound, bound)
        layers.append({
            "wih_t": w_ih.T,                                   # (Din, 4H), gates (i,f,g,o)
            "whh_t": w_hh.T,                                   # (H,   4H)
            "bias": (b_ih + b_hh).reshape(1, 4 * hidden_size)  # (1,   4H)
        })
    params["lstm"] = layers
    return params


# ----------------------------------- Main -------------------------------------
if __name__ == "__main__":
    INPUT_SIZE = 50    # vocab
    EMB_SIZE = 32
    HIDDEN_SIZE = 32
    LAYER_COUNT = 2
    SEQ_LEN = 8
    BATCH = 2

    key = jax.random.PRNGKey(0)
    k_param, k_tok = jax.random.split(key)
    params = init_params(k_param, INPUT_SIZE, EMB_SIZE, HIDDEN_SIZE, LAYER_COUNT)
    x_tokens = jax.random.randint(k_tok, (SEQ_LEN, BATCH), 0, INPUT_SIZE, jnp.int32)

    hidden, cell = jax.jit(lstm_encoder_forward)(x_tokens, params)
    hidden = jax.block_until_ready(hidden)
    cell = jax.block_until_ready(cell)

    h_ref, c_ref = lstm_encoder_reference(x_tokens, params)
    np.testing.assert_allclose(np.asarray(hidden), np.asarray(h_ref),
                               rtol=1e-4, atol=1e-4)
    np.testing.assert_allclose(np.asarray(cell), np.asarray(c_ref),
                               rtol=1e-4, atol=1e-4)

    assert hidden.shape == (LAYER_COUNT, BATCH, HIDDEN_SIZE)
    assert cell.shape == (LAYER_COUNT, BATCH, HIDDEN_SIZE)
    print("KERNEL_OK")
</pallas_src>

<mosaic_0001>
module attributes {stable_mosaic.version = 11 : i64} {
  func.func @kernel(%arg0: i32, %arg1: memref<8x2x32xf32, #tpu.memory_space<vmem>>, %arg2: memref<32x128xf32, #tpu.memory_space<vmem>>, %arg3: memref<32x128xf32, #tpu.memory_space<vmem>>, %arg4: memref<1x128xf32, #tpu.memory_space<vmem>>, %arg5: memref<32x128xf32, #tpu.memory_space<vmem>>, %arg6: memref<32x128xf32, #tpu.memory_space<vmem>>, %arg7: memref<1x128xf32, #tpu.memory_space<vmem>>, %arg8: memref<2x2x32xf32, #tpu.memory_space<vmem>>, %arg9: memref<2x2x32xf32, #tpu.memory_space<vmem>>, %arg10: memref<8x2x128xf32, #tpu.memory_space<vmem>>, %arg11: memref<8x2x32xf32, #tpu.memory_space<vmem>>, %arg12: memref<2x32xf32, #tpu.memory_space<vmem>>, %arg13: memref<2x32xf32, #tpu.memory_space<vmem>>) attributes {dimension_semantics = [#tpu.dimension_semantics<arbitrary>], iteration_bounds = array<i64: 1>, scalar_prefetch = 0 : i64, scratch_operands = 4 : i64, tpu.core_type = #tpu.core_type<tc>, window_params = [{pipeline_mode = #tpu.pipeline_mode<synchronous>, transform_indices = @transform_0, window_bounds = array<i64: 8, 2, 32>}, {pipeline_mode = #tpu.pipeline_mode<synchronous>, transform_indices = @transform_1, window_bounds = array<i64: 32, 128>}, {pipeline_mode = #tpu.pipeline_mode<synchronous>, transform_indices = @transform_2, window_bounds = array<i64: 32, 128>}, {pipeline_mode = #tpu.pipeline_mode<synchronous>, transform_indices = @transform_3, window_bounds = array<i64: 1, 128>}, {pipeline_mode = #tpu.pipeline_mode<synchronous>, transform_indices = @transform_4, window_bounds = array<i64: 32, 128>}, {pipeline_mode = #tpu.pipeline_mode<synchronous>, transform_indices = @transform_5, window_bounds = array<i64: 32, 128>}, {pipeline_mode = #tpu.pipeline_mode<synchronous>, transform_indices = @transform_6, window_bounds = array<i64: 1, 128>}, {pipeline_mode = #tpu.pipeline_mode<synchronous>, transform_indices = @transform_7, window_bounds = array<i64: 2, 2, 32>}, {pipeline_mode = #tpu.pipeline_mode<synchronous>, transform_indices = @transform_8, window_bounds = array<i64: 2, 2, 32>}]} {
    %c0 = arith.constant 0 : index
    %c0_0 = arith.constant 0 : index
    %0 = vector.load %arg2[%c0, %c0_0] : memref<32x128xf32, #tpu.memory_space<vmem>>, vector<32x128xf32>
    %c0_1 = arith.constant 0 : index
    %c0_2 = arith.constant 0 : index
    %1 = vector.load %arg4[%c0_1, %c0_2] : memref<1x128xf32, #tpu.memory_space<vmem>>, vector<1x128xf32>
    %2 = vector.shape_cast %1 : vector<1x128xf32> to vector<1x128xf32>
    %3 = vector.broadcast %2 : vector<1x128xf32> to vector<2x128xf32>
    %c0_i32 = arith.constant 0 : i32
    %4 = arith.index_cast %c0_i32 : i32 to index
    %c0_3 = arith.constant 0 : index
    %c0_4 = arith.constant 0 : index
    %5 = vector.load %arg1[%4, %c0_3, %c0_4] : memref<8x2x32xf32, #tpu.memory_space<vmem>>, vector<1x2x32xf32>
    %6 = vector.shape_cast %5 : vector<1x2x32xf32> to vector<2x32xf32>
    %cst = arith.constant dense<0.000000e+00> : vector<2x128xf32>
    %7 = tpu.matmul %6, %0, %cst {dimension_numbers = #tpu.dot_dimension_numbers<[1], [0], [0], [1], [0, 0, 1, 1], [], []>} : vector<2x32xf32>, vector<32x128xf32>, vector<2x128xf32> -> vector<2x128xf32>
    %8 = arith.addf %7, %3 : vector<2x128xf32>
    %9 = arith.index_cast %c0_i32 : i32 to index
    %c0_5 = arith.constant 0 : index
    %c0_6 = arith.constant 0 : index
    %10 = vector.load %arg10[%9, %c0_5, %c0_6] : memref<8x2x128xf32, #tpu.memory_space<vmem>>, vector<1x2x128xf32>
    %11 = vector.shape_cast %10 : vector<1x2x128xf32> to vector<2x128xf32>
    %12 = vector.shape_cast %8 : vector<2x128xf32> to vector<1x2x128xf32>
    tpu.vector_store %arg10[%9, %c0_5, %c0_6], %12 {strides = array<i32>} : memref<8x2x128xf32, #tpu.memory_space<vmem>>, vector<1x2x128xf32>,
    %c1_i32 = arith.constant 1 : i32
    %13 = arith.index_cast %c1_i32 : i32 to index
    %c0_7 = arith.constant 0 : index
    %c0_8 = arith.constant 0 : index
    %14 = vector.load %arg1[%13, %c0_7, %c0_8] : memref<8x2x32xf32, #tpu.memory_space<vmem>>, vector<1x2x32xf32>
    %15 = vector.shape_cast %14 : vector<1x2x32xf32> to vector<2x32xf32>
    %cst_9 = arith.constant dense<0.000000e+00> : vector<2x128xf32>
    %16 = tpu.matmul %15, %0, %cst_9 {dimension_numbers = #tpu.dot_dimension_numbers<[1], [0], [0], [1], [0, 0, 1, 1], [], []>} : vector<2x32xf32>, vector<32x128xf32>, vector<2x128xf32> -> vector<2x128xf32>
    %17 = arith.addf %16, %3 : vector<2x128xf32>
    %18 = arith.index_cast %c1_i32 : i32 to index
    %c0_10 = arith.constant 0 : index
    %c0_11 = arith.constant 0 : index
    %19 = vector.load %arg10[%18, %c0_10, %c0_11] : memref<8x2x128xf32, #tpu.memory_space<vmem>>, vector<1x2x128xf32>
    %20 = vector.shape_cast %19 : vector<1x2x128xf32> to vector<2x128xf32>
    %21 = vector.shape_cast %17 : vector<2x128xf32> to vector<1x2x128xf32>
    tpu.vector_store %arg10[%18, %c0_10, %c0_11], %21 {strides = array<i32>} : memref<8x2x128xf32, #tpu.memory_space<vmem>>, vector<1x2x128xf32>,
    %c2_i32 = arith.constant 2 : i32
    %22 = arith.index_cast %c2_i32 : i32 to index
    %c0_12 = arith.constant 0 : index
    %c0_13 = arith.constant 0 : index
    %23 = vector.load %arg1[%22, %c0_12, %c0_13] : memref<8x2x32xf32, #tpu.memory_space<vmem>>, vector<1x2x32xf32>
    %24 = vector.shape_cast %23 : vector<1x2x32xf32> to vector<2x32xf32>
    %cst_14 = arith.constant dense<0.000000e+00> : vector<2x128xf32>
    %25 = tpu.matmul %24, %0, %cst_14 {dimension_numbers = #tpu.dot_dimension_numbers<[1], [0], [0], [1], [0, 0, 1, 1], [], []>} : vector<2x32xf32>, vector<32x128xf32>, vector<2x128xf32> -> vector<2x128xf32>
    %26 = arith.addf %25, %3 : vector<2x128xf32>
    %27 = arith.index_cast %c2_i32 : i32 to index
    %c0_15 = arith.constant 0 : index
    %c0_16 = arith.constant 0 : index
    %28 = vector.load %arg10[%27, %c0_15, %c0_16] : memref<8x2x128xf32, #tpu.memory_space<vmem>>, vector<1x2x128xf32>
    %29 = vector.shape_cast %28 : vector<1x2x128xf32> to vector<2x128xf32>
    %30 = vector.shape_cast %26 : vector<2x128xf32> to vector<1x2x128xf32>
    tpu.vector_store %arg10[%27, %c0_15, %c0_16], %30 {strides = array<i32>} : memref<8x2x128xf32, #tpu.memory_space<vmem>>, vector<1x2x128xf32>,
    %c3_i32 = arith.constant 3 : i32
    %31 = arith.index_cast %c3_i32 : i32 to index
    %c0_17 = arith.constant 0 : index
    %c0_18 = arith.constant 0 : index
    %32 = vector.load %arg1[%31, %c0_17, %c0_18] : memref<8x2x32xf32, #tpu.memory_space<vmem>>, vector<1x2x32xf32>
    %33 = vector.shape_cast %32 : vector<1x2x32xf32> to vector<2x32xf32>
    %cst_19 = arith.constant dense<0.000000e+00> : vector<2x128xf32>
    %34 = tpu.matmul %33, %0, %cst_19 {dimension_numbers = #tpu.dot_dimension_numbers<[1], [0], [0], [1], [0, 0, 1, 1], [], []>} : vector<2x32xf32>, vector<32x128xf32>, vector<2x128xf32> -> vector<2x128xf32>
    %35 = arith.addf %34, %3 : vector<2x128xf32>
    %36 = arith.index_cast %c3_i32 : i32 to index
    %c0_20 = arith.constant 0 : index
    %c0_21 = arith.constant 0 : index
    %37 = vector.load %arg10[%36, %c0_20, %c0_21] : memref<8x2x128xf32, #tpu.memory_space<vmem>>, vector<1x2x128xf32>
    %38 = vector.shape_cast %37 : vector<1x2x128xf32> to vector<2x128xf32>
    %39 = vector.shape_cast %35 : vector<2x128xf32> to vector<1x2x128xf32>
    tpu.vector_store %arg10[%36, %c0_20, %c0_21], %39 {strides = array<i32>} : memref<8x2x128xf32, #tpu.memory_space<vmem>>, vector<1x2x128xf32>,
    %c4_i32 = arith.constant 4 : i32
    %40 = arith.index_cast %c4_i32 : i32 to index
    %c0_22 = arith.constant 0 : index
    %c0_23 = arith.constant 0 : index
    %41 = vector.load %arg1[%40, %c0_22, %c0_23] : memref<8x2x32xf32, #tpu.memory_space<vmem>>, vector<1x2x32xf32>
    %42 = vector.shape_cast %41 : vector<1x2x32xf32> to vector<2x32xf32>
    %cst_24 = arith.constant dense<0.000000e+00> : vector<2x128xf32>
    %43 = tpu.matmul %42, %0, %cst_24 {dimension_numbers = #tpu.dot_dimension_numbers<[1], [0], [0], [1], [0, 0, 1, 1], [], []>} : vector<2x32xf32>, vector<32x128xf32>, vector<2x128xf32> -> vector<2x128xf32>
    %44 = arith.addf %43, %3 : vector<2x128xf32>
    %45 = arith.index_cast %c4_i32 : i32 to index
    %c0_25 = arith.constant 0 : index
    %c0_26 = arith.constant 0 : index
    %46 = vector.load %arg10[%45, %c0_25, %c0_26] : memref<8x2x128xf32, #tpu.memory_space<vmem>>, vector<1x2x128xf32>
    %47 = vector.shape_cast %46 : vector<1x2x128xf32> to vector<2x128xf32>
    %48 = vector.shape_cast %44 : vector<2x128xf32> to vector<1x2x128xf32>
    tpu.vector_store %arg10[%45, %c0_25, %c0_26], %48 {strides = array<i32>} : memref<8x2x128xf32, #tpu.memory_space<vmem>>, vector<1x2x128xf32>,
    %c5_i32 = arith.constant 5 : i32
    %49 = arith.index_cast %c5_i32 : i32 to index
    %c0_27 = arith.constant 0 : index
    %c0_28 = arith.constant 0 : index
    %50 = vector.load %arg1[%49, %c0_27, %c0_28] : memref<8x2x32xf32, #tpu.memory_space<vmem>>, vector<1x2x32xf32>
    %51 = vector.shape_cast %50 : vector<1x2x32xf32> to vector<2x32xf32>
    %cst_29 = arith.constant dense<0.000000e+00> : vector<2x128xf32>
    %52 = tpu.matmul %51, %0, %cst_29 {dimension_numbers = #tpu.dot_dimension_numbers<[1], [0], [0], [1], [0, 0, 1, 1], [], []>} : vector<2x32xf32>, vector<32x128xf32>, vector<2x128xf32> -> vector<2x128xf32>
    %53 = arith.addf %52, %3 : vector<2x128xf32>
    %54 = arith.index_cast %c5_i32 : i32 to index
    %c0_30 = arith.constant 0 : index
    %c0_31 = arith.constant 0 : index
    %55 = vector.load %arg10[%54, %c0_30, %c0_31] : memref<8x2x128xf32, #tpu.memory_space<vmem>>, vector<1x2x128xf32>
    %56 = vector.shape_cast %55 : vector<1x2x128xf32> to vector<2x128xf32>
    %57 = vector.shape_cast %53 : vector<2x128xf32> to vector<1x2x128xf32>
    tpu.vector_store %arg10[%54, %c0_30, %c0_31], %57 {strides = array<i32>} : memref<8x2x128xf32, #tpu.memory_space<vmem>>, vector<1x2x128xf32>,
    %c6_i32 = arith.constant 6 : i32
    %58 = arith.index_cast %c6_i32 : i32 to index
    %c0_32 = arith.constant 0 : index
    %c0_33 = arith.constant 0 : index
    %59 = vector.load %arg1[%58, %c0_32, %c0_33] : memref<8x2x32xf32, #tpu.memory_space<vmem>>, vector<1x2x32xf32>
    %60 = vector.shape_cast %59 : vector<1x2x32xf32> to vector<2x32xf32>
    %cst_34 = arith.constant dense<0.000000e+00> : vector<2x128xf32>
    %61 = tpu.matmul %60, %0, %cst_34 {dimension_numbers = #tpu.dot_dimension_numbers<[1], [0], [0], [1], [0, 0, 1, 1], [], []>} : vector<2x32xf32>, vector<32x128xf32>, vector<2x128xf32> -> vector<2x128xf32>
    %62 = arith.addf %61, %3 : vector<2x128xf32>
    %63 = arith.index_cast %c6_i32 : i32 to index
    %c0_35 = arith.constant 0 : index
    %c0_36 = arith.constant 0 : index
    %64 = vector.load %arg10[%63, %c0_35, %c0_36] : memref<8x2x128xf32, #tpu.memory_space<vmem>>, vector<1x2x128xf32>
    %65 = vector.shape_cast %64 : vector<1x2x128xf32> to vector<2x128xf32>
    %66 = vector.shape_cast %62 : vector<2x128xf32> to vector<1x2x128xf32>
    tpu.vector_store %arg10[%63, %c0_35, %c0_36], %66 {strides = array<i32>} : memref<8x2x128xf32, #tpu.memory_space<vmem>>, vector<1x2x128xf32>,
    %c7_i32 = arith.constant 7 : i32
    %67 = arith.index_cast %c7_i32 : i32 to index
    %c0_37 = arith.constant 0 : index
    %c0_38 = arith.constant 0 : index
    %68 = vector.load %arg1[%67, %c0_37, %c0_38] : memref<8x2x32xf32, #tpu.memory_space<vmem>>, vector<1x2x32xf32>
    %69 = vector.shape_cast %68 : vector<1x2x32xf32> to vector<2x32xf32>
    %cst_39 = arith.constant dense<0.000000e+00> : vector<2x128xf32>
    %70 = tpu.matmul %69, %0, %cst_39 {dimension_numbers = #tpu.dot_dimension_numbers<[1], [0], [0], [1], [0, 0, 1, 1], [], []>} : vector<2x32xf32>, vector<32x128xf32>, vector<2x128xf32> -> vector<2x128xf32>
    %71 = arith.addf %70, %3 : vector<2x128xf32>
    %72 = arith.index_cast %c7_i32 : i32 to index
    %c0_40 = arith.constant 0 : index
    %c0_41 = arith.constant 0 : index
    %73 = vector.load %arg10[%72, %c0_40, %c0_41] : memref<8x2x128xf32, #tpu.memory_space<vmem>>, vector<1x2x128xf32>
    %74 = vector.shape_cast %73 : vector<1x2x128xf32> to vector<2x128xf32>
    %75 = vector.shape_cast %71 : vector<2x128xf32> to vector<1x2x128xf32>
    tpu.vector_store %arg10[%72, %c0_40, %c0_41], %75 {strides = array<i32>} : memref<8x2x128xf32, #tpu.memory_space<vmem>>, vector<1x2x128xf32>,
    %c8_i32 = arith.constant 8 : i32
    %cst_42 = arith.constant 0.000000e+00 : f32
    %76 = vector.broadcast %cst_42 : f32 to vector<2x32xf32>
    %c0_43 = arith.constant 0 : index
    %c0_44 = arith.constant 0 : index
    %77 = vector.load %arg12[%c0_43, %c0_44] : memref<2x32xf32, #tpu.memory_space<vmem>>, vector<2x32xf32>
    tpu.vector_store %arg12[%c0_43, %c0_44], %76 {strides = array<i32>} : memref<2x32xf32, #tpu.memory_space<vmem>>, vector<2x32xf32>,
    %cst_45 = arith.constant 0.000000e+00 : f32
    %78 = vector.broadcast %cst_45 : f32 to vector<2x32xf32>
    %c0_46 = arith.constant 0 : index
    %c0_47 = arith.constant 0 : index
    %79 = vector.load %arg13[%c0_46, %c0_47] : memref<2x32xf32, #tpu.memory_space<vmem>>, vector<2x32xf32>
    tpu.vector_store %arg13[%c0_46, %c0_47], %78 {strides = array<i32>} : memref<2x32xf32, #tpu.memory_space<vmem>>, vector<2x32xf32>,
    %c0_48 = arith.constant 0 : index
    %c0_49 = arith.constant 0 : index
    %80 = vector.load %arg3[%c0_48, %c0_49] : memref<32x128xf32, #tpu.memory_space<vmem>>, vector<32x128xf32>
    %c0_i32_50 = arith.constant 0 : i32
    %81 = arith.index_cast %c0_i32_50 : i32 to index
    %c0_51 = arith.constant 0 : index
    %c0_52 = arith.constant 0 : index
    %82 = vector.load %arg10[%81, %c0_51, %c0_52] : memref<8x2x128xf32, #tpu.memory_space<vmem>>, vector<1x2x128xf32>
    %83 = vector.shape_cast %82 : vector<1x2x128xf32> to vector<2x128xf32>
    %c0_53 = arith.constant 0 : index
    %c0_54 = arith.constant 0 : index
    %84 = vector.load %arg12[%c0_53, %c0_54] : memref<2x32xf32, #tpu.memory_space<vmem>>, vector<2x32xf32>
    %cst_55 = arith.constant dense<0.000000e+00> : vector<2x128xf32>
    %85 = tpu.matmul %84, %80, %cst_55 {dimension_numbers = #tpu.dot_dimension_numbers<[1], [0], [0], [1], [0, 0, 1, 1], [], []>} : vector<2x32xf32>, vector<32x128xf32>, vector<2x128xf32> -> vector<2x128xf32>
    %86 = arith.addf %83, %85 : vector<2x128xf32>
    %87 = vector.extract_strided_slice %86 {offsets = [0, 0], sizes = [2, 96], strides = [1, 1]} : vector<2x128xf32> to vector<2x96xf32>
    %88 = arith.negf %87 : vector<2x96xf32>
    %89 = math.exp %88 : vector<2x96xf32>
    %cst_56 = arith.constant 1.000000e+00 : f32
    %90 = vector.broadcast %cst_56 : f32 to vector<2x96xf32>
    %91 = arith.addf %90, %89 : vector<2x96xf32>
    %92 = arith.divf %90, %91 : vector<2x96xf32>
    %93 = vector.extract_strided_slice %92 {offsets = [0, 0], sizes = [2, 32], strides = [1, 1]} : vector<2x96xf32> to vector<2x32xf32>
    %94 = vector.extract_strided_slice %92 {offsets = [0, 32], sizes = [2, 32], strides = [1, 1]} : vector<2x96xf32> to vector<2x32xf32>
    %95 = vector.extract_strided_slice %92 {offsets = [0, 64], sizes = [2, 32], strides = [1, 1]} : vector<2x96xf32> to vector<2x32xf32>
    %96 = vector.extract_strided_slice %86 {offsets = [0, 96], sizes = [2, 32], strides = [1, 1]} : vector<2x128xf32> to vector<2x32xf32>
    %97 = math.tanh %96 : vector<2x32xf32>
    %c0_57 = arith.constant 0 : index
    %c0_58 = arith.constant 0 : index
    %98 = vector.load %arg13[%c0_57, %c0_58] : memref<2x32xf32, #tpu.memory_space<vmem>>, vector<2x32xf32>
    %99 = arith.mulf %94, %98 : vector<2x32xf32>
    %100 = arith.mulf %93, %97 : vector<2x32xf32>
    %101 = arith.addf %99, %100 : vector<2x32xf32>
    %102 = math.tanh %101 : vector<2x32xf32>
    %103 = arith.mulf %95, %102 : vector<2x32xf32>
    %c0_59 = arith.constant 0 : index
    %c0_60 = arith.constant 0 : index
    %104 = vector.load %arg12[%c0_59, %c0_60] : memref<2x32xf32, #tpu.memory_space<vmem>>, vector<2x32xf32>
    tpu.vector_store %arg12[%c0_59, %c0_60], %103 {strides = array<i32>} : memref<2x32xf32, #tpu.memory_space<vmem>>, vector<2x32xf32>,
    %c0_61 = arith.constant 0 : index
    %c0_62 = arith.constant 0 : index
    %105 = vector.load %arg13[%c0_61, %c0_62] : memref<2x32xf32, #tpu.memory_space<vmem>>, vector<2x32xf32>
    tpu.vector_store %arg13[%c0_61, %c0_62], %101 {strides = array<i32>} : memref<2x32xf32, #tpu.memory_space<vmem>>, vector<2x32xf32>,
    %106 = arith.index_cast %c0_i32_50 : i32 to index
    %c0_63 = arith.constant 0 : index
    %c0_64 = arith.constant 0 : index
    %107 = vector.load %arg11[%106, %c0_63, %c0_64] : memref<8x2x32xf32, #tpu.memory_space<vmem>>, vector<1x2x32xf32>
    %108 = vector.shape_cast %107 : vector<1x2x32xf32> to vector<2x32xf32>
    %109 = vector.shape_cast %103 : vector<2x32xf32> to vector<1x2x32xf32>
    tpu.vector_store %arg11[%106, %c0_63, %c0_64], %109 {strides = array<i32>} : memref<8x2x32xf32, #tpu.memory_space<vmem>>, vector<1x2x32xf32>,
    %c1_i32_65 = arith.constant 1 : i32
    %110 = arith.index_cast %c1_i32_65 : i32 to index
    %c0_66 = arith.constant 0 : index
    %c0_67 = arith.constant 0 : index
    %111 = vector.load %arg10[%110, %c0_66, %c0_67] : memref<8x2x128xf32, #tpu.memory_space<vmem>>, vector<1x2x128xf32>
    %112 = vector.shape_cast %111 : vector<1x2x128xf32> to vector<2x128xf32>
    %c0_68 = arith.constant 0 : index
    %c0_69 = arith.constant 0 : index
    %113 = vector.load %arg12[%c0_68, %c0_69] : memref<2x32xf32, #tpu.memory_space<vmem>>, vector<2x32xf32>
    %cst_70 = arith.constant dense<0.000000e+00> : vector<2x128xf32>
    %114 = tpu.matmul %113, %80, %cst_70 {dimension_numbers = #tpu.dot_dimension_numbers<[1], [0], [0], [1], [0, 0, 1, 1], [], []>} : vector<2x32xf32>, vector<32x128xf32>, vector<2x128xf32> -> vector<2x128xf32>
    %115 = arith.addf %112, %114 : vector<2x128xf32>
    %116 = vector.extract_strided_slice %115 {offsets = [0, 0], sizes = [2, 96], strides = [1, 1]} : vector<2x128xf32> to vector<2x96xf32>
    %117 = arith.negf %116 : vector<2x96xf32>
    %118 = math.exp %117 : vector<2x96xf32>
    %cst_71 = arith.constant 1.000000e+00 : f32
    %119 = vector.broadcast %cst_71 : f32 to vector<2x96xf32>
    %120 = arith.addf %119, %118 : vector<2x96xf32>
    %121 = arith.divf %119, %120 : vector<2x96xf32>
    %122 = vector.extract_strided_slice %121 {offsets = [0, 0], sizes = [2, 32], strides = [1, 1]} : vector<2x96xf32> to vector<2x32xf32>
    %123 = vector.extract_strided_slice %121 {offsets = [0, 32], sizes = [2, 32], strides = [1, 1]} : vector<2x96xf32> to vector<2x32xf32>
    %124 = vector.extract_strided_slice %121 {offsets = [0, 64], sizes = [2, 32], strides = [1, 1]} : vector<2x96xf32> to vector<2x32xf32>
    %125 = vector.extract_strided_slice %115 {offsets = [0, 96], sizes = [2, 32], strides = [1, 1]} : vector<2x128xf32> to vector<2x32xf32>
    %126 = math.tanh %125 : vector<2x32xf32>
    %c0_72 = arith.constant 0 : index
    %c0_73 = arith.constant 0 : index
    %127 = vector.load %arg13[%c0_72, %c0_73] : memref<2x32xf32, #tpu.memory_space<vmem>>, vector<2x32xf32>
    %128 = arith.mulf %123, %127 : vector<2x32xf32>
    %129 = arith.mulf %122, %126 : vector<2x32xf32>
    %130 = arith.addf %128, %129 : vector<2x32xf32>
    %131 = math.tanh %130 : vector<2x32xf32>
    %132 = arith.mulf %124, %131 : vector<2x32xf32>
    %c0_74 = arith.constant 0 : index
    %c0_75 = arith.constant 0 : index
    %133 = vector.load %arg12[%c0_74, %c0_75] : memref<2x32xf32, #tpu.memory_space<vmem>>, vector<2x32xf32>
    tpu.vector_store %arg12[%c0_74, %c0_75], %132 {strides = array<i32>} : memref<2x32xf32, #tpu.memory_space<vmem>>, vector<2x32xf32>,
    %c0_76 = arith.constant 0 : index
    %c0_77 = arith.constant 0 : index
    %134 = vector.load %arg13[%c0_76, %c0_77] : memref<2x32xf32, #tpu.memory_space<vmem>>, vector<2x32xf32>
    tpu.vector_store %arg13[%c0_76, %c0_77], %130 {strides = array<i32>} : memref<2x32xf32, #tpu.memory_space<vmem>>, vector<2x32xf32>,
    %135 = arith.index_cast %c1_i32_65 : i32 to index
    %c0_78 = arith.constant 0 : index
    %c0_79 = arith.constant 0 : index
    %136 = vector.load %arg11[%135, %c0_78, %c0_79] : memref<8x2x32xf32, #tpu.memory_space<vmem>>, vector<1x2x32xf32>
    %137 = vector.shape_cast %136 : vector<1x2x32xf32> to vector<2x32xf32>
    %138 = vector.shape_cast %132 : vector<2x32xf32> to vector<1x2x32xf32>
    tpu.vector_store %arg11[%135, %c0_78, %c0_79], %138 {strides = array<i32>} : memref<8x2x32xf32, #tpu.memory_space<vmem>>, vector<1x2x32xf32>,
    %c2_i32_80 = arith.constant 2 : i32
    %139 = arith.index_cast %c2_i32_80 : i32 to index
    %c0_81 = arith.constant 0 : index
    %c0_82 = arith.constant 0 : index
    %140 = vector.load %arg10[%139, %c0_81, %c0_82] : memref<8x2x128xf32, #tpu.memory_space<vmem>>, vector<1x2x128xf32>
    %141 = vector.shape_cast %140 : vector<1x2x128xf32> to vector<2x128xf32>
    %c0_83 = arith.constant 0 : index
    %c0_84 = arith.constant 0 : index
    %142 = vector.load %arg12[%c0_83, %c0_84] : memref<2x32xf32, #tpu.memory_space<vmem>>, vector<2x32xf32>
    %cst_85 = arith.constant dense<0.000000e+00> : vector<2x128xf32>
    %143 = tpu.matmul %142, %80, %cst_85 {dimension_numbers = #tpu.dot_dimension_numbers<[1], [0], [0], [1], [0, 0, 1, 1], [], []>} : vector<2x32xf32>, vector<32x128xf32>, vector<2x128xf32> -> vector<2x128xf32>
    %144 = arith.addf %141, %143 : vector<2x128xf32>
    %145 = vector.extract_strided_slice %144 {offsets = [0, 0], sizes = [2, 96], strides = [1, 1]} : vector<2x128xf32> to vector<2x96xf32>
    %146 = arith.negf %145 : vector<2x96xf32>
    %147 = math.exp %146 : vector<2x96xf32>
    %cst_86 = arith.constant 1.000000e+00 : f32
    %148 = vector.broadcast %cst_86 : f32 to vector<2x96xf32>
    %149 = arith.addf %148, %147 : vector<2x96xf32>
    %150 = arith.divf %148, %149 : vector<2x96xf32>
    %151 = vector.extract_strided_slice %150 {offsets = [0, 0], sizes = [2, 32], strides = [1, 1]} : vector<2x96xf32> to vector<2x32xf32>
    %152 = vector.extract_strided_slice %150 {offsets = [0, 32], sizes = [2, 32], strides = [1, 1]} : vector<2x96xf32> to vector<2x32xf32>
    %153 = vector.extract_strided_slice %150 {offsets = [0, 64], sizes = [2, 32], strides = [1, 1]} : vector<2x96xf32> to vector<2x32xf32>
    %154 = vector.extract_strided_slice %144 {offsets = [0, 96], sizes = [2, 32], strides = [1, 1]} : vector<2x128xf32> to vector<2x32xf32>
    %155 = math.tanh %154 : vector<2x32xf32>
    %c0_87 = arith.constant 0 : index
    %c0_88 = arith.constant 0 : index
    %156 = vector.load %arg13[%c0_87, %c0_88] : memref<2x32xf32, #tpu.memory_space<vmem>>, vector<2x32xf32>
    %157 = arith.mulf %152, %156 : vector<2x32xf32>
    %158 = arith.mulf %151, %155 : vector<2x32xf32>
    %159 = arith.addf %157, %158 : vector<2x32xf32>
    %160 = math.tanh %159 : vector<2x32xf32>
    %161 = arith.mulf %153, %160 : vector<2x32xf32>
    %c0_89 = arith.constant 0 : index
    %c0_90 = arith.constant 0 : index
    %162 = vector.load %arg12[%c0_89, %c0_90] : memref<2x32xf32, #tpu.memory_space<vmem>>, vector<2x32xf32>
    tpu.vector_store %arg12[%c0_89, %c0_90], %161 {strides = array<i32>} : memref<2x32xf32, #tpu.memory_space<vmem>>, vector<2x32xf32>,
    %c0_91 = arith.constant 0 : index
    %c0_92 = arith.constant 0 : index
    %163 = vector.load %arg13[%c0_91, %c0_92] : memref<2x32xf32, #tpu.memory_space<vmem>>, vector<2x32xf32>
    tpu.vector_store %arg13[%c0_91, %c0_92], %159 {strides = array<i32>} : memref<2x32xf32, #tpu.memory_space<vmem>>, vector<2x32xf32>,
    %164 = arith.index_cast %c2_i32_80 : i32 to index
    %c0_93 = arith.constant 0 : index
    %c0_94 = arith.constant 0 : index
    %165 = vector.load %arg11[%164, %c0_93, %c0_94] : memref<8x2x32xf32, #tpu.memory_space<vmem>>, vector<1x2x32xf32>
    %166 = vector.shape_cast %165 : vector<1x2x32xf32> to vector<2x32xf32>
    %167 = vector.shape_cast %161 : vector<2x32xf32> to vector<1x2x32xf32>
    tpu.vector_store %arg11[%164, %c0_93, %c0_94], %167 {strides = array<i32>} : memref<8x2x32xf32, #tpu.memory_space<vmem>>, vector<1x2x32xf32>,
    %c3_i32_95 = arith.constant 3 : i32
    %168 = arith.index_cast %c3_i32_95 : i32 to index
    %c0_96 = arith.constant 0 : index
    %c0_97 = arith.constant 0 : index
    %169 = vector.load %arg10[%168, %c0_96, %c0_97] : memref<8x2x128xf32, #tpu.memory_space<vmem>>, vector<1x2x128xf32>
    %170 = vector.shape_cast %169 : vector<1x2x128xf32> to vector<2x128xf32>
    %c0_98 = arith.constant 0 : index
    %c0_99 = arith.constant 0 : index
    %171 = vector.load %arg12[%c0_98, %c0_99] : memref<2x32xf32, #tpu.memory_space<vmem>>, vector<2x32xf32>
    %cst_100 = arith.constant dense<0.000000e+00> : vector<2x128xf32>
    %172 = tpu.matmul %171, %80, %cst_100 {dimension_numbers = #tpu.dot_dimension_numbers<[1], [0], [0], [1], [0, 0, 1, 1], [], []>} : vector<2x32xf32>, vector<32x128xf32>, vector<2x128xf32> -> vector<2x128xf32>
    %173 = arith.addf %170, %172 : vector<2x128xf32>
    %174 = vector.extract_strided_slice %173 {offsets = [0, 0], sizes = [2, 96], strides = [1, 1]} : vector<2x128xf32> to vector<2x96xf32>
    %175 = arith.negf %174 : vector<2x96xf32>
    %176 = math.exp %175 : vector<2x96xf32>
    %cst_101 = arith.constant 1.000000e+00 : f32
    %177 = vector.broadcast %cst_101 : f32 to vector<2x96xf32>
    %178 = arith.addf %177, %176 : vector<2x96xf32>
    %179 = arith.divf %177, %178 : vector<2x96xf32>
    %180 = vector.extract_strided_slice %179 {offsets = [0, 0], sizes = [2, 32], strides = [1, 1]} : vector<2x96xf32> to vector<2x32xf32>
    %181 = vector.extract_strided_slice %179 {offsets = [0, 32], sizes = [2, 32], strides = [1, 1]} : vector<2x96xf32> to vector<2x32xf32>
    %182 = vector.extract_strided_slice %179 {offsets = [0, 64], sizes = [2, 32], strides = [1, 1]} : vector<2x96xf32> to vector<2x32xf32>
    %183 = vector.extract_strided_slice %173 {offsets = [0, 96], sizes = [2, 32], strides = [1, 1]} : vector<2x128xf32> to vector<2x32xf32>
    %184 = math.tanh %183 : vector<2x32xf32>
    %c0_102 = arith.constant 0 : index
    %c0_103 = arith.constant 0 : index
    %185 = vector.load %arg13[%c0_102, %c0_103] : memref<2x32xf32, #tpu.memory_space<vmem>>, vector<2x32xf32>
    %186 = arith.mulf %181, %185 : vector<2x32xf32>
    %187 = arith.mulf %180, %184 : vector<2x32xf32>
    %188 = arith.addf %186, %187 : vector<2x32xf32>
    %189 = math.tanh %188 : vector<2x32xf32>
    %190 = arith.mulf %182, %189 : vector<2x32xf32>
    %c0_104 = arith.constant 0 : index
    %c0_105 = arith.constant 0 : index
    %191 = vector.load %arg12[%c0_104, %c0_105] : memref<2x32xf32, #tpu.memory_space<vmem>>, vector<2x32xf32>
    tpu.vector_store %arg12[%c0_104, %c0_105], %190 {strides = array<i32>} : memref<2x32xf32, #tpu.memory_space<vmem>>, vector<2x32xf32>,
    %c0_106 = arith.constant 0 : index
    %c0_107 = arith.constant 0 : index
    %192 = vector.load %arg13[%c0_106, %c0_107] : memref<2x32xf32, #tpu.memory_space<vmem>>, vector<2x32xf32>
    tpu.vector_store %arg13[%c0_106, %c0_107], %188 {strides = array<i32>} : memref<2x32xf32, #tpu.memory_space<vmem>>, vector<2x32xf32>,
    %193 = arith.index_cast %c3_i32_95 : i32 to index
    %c0_108 = arith.constant 0 : index
    %c0_109 = arith.constant 0 : index
    %194 = vector.load %arg11[%193, %c0_108, %c0_109] : memref<8x2x32xf32, #tpu.memory_space<vmem>>, vector<1x2x32xf32>
    %195 = vector.shape_cast %194 : vector<1x2x32xf32> to vector<2x32xf32>
    %196 = vector.shape_cast %190 : vector<2x32xf32> to vector<1x2x32xf32>
    tpu.vector_store %arg11[%193, %c0_108, %c0_109], %196 {strides = array<i32>} : memref<8x2x32xf32, #tpu.memory_space<vmem>>, vector<1x2x32xf32>,
    %c4_i32_110 = arith.constant 4 : i32
    %197 = arith.index_cast %c4_i32_110 : i32 to index
    %c0_111 = arith.constant 0 : index
    %c0_112 = arith.constant 0 : index
    %198 = vector.load %arg10[%197, %c0_111, %c0_112] : memref<8x2x128xf32, #tpu.memory_space<vmem>>, vector<1x2x128xf32>
    %199 = vector.shape_cast %198 : vector<1x2x128xf32> to vector<2x128xf32>
    %c0_113 = arith.constant 0 : index
    %c0_114 = arith.constant 0 : index
    %200 = vector.load %arg12[%c0_113, %c0_114] : memref<2x32xf32, #tpu.memory_space<vmem>>, vector<2x32xf32>
    %cst_115 = arith.constant dense<0.000000e+00> : vector<2x128xf32>
    %201 = tpu.matmul %200, %80, %cst_115 {dimension_numbers = #tpu.dot_dimension_numbers<[1], [0], [0], [1], [0, 0, 1, 1], [], []>} : vector<2x32xf32>, vector<32x128xf32>, vector<2x128xf32> -> vector<2x128xf32>
    %202 = arith.addf %199, %201 : vector<2x128xf32>
    %203 = vector.extract_strided_slice %202 {offsets = [0, 0], sizes = [2, 96], strides = [1, 1]} : vector<2x128xf32> to vector<2x96xf32>
    %204 = arith.negf %203 : vector<2x96xf32>
    %205 = math.exp %204 : vector<2x96xf32>
    %cst_116 = arith.constant 1.000000e+00 : f32
    %206 = vector.broadcast %cst_116 : f32 to vector<2x96xf32>
    %207 = arith.addf %206, %205 : vector<2x96xf32>
    %208 = arith.divf %206, %207 : vector<2x96xf32>
    %209 = vector.extract_strided_slice %208 {offsets = [0, 0], sizes = [2, 32], strides = [1, 1]} : vector<2x96xf32> to vector<2x32xf32>
    %210 = vector.extract_strided_slice %208 {offsets = [0, 32], sizes = [2, 32], strides = [1, 1]} : vector<2x96xf32> to vector<2x32xf32>
    %211 = vector.extract_strided_slice %208 {offsets = [0, 64], sizes = [2, 32], strides = [1, 1]} : vector<2x96xf32> to vector<2x32xf32>
    %212 = vector.extract_strided_slice %202 {offsets = [0, 96], sizes = [2, 32], strides = [1, 1]} : vector<2x128xf32> to vector<2x32xf32>
    %213 = math.tanh %212 : vector<2x32xf32>
    %c0_117 = arith.constant 0 : index
    %c0_118 = arith.constant 0 : index
    %214 = vector.load %arg13[%c0_117, %c0_118] : memref<2x32xf32, #tpu.memory_space<vmem>>, vector<2x32xf32>
    %215 = arith.mulf %210, %214 : vector<2x32xf32>
    %216 = arith.mulf %209, %213 : vector<2x32xf32>
    %217 = arith.addf %215, %216 : vector<2x32xf32>
    %218 = math.tanh %217 : vector<2x32xf32>
    %219 = arith.mulf %211, %218 : vector<2x32xf32>
    %c0_119 = arith.constant 0 : index
    %c0_120 = arith.constant 0 : index
    %220 = vector.load %arg12[%c0_119, %c0_120] : memref<2x32xf32, #tpu.memory_space<vmem>>, vector<2x32xf32>
    tpu.vector_store %arg12[%c0_119, %c0_120], %219 {strides = array<i32>} : memref<2x32xf32, #tpu.memory_space<vmem>>, vector<2x32xf32>,
    %c0_121 = arith.constant 0 : index
    %c0_122 = arith.constant 0 : index
    %221 = vector.load %arg13[%c0_121, %c0_122] : memref<2x32xf32, #tpu.memory_space<vmem>>, vector<2x32xf32>
    tpu.vector_store %arg13[%c0_121, %c0_122], %217 {strides = array<i32>} : memref<2x32xf32, #tpu.memory_space<vmem>>, vector<2x32xf32>,
    %222 = arith.index_cast %c4_i32_110 : i32 to index
    %c0_123 = arith.constant 0 : index
    %c0_124 = arith.constant 0 : index
    %223 = vector.load %arg11[%222, %c0_123, %c0_124] : memref<8x2x32xf32, #tpu.memory_space<vmem>>, vector<1x2x32xf32>
    %224 = vector.shape_cast %223 : vector<1x2x32xf32> to vector<2x32xf32>
    %225 = vector.shape_cast %219 : vector<2x32xf32> to vector<1x2x32xf32>
    tpu.vector_store %arg11[%222, %c0_123, %c0_124], %225 {strides = array<i32>} : memref<8x2x32xf32, #tpu.memory_space<vmem>>, vector<1x2x32xf32>,
    %c5_i32_125 = arith.constant 5 : i32
    %226 = arith.index_cast %c5_i32_125 : i32 to index
    %c0_126 = arith.constant 0 : index
    %c0_127 = arith.constant 0 : index
    %227 = vector.load %arg10[%226, %c0_126, %c0_127] : memref<8x2x128xf32, #tpu.memory_space<vmem>>, vector<1x2x128xf32>
    %228 = vector.shape_cast %227 : vector<1x2x128xf32> to vector<2x128xf32>
    %c0_128 = arith.constant 0 : index
    %c0_129 = arith.constant 0 : index
    %229 = vector.load %arg12[%c0_128, %c0_129] : memref<2x32xf32, #tpu.memory_space<vmem>>, vector<2x32xf32>
    %cst_130 = arith.constant dense<0.000000e+00> : vector<2x128xf32>
    %230 = tpu.matmul %229, %80, %cst_130 {dimension_numbers = #tpu.dot_dimension_numbers<[1], [0], [0], [1], [0, 0, 1, 1], [], []>} : vector<2x32xf32>, vector<32x128xf32>, vector<2x128xf32> -> vector<2x128xf32>
    %231 = arith.addf %228, %230 : vector<2x128xf32>
    %232 = vector.extract_strided_slice %231 {offsets = [0, 0], sizes = [2, 96], strides = [1, 1]} : vector<2x128xf32> to vector<2x96xf32>
    %233 = arith.negf %232 : vector<2x96xf32>
    %234 = math.exp %233 : vector<2x96xf32>
    %cst_131 = arith.constant 1.000000e+00 : f32
    %235 = vector.broadcast %cst_131 : f32 to vector<2x96xf32>
    %236 = arith.addf %235, %234 : vector<2x96xf32>
    %237 = arith.divf %235, %236 : vector<2x96xf32>
    %238 = vector.extract_strided_slice %237 {offsets = [0, 0], sizes = [2, 32], strides = [1, 1]} : vector<2x96xf32> to vector<2x32xf32>
    %239 = vector.extract_strided_slice %237 {offsets = [0, 32], sizes = [2, 32], strides = [1, 1]} : vector<2x96xf32> to vector<2x32xf32>
    %240 = vector.extract_strided_slice %237 {offsets = [0, 64], sizes = [2, 32], strides = [1, 1]} : vector<2x96xf32> to vector<2x32xf32>
    %241 = vector.extract_strided_slice %231 {offsets = [0, 96], sizes = [2, 32], strides = [1, 1]} : vector<2x128xf32> to vector<2x32xf32>
    %242 = math.tanh %241 : vector<2x32xf32>
    %c0_132 = arith.constant 0 : index
    %c0_133 = arith.constant 0 : index
    %243 = vector.load %arg13[%c0_132, %c0_133] : memref<2x32xf32, #tpu.memory_space<vmem>>, vector<2x32xf32>
    %244 = arith.mulf %239, %243 : vector<2x32xf32>
    %245 = arith.mulf %238, %242 : vector<2x32xf32>
    %246 = arith.addf %244, %245 : vector<2x32xf32>
    %247 = math.tanh %246 : vector<2x32xf32>
    %248 = arith.mulf %240, %247 : vector<2x32xf32>
    %c0_134 = arith.constant 0 : index
    %c0_135 = arith.constant 0 : index
    %249 = vector.load %arg12[%c0_134, %c0_135] : memref<2x32xf32, #tpu.memory_space<vmem>>, vector<2x32xf32>
    tpu.vector_store %arg12[%c0_134, %c0_135], %248 {strides = array<i32>} : memref<2x32xf32, #tpu.memory_space<vmem>>, vector<2x32xf32>,
    %c0_136 = arith.constant 0 : index
    %c0_137 = arith.constant 0 : index
    %250 = vector.load %arg13[%c0_136, %c0_137] : memref<2x32xf32, #tpu.memory_space<vmem>>, vector<2x32xf32>
    tpu.vector_store %arg13[%c0_136, %c0_137], %246 {strides = array<i32>} : memref<2x32xf32, #tpu.memory_space<vmem>>, vector<2x32xf32>,
    %251 = arith.index_cast %c5_i32_125 : i32 to index
    %c0_138 = arith.constant 0 : index
    %c0_139 = arith.constant 0 : index
    %252 = vector.load %arg11[%251, %c0_138, %c0_139] : memref<8x2x32xf32, #tpu.memory_space<vmem>>, vector<1x2x32xf32>
    %253 = vector.shape_cast %252 : vector<1x2x32xf32> to vector<2x32xf32>
    %254 = vector.shape_cast %248 : vector<2x32xf32> to vector<1x2x32xf32>
    tpu.vector_store %arg11[%251, %c0_138, %c0_139], %254 {strides = array<i32>} : memref<8x2x32xf32, #tpu.memory_space<vmem>>, vector<1x2x32xf32>,
    %c6_i32_140 = arith.constant 6 : i32
    %255 = arith.index_cast %c6_i32_140 : i32 to index
    %c0_141 = arith.constant 0 : index
    %c0_142 = arith.constant 0 : index
    %256 = vector.load %arg10[%255, %c0_141, %c0_142] : memref<8x2x128xf32, #tpu.memory_space<vmem>>, vector<1x2x128xf32>
    %257 = vector.shape_cast %256 : vector<1x2x128xf32> to vector<2x128xf32>
    %c0_143 = arith.constant 0 : index
    %c0_144 = arith.constant 0 : index
    %258 = vector.load %arg12[%c0_143, %c0_144] : memref<2x32xf32, #tpu.memory_space<vmem>>, vector<2x32xf32>
    %cst_145 = arith.constant dense<0.000000e+00> : vector<2x128xf32>
    %259 = tpu.matmul %258, %80, %cst_145 {dimension_numbers = #tpu.dot_dimension_numbers<[1], [0], [0], [1], [0, 0, 1, 1], [], []>} : vector<2x32xf32>, vector<32x128xf32>, vector<2x128xf32> -> vector<2x128xf32>
    %260 = arith.addf %257, %259 : vector<2x128xf32>
    %261 = vector.extract_strided_slice %260 {offsets = [0, 0], sizes = [2, 96], strides = [1, 1]} : vector<2x128xf32> to vector<2x96xf32>
    %262 = arith.negf %261 : vector<2x96xf32>
    %263 = math.exp %262 : vector<2x96xf32>
    %cst_146 = arith.constant 1.000000e+00 : f32
    %264 = vector.broadcast %cst_146 : f32 to vector<2x96xf32>
    %265 = arith.addf %264, %263 : vector<2x96xf32>
    %266 = arith.divf %264, %265 : vector<2x96xf32>
    %267 = vector.extract_strided_slice %266 {offsets = [0, 0], sizes = [2, 32], strides = [1, 1]} : vector<2x96xf32> to vector<2x32xf32>
    %268 = vector.extract_strided_slice %266 {offsets = [0, 32], sizes = [2, 32], strides = [1, 1]} : vector<2x96xf32> to vector<2x32xf32>
    %269 = vector.extract_strided_slice %266 {offsets = [0, 64], sizes = [2, 32], strides = [1, 1]} : vector<2x96xf32> to vector<2x32xf32>
    %270 = vector.extract_strided_slice %260 {offsets = [0, 96], sizes = [2, 32], strides = [1, 1]} : vector<2x128xf32> to vector<2x32xf32>
    %271 = math.tanh %270 : vector<2x32xf32>
    %c0_147 = arith.constant 0 : index
    %c0_148 = arith.constant 0 : index
    %272 = vector.load %arg13[%c0_147, %c0_148] : memref<2x32xf32, #tpu.memory_space<vmem>>, vector<2x32xf32>
    %273 = arith.mulf %268, %272 : vector<2x32xf32>
    %274 = arith.mulf %267, %271 : vector<2x32xf32>
    %275 = arith.addf %273, %274 : vector<2x32xf32>
    %276 = math.tanh %275 : vector<2x32xf32>
    %277 = arith.mulf %269, %276 : vector<2x32xf32>
    %c0_149 = arith.constant 0 : index
    %c0_150 = arith.constant 0 : index
    %278 = vector.load %arg12[%c0_149, %c0_150] : memref<2x32xf32, #tpu.memory_space<vmem>>, vector<2x32xf32>
    tpu.vector_store %arg12[%c0_149, %c0_150], %277 {strides = array<i32>} : memref<2x32xf32, #tpu.memory_space<vmem>>, vector<2x32xf32>,
    %c0_151 = arith.constant 0 : index
    %c0_152 = arith.constant 0 : index
    %279 = vector.load %arg13[%c0_151, %c0_152] : memref<2x32xf32, #tpu.memory_space<vmem>>, vector<2x32xf32>
    tpu.vector_store %arg13[%c0_151, %c0_152], %275 {strides = array<i32>} : memref<2x32xf32, #tpu.memory_space<vmem>>, vector<2x32xf32>,
    %280 = arith.index_cast %c6_i32_140 : i32 to index
    %c0_153 = arith.constant 0 : index
    %c0_154 = arith.constant 0 : index
    %281 = vector.load %arg11[%280, %c0_153, %c0_154] : memref<8x2x32xf32, #tpu.memory_space<vmem>>, vector<1x2x32xf32>
    %282 = vector.shape_cast %281 : vector<1x2x32xf32> to vector<2x32xf32>
    %283 = vector.shape_cast %277 : vector<2x32xf32> to vector<1x2x32xf32>
    tpu.vector_store %arg11[%280, %c0_153, %c0_154], %283 {strides = array<i32>} : memref<8x2x32xf32, #tpu.memory_space<vmem>>, vector<1x2x32xf32>,
    %c7_i32_155 = arith.constant 7 : i32
    %284 = arith.index_cast %c7_i32_155 : i32 to index
    %c0_156 = arith.constant 0 : index
    %c0_157 = arith.constant 0 : index
    %285 = vector.load %arg10[%284, %c0_156, %c0_157] : memref<8x2x128xf32, #tpu.memory_space<vmem>>, vector<1x2x128xf32>
    %286 = vector.shape_cast %285 : vector<1x2x128xf32> to vector<2x128xf32>
    %c0_158 = arith.constant 0 : index
    %c0_159 = arith.constant 0 : index
    %287 = vector.load %arg12[%c0_158, %c0_159] : memref<2x32xf32, #tpu.memory_space<vmem>>, vector<2x32xf32>
    %cst_160 = arith.constant dense<0.000000e+00> : vector<2x128xf32>
    %288 = tpu.matmul %287, %80, %cst_160 {dimension_numbers = #tpu.dot_dimension_numbers<[1], [0], [0], [1], [0, 0, 1, 1], [], []>} : vector<2x32xf32>, vector<32x128xf32>, vector<2x128xf32> -> vector<2x128xf32>
    %289 = arith.addf %286, %288 : vector<2x128xf32>
    %290 = vector.extract_strided_slice %289 {offsets = [0, 0], sizes = [2, 96], strides = [1, 1]} : vector<2x128xf32> to vector<2x96xf32>
    %291 = arith.negf %290 : vector<2x96xf32>
    %292 = math.exp %291 : vector<2x96xf32>
    %cst_161 = arith.constant 1.000000e+00 : f32
    %293 = vector.broadcast %cst_161 : f32 to vector<2x96xf32>
    %294 = arith.addf %293, %292 : vector<2x96xf32>
    %295 = arith.divf %293, %294 : vector<2x96xf32>
    %296 = vector.extract_strided_slice %295 {offsets = [0, 0], sizes = [2, 32], strides = [1, 1]} : vector<2x96xf32> to vector<2x32xf32>
    %297 = vector.extract_strided_slice %295 {offsets = [0, 32], sizes = [2, 32], strides = [1, 1]} : vector<2x96xf32> to vector<2x32xf32>
    %298 = vector.extract_strided_slice %295 {offsets = [0, 64], sizes = [2, 32], strides = [1, 1]} : vector<2x96xf32> to vector<2x32xf32>
    %299 = vector.extract_strided_slice %289 {offsets = [0, 96], sizes = [2, 32], strides = [1, 1]} : vector<2x128xf32> to vector<2x32xf32>
    %300 = math.tanh %299 : vector<2x32xf32>
    %c0_162 = arith.constant 0 : index
    %c0_163 = arith.constant 0 : index
    %301 = vector.load %arg13[%c0_162, %c0_163] : memref<2x32xf32, #tpu.memory_space<vmem>>, vector<2x32xf32>
    %302 = arith.mulf %297, %301 : vector<2x32xf32>
    %303 = arith.mulf %296, %300 : vector<2x32xf32>
    %304 = arith.addf %302, %303 : vector<2x32xf32>
    %305 = math.tanh %304 : vector<2x32xf32>
    %306 = arith.mulf %298, %305 : vector<2x32xf32>
    %c0_164 = arith.constant 0 : index
    %c0_165 = arith.constant 0 : index
    %307 = vector.load %arg12[%c0_164, %c0_165] : memref<2x32xf32, #tpu.memory_space<vmem>>, vector<2x32xf32>
    tpu.vector_store %arg12[%c0_164, %c0_165], %306 {strides = array<i32>} : memref<2x32xf32, #tpu.memory_space<vmem>>, vector<2x32xf32>,
    %c0_166 = arith.constant 0 : index
    %c0_167 = arith.constant 0 : index
    %308 = vector.load %arg13[%c0_166, %c0_167] : memref<2x32xf32, #tpu.memory_space<vmem>>, vector<2x32xf32>
    tpu.vector_store %arg13[%c0_166, %c0_167], %304 {strides = array<i32>} : memref<2x32xf32, #tpu.memory_space<vmem>>, vector<2x32xf32>,
    %309 = arith.index_cast %c7_i32_155 : i32 to index
    %c0_168 = arith.constant 0 : index
    %c0_169 = arith.constant 0 : index
    %310 = vector.load %arg11[%309, %c0_168, %c0_169] : memref<8x2x32xf32, #tpu.memory_space<vmem>>, vector<1x2x32xf32>
    %311 = vector.shape_cast %310 : vector<1x2x32xf32> to vector<2x32xf32>
    %312 = vector.shape_cast %306 : vector<2x32xf32> to vector<1x2x32xf32>
    tpu.vector_store %arg11[%309, %c0_168, %c0_169], %312 {strides = array<i32>} : memref<8x2x32xf32, #tpu.memory_space<vmem>>, vector<1x2x32xf32>,
    %c8_i32_170 = arith.constant 8 : i32
    %c0_171 = arith.constant 0 : index
    %c0_172 = arith.constant 0 : index
    %313 = vector.load %arg12[%c0_171, %c0_172] : memref<2x32xf32, #tpu.memory_space<vmem>>, vector<2x32xf32>
    %c0_173 = arith.constant 0 : index
    %c0_174 = arith.constant 0 : index
    %c0_175 = arith.constant 0 : index
    %314 = vector.load %arg8[%c0_173, %c0_174, %c0_175] : memref<2x2x32xf32, #tpu.memory_space<vmem>>, vector<1x2x32xf32>
    %315 = vector.shape_cast %314 : vector<1x2x32xf32> to vector<2x32xf32>
    %316 = vector.shape_cast %313 : vector<2x32xf32> to vector<1x2x32xf32>
    tpu.vector_store %arg8[%c0_173, %c0_174, %c0_175], %316 {strides = array<i32>} : memref<2x2x32xf32, #tpu.memory_space<vmem>>, vector<1x2x32xf32>,
    %c0_176 = arith.constant 0 : index
    %c0_177 = arith.constant 0 : index
    %317 = vector.load %arg13[%c0_176, %c0_177] : memref<2x32xf32, #tpu.memory_space<vmem>>, vector<2x32xf32>
    %c0_178 = arith.constant 0 : index
    %c0_179 = arith.constant 0 : index
    %c0_180 = arith.constant 0 : index
    %318 = vector.load %arg9[%c0_178, %c0_179, %c0_180] : memref<2x2x32xf32, #tpu.memory_space<vmem>>, vector<1x2x32xf32>
    %319 = vector.shape_cast %318 : vector<1x2x32xf32> to vector<2x32xf32>
    %320 = vector.shape_cast %317 : vector<2x32xf32> to vector<1x2x32xf32>
    tpu.vector_store %arg9[%c0_178, %c0_179, %c0_180], %320 {strides = array<i32>} : memref<2x2x32xf32, #tpu.memory_space<vmem>>, vector<1x2x32xf32>,
    %c0_181 = arith.constant 0 : index
    %c0_182 = arith.constant 0 : index
    %321 = vector.load %arg5[%c0_181, %c0_182] : memref<32x128xf32, #tpu.memory_space<vmem>>, vector<32x128xf32>
    %c0_183 = arith.constant 0 : index
    %c0_184 = arith.constant 0 : index
    %322 = vector.load %arg7[%c0_183, %c0_184] : memref<1x128xf32, #tpu.memory_space<vmem>>, vector<1x128xf32>
    %323 = vector.shape_cast %322 : vector<1x128xf32> to vector<1x128xf32>
    %324 = vector.broadcast %323 : vector<1x128xf32> to vector<2x128xf32>
    %c0_i32_185 = arith.constant 0 : i32
    %325 = arith.index_cast %c0_i32_185 : i32 to index
    %c0_186 = arith.constant 0 : index
    %c0_187 = arith.constant 0 : index
    %326 = vector.load %arg11[%325, %c0_186, %c0_187] : memref<8x2x32xf32, #tpu.memory_space<vmem>>, vector<1x2x32xf32>
    %327 = vector.shape_cast %326 : vector<1x2x32xf32> to vector<2x32xf32>
    %cst_188 = arith.constant dense<0.000000e+00> : vector<2x128xf32>
    %328 = tpu.matmul %327, %321, %cst_188 {dimension_numbers = #tpu.dot_dimension_numbers<[1], [0], [0], [1], [0, 0, 1, 1], [], []>} : vector<2x32xf32>, vector<32x128xf32>, vector<2x128xf32> -> vector<2x128xf32>
    %329 = arith.addf %328, %324 : vector<2x128xf32>
    %330 = arith.index_cast %c0_i32_185 : i32 to index
    %c0_189 = arith.constant 0 : index
    %c0_190 = arith.constant 0 : index
    %331 = vector.load %arg10[%330, %c0_189, %c0_190] : memref<8x2x128xf32, #tpu.memory_space<vmem>>, vector<1x2x128xf32>
    %332 = vector.shape_cast %331 : vector<1x2x128xf32> to vector<2x128xf32>
    %333 = vector.shape_cast %329 : vector<2x128xf32> to vector<1x2x128xf32>
    tpu.vector_store %arg10[%330, %c0_189, %c0_190], %333 {strides = array<i32>} : memref<8x2x128xf32, #tpu.memory_space<vmem>>, vector<1x2x128xf32>,
    %c1_i32_191 = arith.constant 1 : i32
    %334 = arith.index_cast %c1_i32_191 : i32 to index
    %c0_192 = arith.constant 0 : index
    %c0_193 = arith.constant 0 : index
    %335 = vector.load %arg11[%334, %c0_192, %c0_193] : memref<8x2x32xf32, #tpu.memory_space<vmem>>, vector<1x2x32xf32>
    %336 = vector.shape_cast %335 : vector<1x2x32xf32> to vector<2x32xf32>
    %cst_194 = arith.constant dense<0.000000e+00> : vector<2x128xf32>
    %337 = tpu.matmul %336, %321, %cst_194 {dimension_numbers = #tpu.dot_dimension_numbers<[1], [0], [0], [1], [0, 0, 1, 1], [], []>} : vector<2x32xf32>, vector<32x128xf32>, vector<2x128xf32> -> vector<2x128xf32>
    %338 = arith.addf %337, %324 : vector<2x128xf32>
    %339 = arith.index_cast %c1_i32_191 : i32 to index
    %c0_195 = arith.constant 0 : index
    %c0_196 = arith.constant 0 : index
    %340 = vector.load %arg10[%339, %c0_195, %c0_196] : memref<8x2x128xf32, #tpu.memory_space<vmem>>, vector<1x2x128xf32>
    %341 = vector.shape_cast %340 : vector<1x2x128xf32> to vector<2x128xf32>
    %342 = vector.shape_cast %338 : vector<2x128xf32> to vector<1x2x128xf32>
    tpu.vector_store %arg10[%339, %c0_195, %c0_196], %342 {strides = array<i32>} : memref<8x2x128xf32, #tpu.memory_space<vmem>>, vector<1x2x128xf32>,
    %c2_i32_197 = arith.constant 2 : i32
    %343 = arith.index_cast %c2_i32_197 : i32 to index
    %c0_198 = arith.constant 0 : index
    %c0_199 = arith.constant 0 : index
    %344 = vector.load %arg11[%343, %c0_198, %c0_199] : memref<8x2x32xf32, #tpu.memory_space<vmem>>, vector<1x2x32xf32>
    %345 = vector.shape_cast %344 : vector<1x2x32xf32> to vector<2x32xf32>
    %cst_200 = arith.constant dense<0.000000e+00> : vector<2x128xf32>
    %346 = tpu.matmul %345, %321, %cst_200 {dimension_numbers = #tpu.dot_dimension_numbers<[1], [0], [0], [1], [0, 0, 1, 1], [], []>} : vector<2x32xf32>, vector<32x128xf32>, vector<2x128xf32> -> vector<2x128xf32>
    %347 = arith.addf %346, %324 : vector<2x128xf32>
    %348 = arith.index_cast %c2_i32_197 : i32 to index
    %c0_201 = arith.constant 0 : index
    %c0_202 = arith.constant 0 : index
    %349 = vector.load %arg10[%348, %c0_201, %c0_202] : memref<8x2x128xf32, #tpu.memory_space<vmem>>, vector<1x2x128xf32>
    %350 = vector.shape_cast %349 : vector<1x2x128xf32> to vector<2x128xf32>
    %351 = vector.shape_cast %347 : vector<2x128xf32> to vector<1x2x128xf32>
    tpu.vector_store %arg10[%348, %c0_201, %c0_202], %351 {strides = array<i32>} : memref<8x2x128xf32, #tpu.memory_space<vmem>>, vector<1x2x128xf32>,
    %c3_i32_203 = arith.constant 3 : i32
    %352 = arith.index_cast %c3_i32_203 : i32 to index
    %c0_204 = arith.constant 0 : index
    %c0_205 = arith.constant 0 : index
    %353 = vector.load %arg11[%352, %c0_204, %c0_205] : memref<8x2x32xf32, #tpu.memory_space<vmem>>, vector<1x2x32xf32>
    %354 = vector.shape_cast %353 : vector<1x2x32xf32> to vector<2x32xf32>
    %cst_206 = arith.constant dense<0.000000e+00> : vector<2x128xf32>
    %355 = tpu.matmul %354, %321, %cst_206 {dimension_numbers = #tpu.dot_dimension_numbers<[1], [0], [0], [1], [0, 0, 1, 1], [], []>} : vector<2x32xf32>, vector<32x128xf32>, vector<2x128xf32> -> vector<2x128xf32>
    %356 = arith.addf %355, %324 : vector<2x128xf32>
    %357 = arith.index_cast %c3_i32_203 : i32 to index
    %c0_207 = arith.constant 0 : index
    %c0_208 = arith.constant 0 : index
    %358 = vector.load %arg10[%357, %c0_207, %c0_208] : memref<8x2x128xf32, #tpu.memory_space<vmem>>, vector<1x2x128xf32>
    %359 = vector.shape_cast %358 : vector<1x2x128xf32> to vector<2x128xf32>
    %360 = vector.shape_cast %356 : vector<2x128xf32> to vector<1x2x128xf32>
    tpu.vector_store %arg10[%357, %c0_207, %c0_208], %360 {strides = array<i32>} : memref<8x2x128xf32, #tpu.memory_space<vmem>>, vector<1x2x128xf32>,
    %c4_i32_209 = arith.constant 4 : i32
    %361 = arith.index_cast %c4_i32_209 : i32 to index
    %c0_210 = arith.constant 0 : index
    %c0_211 = arith.constant 0 : index
    %362 = vector.load %arg11[%361, %c0_210, %c0_211] : memref<8x2x32xf32, #tpu.memory_space<vmem>>, vector<1x2x32xf32>
    %363 = vector.shape_cast %362 : vector<1x2x32xf32> to vector<2x32xf32>
    %cst_212 = arith.constant dense<0.000000e+00> : vector<2x128xf32>
    %364 = tpu.matmul %363, %321, %cst_212 {dimension_numbers = #tpu.dot_dimension_numbers<[1], [0], [0], [1], [0, 0, 1, 1], [], []>} : vector<2x32xf32>, vector<32x128xf32>, vector<2x128xf32> -> vector<2x128xf32>
    %365 = arith.addf %364, %324 : vector<2x128xf32>
    %366 = arith.index_cast %c4_i32_209 : i32 to index
    %c0_213 = arith.constant 0 : index
    %c0_214 = arith.constant 0 : index
    %367 = vector.load %arg10[%366, %c0_213, %c0_214] : memref<8x2x128xf32, #tpu.memory_space<vmem>>, vector<1x2x128xf32>
    %368 = vector.shape_cast %367 : vector<1x2x128xf32> to vector<2x128xf32>
    %369 = vector.shape_cast %365 : vector<2x128xf32> to vector<1x2x128xf32>
    tpu.vector_store %arg10[%366, %c0_213, %c0_214], %369 {strides = array<i32>} : memref<8x2x128xf32, #tpu.memory_space<vmem>>, vector<1x2x128xf32>,
    %c5_i32_215 = arith.constant 5 : i32
    %370 = arith.index_cast %c5_i32_215 : i32 to index
    %c0_216 = arith.constant 0 : index
    %c0_217 = arith.constant 0 : index
    %371 = vector.load %arg11[%370, %c0_216, %c0_217] : memref<8x2x32xf32, #tpu.memory_space<vmem>>, vector<1x2x32xf32>
    %372 = vector.shape_cast %371 : vector<1x2x32xf32> to vector<2x32xf32>
    %cst_218 = arith.constant dense<0.000000e+00> : vector<2x128xf32>
    %373 = tpu.matmul %372, %321, %cst_218 {dimension_numbers = #tpu.dot_dimension_numbers<[1], [0], [0], [1], [0, 0, 1, 1], [], []>} : vector<2x32xf32>, vector<32x128xf32>, vector<2x128xf32> -> vector<2x128xf32>
    %374 = arith.addf %373, %324 : vector<2x128xf32>
    %375 = arith.index_cast %c5_i32_215 : i32 to index
    %c0_219 = arith.constant 0 : index
    %c0_220 = arith.constant 0 : index
    %376 = vector.load %arg10[%375, %c0_219, %c0_220] : memref<8x2x128xf32, #tpu.memory_space<vmem>>, vector<1x2x128xf32>
    %377 = vector.shape_cast %376 : vector<1x2x128xf32> to vector<2x128xf32>
    %378 = vector.shape_cast %374 : vector<2x128xf32> to vector<1x2x128xf32>
    tpu.vector_store %arg10[%375, %c0_219, %c0_220], %378 {strides = array<i32>} : memref<8x2x128xf32, #tpu.memory_space<vmem>>, vector<1x2x128xf32>,
    %c6_i32_221 = arith.constant 6 : i32
    %379 = arith.index_cast %c6_i32_221 : i32 to index
    %c0_222 = arith.constant 0 : index
    %c0_223 = arith.constant 0 : index
    %380 = vector.load %arg11[%379, %c0_222, %c0_223] : memref<8x2x32xf32, #tpu.memory_space<vmem>>, vector<1x2x32xf32>
    %381 = vector.shape_cast %380 : vector<1x2x32xf32> to vector<2x32xf32>
    %cst_224 = arith.constant dense<0.000000e+00> : vector<2x128xf32>
    %382 = tpu.matmul %381, %321, %cst_224 {dimension_numbers = #tpu.dot_dimension_numbers<[1], [0], [0], [1], [0, 0, 1, 1], [], []>} : vector<2x32xf32>, vector<32x128xf32>, vector<2x128xf32> -> vector<2x128xf32>
    %383 = arith.addf %382, %324 : vector<2x128xf32>
    %384 = arith.index_cast %c6_i32_221 : i32 to index
    %c0_225 = arith.constant 0 : index
    %c0_226 = arith.constant 0 : index
    %385 = vector.load %arg10[%384, %c0_225, %c0_226] : memref<8x2x128xf32, #tpu.memory_space<vmem>>, vector<1x2x128xf32>
    %386 = vector.shape_cast %385 : vector<1x2x128xf32> to vector<2x128xf32>
    %387 = vector.shape_cast %383 : vector<2x128xf32> to vector<1x2x128xf32>
    tpu.vector_store %arg10[%384, %c0_225, %c0_226], %387 {strides = array<i32>} : memref<8x2x128xf32, #tpu.memory_space<vmem>>, vector<1x2x128xf32>,
    %c7_i32_227 = arith.constant 7 : i32
    %388 = arith.index_cast %c7_i32_227 : i32 to index
    %c0_228 = arith.constant 0 : index
    %c0_229 = arith.constant 0 : index
    %389 = vector.load %arg11[%388, %c0_228, %c0_229] : memref<8x2x32xf32, #tpu.memory_space<vmem>>, vector<1x2x32xf32>
    %390 = vector.shape_cast %389 : vector<1x2x32xf32> to vector<2x32xf32>
    %cst_230 = arith.constant dense<0.000000e+00> : vector<2x128xf32>
    %391 = tpu.matmul %390, %321, %cst_230 {dimension_numbers = #tpu.dot_dimension_numbers<[1], [0], [0], [1], [0, 0, 1, 1], [], []>} : vector<2x32xf32>, vector<32x128xf32>, vector<2x128xf32> -> vector<2x128xf32>
    %392 = arith.addf %391, %324 : vector<2x128xf32>
    %393 = arith.index_cast %c7_i32_227 : i32 to index
    %c0_231 = arith.constant 0 : index
    %c0_232 = arith.constant 0 : index
    %394 = vector.load %arg10[%393, %c0_231, %c0_232] : memref<8x2x128xf32, #tpu.memory_space<vmem>>, vector<1x2x128xf32>
    %395 = vector.shape_cast %394 : vector<1x2x128xf32> to vector<2x128xf32>
    %396 = vector.shape_cast %392 : vector<2x128xf32> to vector<1x2x128xf32>
    tpu.vector_store %arg10[%393, %c0_231, %c0_232], %396 {strides = array<i32>} : memref<8x2x128xf32, #tpu.memory_space<vmem>>, vector<1x2x128xf32>,
    %c8_i32_233 = arith.constant 8 : i32
    %cst_234 = arith.constant 0.000000e+00 : f32
    %397 = vector.broadcast %cst_234 : f32 to vector<2x32xf32>
    %c0_235 = arith.constant 0 : index
    %c0_236 = arith.constant 0 : index
    %398 = vector.load %arg12[%c0_235, %c0_236] : memref<2x32xf32, #tpu.memory_space<vmem>>, vector<2x32xf32>
    tpu.vector_store %arg12[%c0_235, %c0_236], %397 {strides = array<i32>} : memref<2x32xf32, #tpu.memory_space<vmem>>, vector<2x32xf32>,
    %cst_237 = arith.constant 0.000000e+00 : f32
    %399 = vector.broadcast %cst_237 : f32 to vector<2x32xf32>
    %c0_238 = arith.constant 0 : index
    %c0_239 = arith.constant 0 : index
    %400 = vector.load %arg13[%c0_238, %c0_239] : memref<2x32xf32, #tpu.memory_space<vmem>>, vector<2x32xf32>
    tpu.vector_store %arg13[%c0_238, %c0_239], %399 {strides = array<i32>} : memref<2x32xf32, #tpu.memory_space<vmem>>, vector<2x32xf32>,
    %c0_240 = arith.constant 0 : index
    %c0_241 = arith.constant 0 : index
    %401 = vector.load %arg6[%c0_240, %c0_241] : memref<32x128xf32, #tpu.memory_space<vmem>>, vector<32x128xf32>
    %c0_i32_242 = arith.constant 0 : i32
    %402 = arith.index_cast %c0_i32_242 : i32 to index
    %c0_243 = arith.constant 0 : index
    %c0_244 = arith.constant 0 : index
    %403 = vector.load %arg10[%402, %c0_243, %c0_244] : memref<8x2x128xf32, #tpu.memory_space<vmem>>, vector<1x2x128xf32>
    %404 = vector.shape_cast %403 : vector<1x2x128xf32> to vector<2x128xf32>
    %c0_245 = arith.constant 0 : index
    %c0_246 = arith.constant 0 : index
    %405 = vector.load %arg12[%c0_245, %c0_246] : memref<2x32xf32, #tpu.memory_space<vmem>>, vector<2x32xf32>
    %cst_247 = arith.constant dense<0.000000e+00> : vector<2x128xf32>
    %406 = tpu.matmul %405, %401, %cst_247 {dimension_numbers = #tpu.dot_dimension_numbers<[1], [0], [0], [1], [0, 0, 1, 1], [], []>} : vector<2x32xf32>, vector<32x128xf32>, vector<2x128xf32> -> vector<2x128xf32>
    %407 = arith.addf %404, %406 : vector<2x128xf32>
    %408 = vector.extract_strided_slice %407 {offsets = [0, 0], sizes = [2, 96], strides = [1, 1]} : vector<2x128xf32> to vector<2x96xf32>
    %409 = arith.negf %408 : vector<2x96xf32>
    %410 = math.exp %409 : vector<2x96xf32>
    %cst_248 = arith.constant 1.000000e+00 : f32
    %411 = vector.broadcast %cst_248 : f32 to vector<2x96xf32>
    %412 = arith.addf %411, %410 : vector<2x96xf32>
    %413 = arith.divf %411, %412 : vector<2x96xf32>
    %414 = vector.extract_strided_slice %413 {offsets = [0, 0], sizes = [2, 32], strides = [1, 1]} : vector<2x96xf32> to vector<2x32xf32>
    %415 = vector.extract_strided_slice %413 {offsets = [0, 32], sizes = [2, 32], strides = [1, 1]} : vector<2x96xf32> to vector<2x32xf32>
    %416 = vector.extract_strided_slice %413 {offsets = [0, 64], sizes = [2, 32], strides = [1, 1]} : vector<2x96xf32> to vector<2x32xf32>
    %417 = vector.extract_strided_slice %407 {offsets = [0, 96], sizes = [2, 32], strides = [1, 1]} : vector<2x128xf32> to vector<2x32xf32>
    %418 = math.tanh %417 : vector<2x32xf32>
    %c0_249 = arith.constant 0 : index
    %c0_250 = arith.constant 0 : index
    %419 = vector.load %arg13[%c0_249, %c0_250] : memref<2x32xf32, #tpu.memory_space<vmem>>, vector<2x32xf32>
    %420 = arith.mulf %415, %419 : vector<2x32xf32>
    %421 = arith.mulf %414, %418 : vector<2x32xf32>
    %422 = arith.addf %420, %421 : vector<2x32xf32>
    %423 = math.tanh %422 : vector<2x32xf32>
    %424 = arith.mulf %416, %423 : vector<2x32xf32>
    %c0_251 = arith.constant 0 : index
    %c0_252 = arith.constant 0 : index
    %425 = vector.load %arg12[%c0_251, %c0_252] : memref<2x32xf32, #tpu.memory_space<vmem>>, vector<2x32xf32>
    tpu.vector_store %arg12[%c0_251, %c0_252], %424 {strides = array<i32>} : memref<2x32xf32, #tpu.memory_space<vmem>>, vector<2x32xf32>,
    %c0_253 = arith.constant 0 : index
    %c0_254 = arith.constant 0 : index
    %426 = vector.load %arg13[%c0_253, %c0_254] : memref<2x32xf32, #tpu.memory_space<vmem>>, vector<2x32xf32>
    tpu.vector_store %arg13[%c0_253, %c0_254], %422 {strides = array<i32>} : memref<2x32xf32, #tpu.memory_space<vmem>>, vector<2x32xf32>,
    %427 = arith.index_cast %c0_i32_242 : i32 to index
    %c0_255 = arith.constant 0 : index
    %c0_256 = arith.constant 0 : index
    %428 = vector.load %arg11[%427, %c0_255, %c0_256] : memref<8x2x32xf32, #tpu.memory_space<vmem>>, vector<1x2x32xf32>
    %429 = vector.shape_cast %428 : vector<1x2x32xf32> to vector<2x32xf32>
    %430 = vector.shape_cast %424 : vector<2x32xf32> to vector<1x2x32xf32>
    tpu.vector_store %arg11[%427, %c0_255, %c0_256], %430 {strides = array<i32>} : memref<8x2x32xf32, #tpu.memory_space<vmem>>, vector<1x2x32xf32>,
    %c1_i32_257 = arith.constant 1 : i32
    %431 = arith.index_cast %c1_i32_257 : i32 to index
    %c0_258 = arith.constant 0 : index
    %c0_259 = arith.constant 0 : index
    %432 = vector.load %arg10[%431, %c0_258, %c0_259] : memref<8x2x128xf32, #tpu.memory_space<vmem>>, vector<1x2x128xf32>
    %433 = vector.shape_cast %432 : vector<1x2x128xf32> to vector<2x128xf32>
    %c0_260 = arith.constant 0 : index
    %c0_261 = arith.constant 0 : index
    %434 = vector.load %arg12[%c0_260, %c0_261] : memref<2x32xf32, #tpu.memory_space<vmem>>, vector<2x32xf32>
    %cst_262 = arith.constant dense<0.000000e+00> : vector<2x128xf32>
    %435 = tpu.matmul %434, %401, %cst_262 {dimension_numbers = #tpu.dot_dimension_numbers<[1], [0], [0], [1], [0, 0, 1, 1], [], []>} : vector<2x32xf32>, vector<32x128xf32>, vector<2x128xf32> -> vector<2x128xf32>
    %436 = arith.addf %433, %435 : vector<2x128xf32>
    %437 = vector.extract_strided_slice %436 {offsets = [0, 0], sizes = [2, 96], strides = [1, 1]} : vector<2x128xf32> to vector<2x96xf32>
    %438 = arith.negf %437 : vector<2x96xf32>
    %439 = math.exp %438 : vector<2x96xf32>
    %cst_263 = arith.constant 1.000000e+00 : f32
    %440 = vector.broadcast %cst_263 : f32 to vector<2x96xf32>
    %441 = arith.addf %440, %439 : vector<2x96xf32>
    %442 = arith.divf %440, %441 : vector<2x96xf32>
    %443 = vector.extract_strided_slice %442 {offsets = [0, 0], sizes = [2, 32], strides = [1, 1]} : vector<2x96xf32> to vector<2x32xf32>
    %444 = vector.extract_strided_slice %442 {offsets = [0, 32], sizes = [2, 32], strides = [1, 1]} : vector<2x96xf32> to vector<2x32xf32>
    %445 = vector.extract_strided_slice %442 {offsets = [0, 64], sizes = [2, 32], strides = [1, 1]} : vector<2x96xf32> to vector<2x32xf32>
    %446 = vector.extract_strided_slice %436 {offsets = [0, 96], sizes = [2, 32], strides = [1, 1]} : vector<2x128xf32> to vector<2x32xf32>
    %447 = math.tanh %446 : vector<2x32xf32>
    %c0_264 = arith.constant 0 : index
    %c0_265 = arith.constant 0 : index
    %448 = vector.load %arg13[%c0_264, %c0_265] : memref<2x32xf32, #tpu.memory_space<vmem>>, vector<2x32xf32>
    %449 = arith.mulf %444, %448 : vector<2x32xf32>
    %450 = arith.mulf %443, %447 : vector<2x32xf32>
    %451 = arith.addf %449, %450 : vector<2x32xf32>
    %452 = math.tanh %451 : vector<2x32xf32>
    %453 = arith.mulf %445, %452 : vector<2x32xf32>
    %c0_266 = arith.constant 0 : index
    %c0_267 = arith.constant 0 : index
    %454 = vector.load %arg12[%c0_266, %c0_267] : memref<2x32xf32, #tpu.memory_space<vmem>>, vector<2x32xf32>
    tpu.vector_store %arg12[%c0_266, %c0_267], %453 {strides = array<i32>} : memref<2x32xf32, #tpu.memory_space<vmem>>, vector<2x32xf32>,
    %c0_268 = arith.constant 0 : index
    %c0_269 = arith.constant 0 : index
    %455 = vector.load %arg13[%c0_268, %c0_269] : memref<2x32xf32, #tpu.memory_space<vmem>>, vector<2x32xf32>
    tpu.vector_store %arg13[%c0_268, %c0_269], %451 {strides = array<i32>} : memref<2x32xf32, #tpu.memory_space<vmem>>, vector<2x32xf32>,
    %456 = arith.index_cast %c1_i32_257 : i32 to index
    %c0_270 = arith.constant 0 : index
    %c0_271 = arith.constant 0 : index
    %457 = vector.load %arg11[%456, %c0_270, %c0_271] : memref<8x2x32xf32, #tpu.memory_space<vmem>>, vector<1x2x32xf32>
    %458 = vector.shape_cast %457 : vector<1x2x32xf32> to vector<2x32xf32>
    %459 = vector.shape_cast %453 : vector<2x32xf32> to vector<1x2x32xf32>
    tpu.vector_store %arg11[%456, %c0_270, %c0_271], %459 {strides = array<i32>} : memref<8x2x32xf32, #tpu.memory_space<vmem>>, vector<1x2x32xf32>,
    %c2_i32_272 = arith.constant 2 : i32
    %460 = arith.index_cast %c2_i32_272 : i32 to index
    %c0_273 = arith.constant 0 : index
    %c0_274 = arith.constant 0 : index
    %461 = vector.load %arg10[%460, %c0_273, %c0_274] : memref<8x2x128xf32, #tpu.memory_space<vmem>>, vector<1x2x128xf32>
    %462 = vector.shape_cast %461 : vector<1x2x128xf32> to vector<2x128xf32>
    %c0_275 = arith.constant 0 : index
    %c0_276 = arith.constant 0 : index
    %463 = vector.load %arg12[%c0_275, %c0_276] : memref<2x32xf32, #tpu.memory_space<vmem>>, vector<2x32xf32>
    %cst_277 = arith.constant dense<0.000000e+00> : vector<2x128xf32>
    %464 = tpu.matmul %463, %401, %cst_277 {dimension_numbers = #tpu.dot_dimension_numbers<[1], [0], [0], [1], [0, 0, 1, 1], [], []>} : vector<2x32xf32>, vector<32x128xf32>, vector<2x128xf32> -> vector<2x128xf32>
    %465 = arith.addf %462, %464 : vector<2x128xf32>
    %466 = vector.extract_strided_slice %465 {offsets = [0, 0], sizes = [2, 96], strides = [1, 1]} : vector<2x128xf32> to vector<2x96xf32>
    %467 = arith.negf %466 : vector<2x96xf32>
    %468 = math.exp %467 : vector<2x96xf32>
    %cst_278 = arith.constant 1.000000e+00 : f32
    %469 = vector.broadcast %cst_278 : f32 to vector<2x96xf32>
    %470 = arith.addf %469, %468 : vector<2x96xf32>
    %471 = arith.divf %469, %470 : vector<2x96xf32>
    %472 = vector.extract_strided_slice %471 {offsets = [0, 0], sizes = [2, 32], strides = [1, 1]} : vector<2x96xf32> to vector<2x32xf32>
    %473 = vector.extract_strided_slice %471 {offsets = [0, 32], sizes = [2, 32], strides = [1, 1]} : vector<2x96xf32> to vector<2x32xf32>
    %474 = vector.extract_strided_slice %471 {offsets = [0, 64], sizes = [2, 32], strides = [1, 1]} : vector<2x96xf32> to vector<2x32xf32>
    %475 = vector.extract_strided_slice %465 {offsets = [0, 96], sizes = [2, 32], strides = [1, 1]} : vector<2x128xf32> to vector<2x32xf32>
    %476 = math.tanh %475 : vector<2x32xf32>
    %c0_279 = arith.constant 0 : index
    %c0_280 = arith.constant 0 : index
    %477 = vector.load %arg13[%c0_279, %c0_280] : memref<2x32xf32, #tpu.memory_space<vmem>>, vector<2x32xf32>
    %478 = arith.mulf %473, %477 : vector<2x32xf32>
    %479 = arith.mulf %472, %476 : vector<2x32xf32>
    %480 = arith.addf %478, %479 : vector<2x32xf32>
    %481 = math.tanh %480 : vector<2x32xf32>
    %482 = arith.mulf %474, %481 : vector<2x32xf32>
    %c0_281 = arith.constant 0 : index
    %c0_282 = arith.constant 0 : index
    %483 = vector.load %arg12[%c0_281, %c0_282] : memref<2x32xf32, #tpu.memory_space<vmem>>, vector<2x32xf32>
    tpu.vector_store %arg12[%c0_281, %c0_282], %482 {strides = array<i32>} : memref<2x32xf32, #tpu.memory_space<vmem>>, vector<2x32xf32>,
    %c0_283 = arith.constant 0 : index
    %c0_284 = arith.constant 0 : index
    %484 = vector.load %arg13[%c0_283, %c0_284] : memref<2x32xf32, #tpu.memory_space<vmem>>, vector<2x32xf32>
    tpu.vector_store %arg13[%c0_283, %c0_284], %480 {strides = array<i32>} : memref<2x32xf32, #tpu.memory_space<vmem>>, vector<2x32xf32>,
    %485 = arith.index_cast %c2_i32_272 : i32 to index
    %c0_285 = arith.constant 0 : index
    %c0_286 = arith.constant 0 : index
    %486 = vector.load %arg11[%485, %c0_285, %c0_286] : memref<8x2x32xf32, #tpu.memory_space<vmem>>, vector<1x2x32xf32>
    %487 = vector.shape_cast %486 : vector<1x2x32xf32> to vector<2x32xf32>
    %488 = vector.shape_cast %482 : vector<2x32xf32> to vector<1x2x32xf32>
    tpu.vector_store %arg11[%485, %c0_285, %c0_286], %488 {strides = array<i32>} : memref<8x2x32xf32, #tpu.memory_space<vmem>>, vector<1x2x32xf32>,
    %c3_i32_287 = arith.constant 3 : i32
    %489 = arith.index_cast %c3_i32_287 : i32 to index
    %c0_288 = arith.constant 0 : index
    %c0_289 = arith.constant 0 : index
    %490 = vector.load %arg10[%489, %c0_288, %c0_289] : memref<8x2x128xf32, #tpu.memory_space<vmem>>, vector<1x2x128xf32>
    %491 = vector.shape_cast %490 : vector<1x2x128xf32> to vector<2x128xf32>
    %c0_290 = arith.constant 0 : index
    %c0_291 = arith.constant 0 : index
    %492 = vector.load %arg12[%c0_290, %c0_291] : memref<2x32xf32, #tpu.memory_space<vmem>>, vector<2x32xf32>
    %cst_292 = arith.constant dense<0.000000e+00> : vector<2x128xf32>
    %493 = tpu.matmul %492, %401, %cst_292 {dimension_numbers = #tpu.dot_dimension_numbers<[1], [0], [0], [1], [0, 0, 1, 1], [], []>} : vector<2x32xf32>, vector<32x128xf32>, vector<2x128xf32> -> vector<2x128xf32>
    %494 = arith.addf %491, %493 : vector<2x128xf32>
    %495 = vector.extract_strided_slice %494 {offsets = [0, 0], sizes = [2, 96], strides = [1, 1]} : vector<2x128xf32> to vector<2x96xf32>
    %496 = arith.negf %495 : vector<2x96xf32>
    %497 = math.exp %496 : vector<2x96xf32>
    %cst_293 = arith.constant 1.000000e+00 : f32
    %498 = vector.broadcast %cst_293 : f32 to vector<2x96xf32>
    %499 = arith.addf %498, %497 : vector<2x96xf32>
    %500 = arith.divf %498, %499 : vector<2x96xf32>
    %501 = vector.extract_strided_slice %500 {offsets = [0, 0], sizes = [2, 32], strides = [1, 1]} : vector<2x96xf32> to vector<2x32xf32>
    %502 = vector.extract_strided_slice %500 {offsets = [0, 32], sizes = [2, 32], strides = [1, 1]} : vector<2x96xf32> to vector<2x32xf32>
    %503 = vector.extract_strided_slice %500 {offsets = [0, 64], sizes = [2, 32], strides = [1, 1]} : vector<2x96xf32> to vector<2x32xf32>
    %504 = vector.extract_strided_slice %494 {offsets = [0, 96], sizes = [2, 32], strides = [1, 1]} : vector<2x128xf32> to vector<2x32xf32>
    %505 = math.tanh %504 : vector<2x32xf32>
    %c0_294 = arith.constant 0 : index
    %c0_295 = arith.constant 0 : index
    %506 = vector.load %arg13[%c0_294, %c0_295] : memref<2x32xf32, #tpu.memory_space<vmem>>, vector<2x32xf32>
    %507 = arith.mulf %502, %506 : vector<2x32xf32>
    %508 = arith.mulf %501, %505 : vector<2x32xf32>
    %509 = arith.addf %507, %508 : vector<2x32xf32>
    %510 = math.tanh %509 : vector<2x32xf32>
    %511 = arith.mulf %503, %510 : vector<2x32xf32>
    %c0_296 = arith.constant 0 : index
    %c0_297 = arith.constant 0 : index
    %512 = vector.load %arg12[%c0_296, %c0_297] : memref<2x32xf32, #tpu.memory_space<vmem>>, vector<2x32xf32>
    tpu.vector_store %arg12[%c0_296, %c0_297], %511 {strides = array<i32>} : memref<2x32xf32, #tpu.memory_space<vmem>>, vector<2x32xf32>,
    %c0_298 = arith.constant 0 : index
    %c0_299 = arith.constant 0 : index
    %513 = vector.load %arg13[%c0_298, %c0_299] : memref<2x32xf32, #tpu.memory_space<vmem>>, vector<2x32xf32>
    tpu.vector_store %arg13[%c0_298, %c0_299], %509 {strides = array<i32>} : memref<2x32xf32, #tpu.memory_space<vmem>>, vector<2x32xf32>,
    %514 = arith.index_cast %c3_i32_287 : i32 to index
    %c0_300 = arith.constant 0 : index
    %c0_301 = arith.constant 0 : index
    %515 = vector.load %arg11[%514, %c0_300, %c0_301] : memref<8x2x32xf32, #tpu.memory_space<vmem>>, vector<1x2x32xf32>
    %516 = vector.shape_cast %515 : vector<1x2x32xf32> to vector<2x32xf32>
    %517 = vector.shape_cast %511 : vector<2x32xf32> to vector<1x2x32xf32>
    tpu.vector_store %arg11[%514, %c0_300, %c0_301], %517 {strides = array<i32>} : memref<8x2x32xf32, #tpu.memory_space<vmem>>, vector<1x2x32xf32>,
    %c4_i32_302 = arith.constant 4 : i32
    %518 = arith.index_cast %c4_i32_302 : i32 to index
    %c0_303 = arith.constant 0 : index
    %c0_304 = arith.constant 0 : index
    %519 = vector.load %arg10[%518, %c0_303, %c0_304] : memref<8x2x128xf32, #tpu.memory_space<vmem>>, vector<1x2x128xf32>
    %520 = vector.shape_cast %519 : vector<1x2x128xf32> to vector<2x128xf32>
    %c0_305 = arith.constant 0 : index
    %c0_306 = arith.constant 0 : index
    %521 = vector.load %arg12[%c0_305, %c0_306] : memref<2x32xf32, #tpu.memory_space<vmem>>, vector<2x32xf32>
    %cst_307 = arith.constant dense<0.000000e+00> : vector<2x128xf32>
    %522 = tpu.matmul %521, %401, %cst_307 {dimension_numbers = #tpu.dot_dimension_numbers<[1], [0], [0], [1], [0, 0, 1, 1], [], []>} : vector<2x32xf32>, vector<32x128xf32>, vector<2x128xf32> -> vector<2x128xf32>
    %523 = arith.addf %520, %522 : vector<2x128xf32>
    %524 = vector.extract_strided_slice %523 {offsets = [0, 0], sizes = [2, 96], strides = [1, 1]} : vector<2x128xf32> to vector<2x96xf32>
    %525 = arith.negf %524 : vector<2x96xf32>
    %526 = math.exp %525 : vector<2x96xf32>
    %cst_308 = arith.constant 1.000000e+00 : f32
    %527 = vector.broadcast %cst_308 : f32 to vector<2x96xf32>
    %528 = arith.addf %527, %526 : vector<2x96xf32>
    %529 = arith.divf %527, %528 : vector<2x96xf32>
    %530 = vector.extract_strided_slice %529 {offsets = [0, 0], sizes = [2, 32], strides = [1, 1]} : vector<2x96xf32> to vector<2x32xf32>
    %531 = vector.extract_strided_slice %529 {offsets = [0, 32], sizes = [2, 32], strides = [1, 1]} : vector<2x96xf32> to vector<2x32xf32>
    %532 = vector.extract_strided_slice %529 {offsets = [0, 64], sizes = [2, 32], strides = [1, 1]} : vector<2x96xf32> to vector<2x32xf32>
    %533 = vector.extract_strided_slice %523 {offsets = [0, 96], sizes = [2, 32], strides = [1, 1]} : vector<2x128xf32> to vector<2x32xf32>
    %534 = math.tanh %533 : vector<2x32xf32>
    %c0_309 = arith.constant 0 : index
    %c0_310 = arith.constant 0 : index
    %535 = vector.load %arg13[%c0_309, %c0_310] : memref<2x32xf32, #tpu.memory_space<vmem>>, vector<2x32xf32>
    %536 = arith.mulf %531, %535 : vector<2x32xf32>
    %537 = arith.mulf %530, %534 : vector<2x32xf32>
    %538 = arith.addf %536, %537 : vector<2x32xf32>
    %539 = math.tanh %538 : vector<2x32xf32>
    %540 = arith.mulf %532, %539 : vector<2x32xf32>
    %c0_311 = arith.constant 0 : index
    %c0_312 = arith.constant 0 : index
    %541 = vector.load %arg12[%c0_311, %c0_312] : memref<2x32xf32, #tpu.memory_space<vmem>>, vector<2x32xf32>
    tpu.vector_store %arg12[%c0_311, %c0_312], %540 {strides = array<i32>} : memref<2x32xf32, #tpu.memory_space<vmem>>, vector<2x32xf32>,
    %c0_313 = arith.constant 0 : index
    %c0_314 = arith.constant 0 : index
    %542 = vector.load %arg13[%c0_313, %c0_314] : memref<2x32xf32, #tpu.memory_space<vmem>>, vector<2x32xf32>
    tpu.vector_store %arg13[%c0_313, %c0_314], %538 {strides = array<i32>} : memref<2x32xf32, #tpu.memory_space<vmem>>, vector<2x32xf32>,
    %543 = arith.index_cast %c4_i32_302 : i32 to index
    %c0_315 = arith.constant 0 : index
    %c0_316 = arith.constant 0 : index
    %544 = vector.load %arg11[%543, %c0_315, %c0_316] : memref<8x2x32xf32, #tpu.memory_space<vmem>>, vector<1x2x32xf32>
    %545 = vector.shape_cast %544 : vector<1x2x32xf32> to vector<2x32xf32>
    %546 = vector.shape_cast %540 : vector<2x32xf32> to vector<1x2x32xf32>
    tpu.vector_store %arg11[%543, %c0_315, %c0_316], %546 {strides = array<i32>} : memref<8x2x32xf32, #tpu.memory_space<vmem>>, vector<1x2x32xf32>,
    %c5_i32_317 = arith.constant 5 : i32
    %547 = arith.index_cast %c5_i32_317 : i32 to index
    %c0_318 = arith.constant 0 : index
    %c0_319 = arith.constant 0 : index
    %548 = vector.load %arg10[%547, %c0_318, %c0_319] : memref<8x2x128xf32, #tpu.memory_space<vmem>>, vector<1x2x128xf32>
    %549 = vector.shape_cast %548 : vector<1x2x128xf32> to vector<2x128xf32>
    %c0_320 = arith.constant 0 : index
    %c0_321 = arith.constant 0 : index
    %550 = vector.load %arg12[%c0_320, %c0_321] : memref<2x32xf32, #tpu.memory_space<vmem>>, vector<2x32xf32>
    %cst_322 = arith.constant dense<0.000000e+00> : vector<2x128xf32>
    %551 = tpu.matmul %550, %401, %cst_322 {dimension_numbers = #tpu.dot_dimension_numbers<[1], [0], [0], [1], [0, 0, 1, 1], [], []>} : vector<2x32xf32>, vector<32x128xf32>, vector<2x128xf32> -> vector<2x128xf32>
    %552 = arith.addf %549, %551 : vector<2x128xf32>
    %553 = vector.extract_strided_slice %552 {offsets = [0, 0], sizes = [2, 96], strides = [1, 1]} : vector<2x128xf32> to vector<2x96xf32>
    %554 = arith.negf %553 : vector<2x96xf32>
    %555 = math.exp %554 : vector<2x96xf32>
    %cst_323 = arith.constant 1.000000e+00 : f32
    %556 = vector.broadcast %cst_323 : f32 to vector<2x96xf32>
    %557 = arith.addf %556, %555 : vector<2x96xf32>
    %558 = arith.divf %556, %557 : vector<2x96xf32>
    %559 = vector.extract_strided_slice %558 {offsets = [0, 0], sizes = [2, 32], strides = [1, 1]} : vector<2x96xf32> to vector<2x32xf32>
    %560 = vector.extract_strided_slice %558 {offsets = [0, 32], sizes = [2, 32], strides = [1, 1]} : vector<2x96xf32> to vector<2x32xf32>
    %561 = vector.extract_strided_slice %558 {offsets = [0, 64], sizes = [2, 32], strides = [1, 1]} : vector<2x96xf32> to vector<2x32xf32>
    %562 = vector.extract_strided_slice %552 {offsets = [0, 96], sizes = [2, 32], strides = [1, 1]} : vector<2x128xf32> to vector<2x32xf32>
    %563 = math.tanh %562 : vector<2x32xf32>
    %c0_324 = arith.constant 0 : index
    %c0_325 = arith.constant 0 : index
    %564 = vector.load %arg13[%c0_324, %c0_325] : memref<2x32xf32, #tpu.memory_space<vmem>>, vector<2x32xf32>
    %565 = arith.mulf %560, %564 : vector<2x32xf32>
    %566 = arith.mulf %559, %563 : vector<2x32xf32>
    %567 = arith.addf %565, %566 : vector<2x32xf32>
    %568 = math.tanh %567 : vector<2x32xf32>
    %569 = arith.mulf %561, %568 : vector<2x32xf32>
    %c0_326 = arith.constant 0 : index
    %c0_327 = arith.constant 0 : index
    %570 = vector.load %arg12[%c0_326, %c0_327] : memref<2x32xf32, #tpu.memory_space<vmem>>, vector<2x32xf32>
    tpu.vector_store %arg12[%c0_326, %c0_327], %569 {strides = array<i32>} : memref<2x32xf32, #tpu.memory_space<vmem>>, vector<2x32xf32>,
    %c0_328 = arith.constant 0 : index
    %c0_329 = arith.constant 0 : index
    %571 = vector.load %arg13[%c0_328, %c0_329] : memref<2x32xf32, #tpu.memory_space<vmem>>, vector<2x32xf32>
    tpu.vector_store %arg13[%c0_328, %c0_329], %567 {strides = array<i32>} : memref<2x32xf32, #tpu.memory_space<vmem>>, vector<2x32xf32>,
    %572 = arith.index_cast %c5_i32_317 : i32 to index
    %c0_330 = arith.constant 0 : index
    %c0_331 = arith.constant 0 : index
    %573 = vector.load %arg11[%572, %c0_330, %c0_331] : memref<8x2x32xf32, #tpu.memory_space<vmem>>, vector<1x2x32xf32>
    %574 = vector.shape_cast %573 : vector<1x2x32xf32> to vector<2x32xf32>
    %575 = vector.shape_cast %569 : vector<2x32xf32> to vector<1x2x32xf32>
    tpu.vector_store %arg11[%572, %c0_330, %c0_331], %575 {strides = array<i32>} : memref<8x2x32xf32, #tpu.memory_space<vmem>>, vector<1x2x32xf32>,
    %c6_i32_332 = arith.constant 6 : i32
    %576 = arith.index_cast %c6_i32_332 : i32 to index
    %c0_333 = arith.constant 0 : index
    %c0_334 = arith.constant 0 : index
    %577 = vector.load %arg10[%576, %c0_333, %c0_334] : memref<8x2x128xf32, #tpu.memory_space<vmem>>, vector<1x2x128xf32>
    %578 = vector.shape_cast %577 : vector<1x2x128xf32> to vector<2x128xf32>
    %c0_335 = arith.constant 0 : index
    %c0_336 = arith.constant 0 : index
    %579 = vector.load %arg12[%c0_335, %c0_336] : memref<2x32xf32, #tpu.memory_space<vmem>>, vector<2x32xf32>
    %cst_337 = arith.constant dense<0.000000e+00> : vector<2x128xf32>
    %580 = tpu.matmul %579, %401, %cst_337 {dimension_numbers = #tpu.dot_dimension_numbers<[1], [0], [0], [1], [0, 0, 1, 1], [], []>} : vector<2x32xf32>, vector<32x128xf32>, vector<2x128xf32> -> vector<2x128xf32>
    %581 = arith.addf %578, %580 : vector<2x128xf32>
    %582 = vector.extract_strided_slice %581 {offsets = [0, 0], sizes = [2, 96], strides = [1, 1]} : vector<2x128xf32> to vector<2x96xf32>
    %583 = arith.negf %582 : vector<2x96xf32>
    %584 = math.exp %583 : vector<2x96xf32>
    %cst_338 = arith.constant 1.000000e+00 : f32
    %585 = vector.broadcast %cst_338 : f32 to vector<2x96xf32>
    %586 = arith.addf %585, %584 : vector<2x96xf32>
    %587 = arith.divf %585, %586 : vector<2x96xf32>
    %588 = vector.extract_strided_slice %587 {offsets = [0, 0], sizes = [2, 32], strides = [1, 1]} : vector<2x96xf32> to vector<2x32xf32>
    %589 = vector.extract_strided_slice %587 {offsets = [0, 32], sizes = [2, 32], strides = [1, 1]} : vector<2x96xf32> to vector<2x32xf32>
    %590 = vector.extract_strided_slice %587 {offsets = [0, 64], sizes = [2, 32], strides = [1, 1]} : vector<2x96xf32> to vector<2x32xf32>
    %591 = vector.extract_strided_slice %581 {offsets = [0, 96], sizes = [2, 32], strides = [1, 1]} : vector<2x128xf32> to vector<2x32xf32>
    %592 = math.tanh %591 : vector<2x32xf32>
    %c0_339 = arith.constant 0 : index
    %c0_340 = arith.constant 0 : index
    %593 = vector.load %arg13[%c0_339, %c0_340] : memref<2x32xf32, #tpu.memory_space<vmem>>, vector<2x32xf32>
    %594 = arith.mulf %589, %593 : vector<2x32xf32>
    %595 = arith.mulf %588, %592 : vector<2x32xf32>
    %596 = arith.addf %594, %595 : vector<2x32xf32>
    %597 = math.tanh %596 : vector<2x32xf32>
    %598 = arith.mulf %590, %597 : vector<2x32xf32>
    %c0_341 = arith.constant 0 : index
    %c0_342 = arith.constant 0 : index
    %599 = vector.load %arg12[%c0_341, %c0_342] : memref<2x32xf32, #tpu.memory_space<vmem>>, vector<2x32xf32>
    tpu.vector_store %arg12[%c0_341, %c0_342], %598 {strides = array<i32>} : memref<2x32xf32, #tpu.memory_space<vmem>>, vector<2x32xf32>,
    %c0_343 = arith.constant 0 : index
    %c0_344 = arith.constant 0 : index
    %600 = vector.load %arg13[%c0_343, %c0_344] : memref<2x32xf32, #tpu.memory_space<vmem>>, vector<2x32xf32>
    tpu.vector_store %arg13[%c0_343, %c0_344], %596 {strides = array<i32>} : memref<2x32xf32, #tpu.memory_space<vmem>>, vector<2x32xf32>,
    %601 = arith.index_cast %c6_i32_332 : i32 to index
    %c0_345 = arith.constant 0 : index
    %c0_346 = arith.constant 0 : index
    %602 = vector.load %arg11[%601, %c0_345, %c0_346] : memref<8x2x32xf32, #tpu.memory_space<vmem>>, vector<1x2x32xf32>
    %603 = vector.shape_cast %602 : vector<1x2x32xf32> to vector<2x32xf32>
    %604 = vector.shape_cast %598 : vector<2x32xf32> to vector<1x2x32xf32>
    tpu.vector_store %arg11[%601, %c0_345, %c0_346], %604 {strides = array<i32>} : memref<8x2x32xf32, #tpu.memory_space<vmem>>, vector<1x2x32xf32>,
    %c7_i32_347 = arith.constant 7 : i32
    %605 = arith.index_cast %c7_i32_347 : i32 to index
    %c0_348 = arith.constant 0 : index
    %c0_349 = arith.constant 0 : index
    %606 = vector.load %arg10[%605, %c0_348, %c0_349] : memref<8x2x128xf32, #tpu.memory_space<vmem>>, vector<1x2x128xf32>
    %607 = vector.shape_cast %606 : vector<1x2x128xf32> to vector<2x128xf32>
    %c0_350 = arith.constant 0 : index
    %c0_351 = arith.constant 0 : index
    %608 = vector.load %arg12[%c0_350, %c0_351] : memref<2x32xf32, #tpu.memory_space<vmem>>, vector<2x32xf32>
    %cst_352 = arith.constant dense<0.000000e+00> : vector<2x128xf32>
    %609 = tpu.matmul %608, %401, %cst_352 {dimension_numbers = #tpu.dot_dimension_numbers<[1], [0], [0], [1], [0, 0, 1, 1], [], []>} : vector<2x32xf32>, vector<32x128xf32>, vector<2x128xf32> -> vector<2x128xf32>
    %610 = arith.addf %607, %609 : vector<2x128xf32>
    %611 = vector.extract_strided_slice %610 {offsets = [0, 0], sizes = [2, 96], strides = [1, 1]} : vector<2x128xf32> to vector<2x96xf32>
    %612 = arith.negf %611 : vector<2x96xf32>
    %613 = math.exp %612 : vector<2x96xf32>
    %cst_353 = arith.constant 1.000000e+00 : f32
    %614 = vector.broadcast %cst_353 : f32 to vector<2x96xf32>
    %615 = arith.addf %614, %613 : vector<2x96xf32>
    %616 = arith.divf %614, %615 : vector<2x96xf32>
    %617 = vector.extract_strided_slice %616 {offsets = [0, 0], sizes = [2, 32], strides = [1, 1]} : vector<2x96xf32> to vector<2x32xf32>
    %618 = vector.extract_strided_slice %616 {offsets = [0, 32], sizes = [2, 32], strides = [1, 1]} : vector<2x96xf32> to vector<2x32xf32>
    %619 = vector.extract_strided_slice %616 {offsets = [0, 64], sizes = [2, 32], strides = [1, 1]} : vector<2x96xf32> to vector<2x32xf32>
    %620 = vector.extract_strided_slice %610 {offsets = [0, 96], sizes = [2, 32], strides = [1, 1]} : vector<2x128xf32> to vector<2x32xf32>
    %621 = math.tanh %620 : vector<2x32xf32>
    %c0_354 = arith.constant 0 : index
    %c0_355 = arith.constant 0 : index
    %622 = vector.load %arg13[%c0_354, %c0_355] : memref<2x32xf32, #tpu.memory_space<vmem>>, vector<2x32xf32>
    %623 = arith.mulf %618, %622 : vector<2x32xf32>
    %624 = arith.mulf %617, %621 : vector<2x32xf32>
    %625 = arith.addf %623, %624 : vector<2x32xf32>
    %626 = math.tanh %625 : vector<2x32xf32>
    %627 = arith.mulf %619, %626 : vector<2x32xf32>
    %c0_356 = arith.constant 0 : index
    %c0_357 = arith.constant 0 : index
    %628 = vector.load %arg12[%c0_356, %c0_357] : memref<2x32xf32, #tpu.memory_space<vmem>>, vector<2x32xf32>
    tpu.vector_store %arg12[%c0_356, %c0_357], %627 {strides = array<i32>} : memref<2x32xf32, #tpu.memory_space<vmem>>, vector<2x32xf32>,
    %c0_358 = arith.constant 0 : index
    %c0_359 = arith.constant 0 : index
    %629 = vector.load %arg13[%c0_358, %c0_359] : memref<2x32xf32, #tpu.memory_space<vmem>>, vector<2x32xf32>
    tpu.vector_store %arg13[%c0_358, %c0_359], %625 {strides = array<i32>} : memref<2x32xf32, #tpu.memory_space<vmem>>, vector<2x32xf32>,
    %630 = arith.index_cast %c7_i32_347 : i32 to index
    %c0_360 = arith.constant 0 : index
    %c0_361 = arith.constant 0 : index
    %631 = vector.load %arg11[%630, %c0_360, %c0_361] : memref<8x2x32xf32, #tpu.memory_space<vmem>>, vector<1x2x32xf32>
    %632 = vector.shape_cast %631 : vector<1x2x32xf32> to vector<2x32xf32>
    %633 = vector.shape_cast %627 : vector<2x32xf32> to vector<1x2x32xf32>
    tpu.vector_store %arg11[%630, %c0_360, %c0_361], %633 {strides = array<i32>} : memref<8x2x32xf32, #tpu.memory_space<vmem>>, vector<1x2x32xf32>,
    %c8_i32_362 = arith.constant 8 : i32
    %c0_363 = arith.constant 0 : index
    %c0_364 = arith.constant 0 : index
    %634 = vector.load %arg12[%c0_363, %c0_364] : memref<2x32xf32, #tpu.memory_space<vmem>>, vector<2x32xf32>
    %c1 = arith.constant 1 : index
    %c0_365 = arith.constant 0 : index
    %c0_366 = arith.constant 0 : index
    %635 = vector.load %arg8[%c1, %c0_365, %c0_366] : memref<2x2x32xf32, #tpu.memory_space<vmem>>, vector<1x2x32xf32>
    %636 = vector.shape_cast %635 : vector<1x2x32xf32> to vector<2x32xf32>
    %637 = vector.shape_cast %634 : vector<2x32xf32> to vector<1x2x32xf32>
    tpu.vector_store %arg8[%c1, %c0_365, %c0_366], %637 {strides = array<i32>} : memref<2x2x32xf32, #tpu.memory_space<vmem>>, vector<1x2x32xf32>,
    %c0_367 = arith.constant 0 : index
    %c0_368 = arith.constant 0 : index
    %638 = vector.load %arg13[%c0_367, %c0_368] : memref<2x32xf32, #tpu.memory_space<vmem>>, vector<2x32xf32>
    %c1_369 = arith.constant 1 : index
    %c0_370 = arith.constant 0 : index
    %c0_371 = arith.constant 0 : index
    %639 = vector.load %arg9[%c1_369, %c0_370, %c0_371] : memref<2x2x32xf32, #tpu.memory_space<vmem>>, vector<1x2x32xf32>
    %640 = vector.shape_cast %639 : vector<1x2x32xf32> to vector<2x32xf32>
    %641 = vector.shape_cast %638 : vector<2x32xf32> to vector<1x2x32xf32>
    tpu.vector_store %arg9[%c1_369, %c0_370, %c0_371], %641 {strides = array<i32>} : memref<2x2x32xf32, #tpu.memory_space<vmem>>, vector<1x2x32xf32>,
    return
  }
  func.func @transform_0(%arg0: i32) -> (i32, i32, i32) {
    %c0_i32 = arith.constant 0 : i32
    %c0_i32_0 = arith.constant 0 : i32
    %c0_i32_1 = arith.constant 0 : i32
    %c0_i32_2 = arith.constant 0 : i32
    return %c0_i32, %c0_i32_0, %c0_i32_1 : i32, i32, i32
  }
  func.func @transform_1(%arg0: i32) -> (i32, i32) {
    %c0_i32 = arith.constant 0 : i32
    %c0_i32_0 = arith.constant 0 : i32
    %c0_i32_1 = arith.constant 0 : i32
    return %c0_i32, %c0_i32_0 : i32, i32
  }
  func.func @transform_2(%arg0: i32) -> (i32, i32) {
    %c0_i32 = arith.constant 0 : i32
    %c0_i32_0 = arith.constant 0 : i32
    %c0_i32_1 = arith.constant 0 : i32
    return %c0_i32, %c0_i32_0 : i32, i32
  }
  func.func @transform_3(%arg0: i32) -> (i32, i32) {
    %c0_i32 = arith.constant 0 : i32
    %c0_i32_0 = arith.constant 0 : i32
    %c0_i32_1 = arith.constant 0 : i32
    return %c0_i32, %c0_i32_0 : i32, i32
  }
  func.func @transform_4(%arg0: i32) -> (i32, i32) {
    %c0_i32 = arith.constant 0 : i32
    %c0_i32_0 = arith.constant 0 : i32
    %c0_i32_1 = arith.constant 0 : i32
    return %c0_i32, %c0_i32_0 : i32, i32
  }
  func.func @transform_5(%arg0: i32) -> (i32, i32) {
    %c0_i32 = arith.constant 0 : i32
    %c0_i32_0 = arith.constant 0 : i32
    %c0_i32_1 = arith.constant 0 : i32
    return %c0_i32, %c0_i32_0 : i32, i32
  }
  func.func @transform_6(%arg0: i32) -> (i32, i32) {
    %c0_i32 = arith.constant 0 : i32
    %c0_i32_0 = arith.constant 0 : i32
    %c0_i32_1 = arith.constant 0 : i32
    return %c0_i32, %c0_i32_0 : i32, i32
  }
  func.func @transform_7(%arg0: i32) -> (i32, i32, i32) {
    %c0_i32 = arith.constant 0 : i32
    %c0_i32_0 = arith.constant 0 : i32
    %c0_i32_1 = arith.constant 0 : i32
    %c0_i32_2 = arith.constant 0 : i32
    return %c0_i32, %c0_i32_0, %c0_i32_1 : i32, i32, i32
  }
  func.func @transform_8(%arg0: i32) -> (i32, i32, i32) {
    %c0_i32 = arith.constant 0 : i32
    %c0_i32_0 = arith.constant 0 : i32
    %c0_i32_1 = arith.constant 0 : i32
    %c0_i32_2 = arith.constant 0 : i32
    return %c0_i32, %c0_i32_0, %c0_i32_1 : i32, i32, i32
  }
}

</mosaic_0001>

<bundles_post_ra>
// kernel: lstm_encoder_forward.1
= control target key start
LH: loop header
LB: loop body
LE: loop exit
PB: predicated region body
PF: predicated region fallthrough
CT: control target
= control target key end

     0   :  { %14 = vsyncpa [#allocation7], 0  ;;  %v4131_v3 = vmov 0.0|0.0   ;;  %vm4132_vm0 = vmmov 0   ;;  %v4133_v6 = vmov 0.0   ;;  %vm656_vm1 = vcmask 254976   ;;  %s4707_s0 = inlined_call_operand.vmem [shape: f32[8,2,32], index: 0, kind: input, shape index: {}]   ;;  %s4708_s1 = inlined_call_operand.vmem [shape: f32[32,128], index: 1, kind: input, shape index: {}]   ;;  %s4709_s2 = inlined_call_operand.vmem [shape: f32[32,128], index: 2, kind: input, shape index: {}]   ;;  %s4710_s3 = inlined_call_operand.vmem [shape: f32[1,128], index: 3, kind: input, shape index: {}]   ;;  %s4711_s4 = inlined_call_operand.vmem [shape: f32[32,128], index: 4, kind: input, shape index: {}]   ;;  %s4712_s5 = inlined_call_operand.vmem [shape: f32[32,128], index: 5, kind: input, shape index: {}]   ;;  %s4713_s6 = inlined_call_operand.vmem [shape: f32[1,128], index: 6, kind: input, shape index: {}]   ;;  %s4714_s7 = inlined_call_operand.hbm [shape: f32[2,2,32], index: 7, kind: output, shape index: {0}]   ;;  %s4715_s8 = inlined_call_operand.hbm [shape: f32[2,2,32], index: 8, kind: output, shape index: {1}]  }
   0x1   :  { %v30_v0 = vld [vmem:[%s4708_s1] sm:$0xff]  ;;  %v31_v1 = vld [vmem:[%s4708_s1 + $0x8] sm:$0xff]  ;;  %v32_v2 = vld [vmem:[%s4708_s1 + $0x10] sm:$0xff]  ;;  %3754 = vmatprep.subr.bf16.mxu0 %v4131_v3  ;;  %3410 = vmatprep.mubr.msk.f32.mxu0 %vm4132_vm0, %v4133_v6  ;;  %657 = vst.msk [vmem:[#allocation4] sm:$0x3] %vm656_vm1, %v4133_v6 }
   0x2   :  { %v4195_v4 = vpack.c.bf16 %v31_v1, %v30_v0  ;;  %v33_v5 = vld [vmem:[%s4708_s1 + $0x18] sm:$0xff]  ;;  %3760 = vmatprep.subr.bf16.mxu1 %v4131_v3  ;;  %3421 = vmatprep.mubr.msk.f32.mxu1 %vm4132_vm0, %v4133_v6  ;;  %658 = vst.msk [vmem:[#allocation5] sm:$0x3] %vm656_vm1, %v4133_v6 }
   0x3   :  { %v4206_v7 = vpack.c.bf16 %v33_v5, %v32_v2 }
   0x4   :  { %3756 = vmatpush3.bf16.msra.mxu0 %v4195_v4  ;;  %3762 = vmatpush3.bf16.msra.mxu1 %v4195_v4 }
   0x5   :  { %3757 = vmatprep.subr.bf16.mxu0 %v4131_v3  ;;  %3763 = vmatprep.subr.bf16.mxu1 %v4131_v3 }
   0x6   :  { %15 = vsyncpa [#allocation9], 0  ;;  %v41_v8 = vld [vmem:[%s4707_s0] sm:$0x3]  ;;  %vm42_vm2 = vcmask 261120   ;;  %v660_v12 = vld [vmem:[%s4709_s2 + $0x8] sm:$0xff] }
   0x7   :  { %v3189_v9 = vld [vmem:[%s4707_s0 + $0x4] sm:$0x3]  ;;  %v3193_v10 = vld [vmem:[%s4707_s0 + $0x8] sm:$0x3]  ;;  %v3197_v13 = vld [vmem:[%s4707_s0 + $0xc] sm:$0x3] }
   0x8   :  { %3759 = vmatpush3.bf16.msra.mxu0 %v4206_v7  ;;  %3765 = vmatpush3.bf16.msra.mxu1 %v4206_v7  ;;  %v659_v11 = vld [vmem:[%s4709_s2] sm:$0xff]  ;;  %v661_v15 = vld [vmem:[%s4709_s2 + $0x10] sm:$0xff]  ;;  %v662_v16 = vld [vmem:[%s4709_s2 + $0x18] sm:$0xff]  ;;  %s4135_s9 = smov 96   ;;  %s4136_s15 = smov 64  }
   0x9   :  { %3766 = vmatprep.subr.bf16.mxu0 %v4131_v3  ;;  %3772 = vmatprep.subr.bf16.mxu1 %v4131_v3  ;;  %v4257_v14 = vpack.c.bf16 %v660_v12, %v659_v11  ;;  %v4268_v17 = vpack.c.bf16 %v662_v16, %v661_v15  ;;  %v664_v18 = vld [vmem:[#allocation4] sm:$0x3]  ;;  %v746_v37 = vld [vmem:[#allocation5] sm:$0x3]  ;;  %v3191_v50 = vld [vmem:[%s4707_s0 + $0x6] sm:$0x3] }
   0xa   :  { %v4285_v19 = vld [vmem:[%s4710_s3] ss:$0 sm:$0xff]  ;;  %s4134_s3 = smov 32   ;;  %v3187_v49 = vld [vmem:[%s4707_s0 + $0x2] sm:$0x3] }
   0xb   :  { %3411 = vmatmul.mubr.msk.f32.vlgmr.msra.gmra.mrb[0].mxu0 %vm42_vm2, %v41_v8  ;;  %3422 = vmatmul.mubr.msk.f32.vlgmr.msra.gmra.mrb[0].mxu1 %vm42_vm2, %v3187_v49  ;;  %v3195_v51 = vld [vmem:[%s4707_s0 + $0xa] sm:$0x3]  ;;  %v3199_v52 = vld [vmem:[%s4707_s0 + $0xe] sm:$0x3] }
   0xc   :  { %3768 = vmatpush3.bf16.msra.mxu0 %v4195_v4  ;;  %3432 = vmatprep.mubr.msk.f32.mxu0 %vm4132_vm0, %v4133_v6 }
   0xd   :  { %3769 = vmatprep.subr.bf16.mxu0 %v4131_v3  ;;  %3774 = vmatpush3.bf16.msra.mxu1 %v4195_v4 }
   0xe   :  { %3443 = vmatprep.mubr.msk.f32.mxu1 %vm4132_vm0, %v4133_v6  ;;  %3775 = vmatprep.subr.bf16.mxu1 %v4131_v3 }
  0x10   :  { %3771 = vmatpush3.bf16.msra.mxu0 %v4206_v7 }
  0x11   :  { %3778 = vmatprep.subr.bf16.mxu0 %v4131_v3  ;;  %3777 = vmatpush3.bf16.msra.mxu1 %v4206_v7 }
  0x12   :  { %3784 = vmatprep.subr.bf16.mxu1 %v4131_v3 }
  0x13   :  { %3433 = vmatmul.mubr.msk.f32.vlgmr.msra.gmra.mrb[2].mxu0 %vm42_vm2, %v3189_v9 }
  0x14   :  { %3780 = vmatpush3.bf16.msra.mxu0 %v4195_v4  ;;  %3454 = vmatprep.mubr.msk.f32.mxu0 %vm4132_vm0, %v4133_v6 }
  0x15   :  { %3781 = vmatprep.subr.bf16.mxu0 %v4131_v3  ;;  %3444 = vmatmul.mubr.msk.f32.vlgmr.msra.gmra.mrb[2].mxu1 %vm42_vm2, %v3191_v50 }
  0x16   :  { %3786 = vmatpush3.bf16.msra.mxu1 %v4195_v4  ;;  %3465 = vmatprep.mubr.msk.f32.mxu1 %vm4132_vm0, %v4133_v6 }
  0x17   :  { %3787 = vmatprep.subr.bf16.mxu1 %v4131_v3 }
  0x18   :  { %3783 = vmatpush3.bf16.msra.mxu0 %v4206_v7 }
  0x19   :  { %3790 = vmatprep.subr.bf16.mxu0 %v4131_v3 }
  0x1a   :  { %3789 = vmatpush3.bf16.msra.mxu1 %v4206_v7 }
  0x1b   :  { %3455 = vmatmul.mubr.msk.f32.vlgmr.msra.gmra.mrb[4].mxu0 %vm42_vm2, %v3193_v10  ;;  %3796 = vmatprep.subr.bf16.mxu1 %v4131_v3 }
  0x1c   :  { %3792 = vmatpush3.bf16.msra.mxu0 %v4195_v4  ;;  %3476 = vmatprep.mubr.msk.f32.mxu0 %vm4132_vm0, %v4133_v6 }
  0x1d   :  { %3793 = vmatprep.subr.bf16.mxu0 %v4131_v3  ;;  %3466 = vmatmul.mubr.msk.f32.vlgmr.msra.gmra.mrb[4].mxu1 %vm42_vm2, %v3195_v51 }
  0x1e   :  { %3798 = vmatpush3.bf16.msra.mxu1 %v4195_v4  ;;  %3487 = vmatprep.mubr.msk.f32.mxu1 %vm4132_vm0, %v4133_v6 }
  0x1f   :  { %3799 = vmatprep.subr.bf16.mxu1 %v4131_v3 }
  0x20   :  { %3795 = vmatpush3.bf16.msra.mxu0 %v4206_v7 }
  0x21   :  { %3802 = vmatprep.subr.bf16.mxu0 %v4131_v3 }
  0x22   :  { %3801 = vmatpush3.bf16.msra.mxu1 %v4206_v7 }
  0x23   :  { %3477 = vmatmul.mubr.msk.f32.vlgmr.msra.gmra.mrb[6].mxu0 %vm42_vm2, %v3197_v13  ;;  %3808 = vmatprep.subr.bf16.mxu1 %v4131_v3 }
  0x24   :  { %3804 = vmatpush3.bf16.msra.mxu0 %v4257_v14  ;;  %3498 = vmatprep.mubr.msk.f32.mxu0 %vm4132_vm0, %v4133_v6 }
  0x25   :  { %3805 = vmatprep.subr.bf16.mxu0 %v4131_v3  ;;  %3488 = vmatmul.mubr.msk.f32.vlgmr.msra.gmra.mrb[6].mxu1 %vm42_vm2, %v3199_v52 }
  0x26   :  { %3810 = vmatpush3.bf16.msra.mxu1 %v4257_v14  ;;  %3509 = vmatprep.mubr.msk.f32.mxu1 %vm4132_vm0, %v4133_v6 }
  0x27   :  { %3811 = vmatprep.subr.bf16.mxu1 %v4131_v3 }
  0x28   :  { %3807 = vmatpush3.bf16.msra.mxu0 %v4268_v17 }
  0x29   :  { %3814 = vmatprep.subr.bf16.mxu0 %v4131_v3 }
  0x2a   :  { %3813 = vmatpush3.bf16.msra.mxu1 %v4268_v17 }
  0x2b   :  { %3499 = vmatmul.mubr.msk.f32.vlgmr.msra.gmra.mrb[8].mxu0 %vm42_vm2, %v664_v18  ;;  %3820 = vmatprep.subr.bf16.mxu1 %v4131_v3 }
  0x2c   :  { %3816 = vmatpush3.bf16.msra.mxu0 %v4257_v14  ;;  %3520 = vmatprep.mubr.msk.f32.mxu0 %vm4132_vm0, %v4133_v6 }
  0x2d   :  { %3817 = vmatprep.subr.bf16.mxu0 %v4131_v3 }
  0x30   :  { %3819 = vmatpush3.bf16.msra.mxu0 %v4268_v17 }
  0x31   :  { %3826 = vmatprep.subr.bf16.mxu0 %v4131_v3 }
  0xde   :  { %v112_v20 = vpop.f32.mrb[0].mxu0  ;;  %v188_v57 = vpop.f32.mrb[0].mxu1 }
  0xdf   :  { %v113_v21 = vadd.f32 %v4285_v19, %v112_v20  ;;  %v3412_v22 = vpop.f32.mrb[1].mxu0  ;;  %v189_v58 = vadd.f32 %v4285_v19, %v188_v57  ;;  %v3423_v59 = vpop.f32.mrb[1].mxu1 }
  0xe1   :  { %116 = vst [vmem:[#allocation2] sm:$0x3] %v113_v21  ;;  %193 = vst [vmem:[#allocation2 + $0x2] sm:$0x3] %v189_v58 }
  0xe6   :  { %v265_v23 = vpop.f32.mrb[2].mxu0 }
  0xe7   :  { %v266_v24 = vadd.f32 %v4285_v19, %v265_v23  ;;  %v3434_v25 = vpop.f32.mrb[3].mxu0 }
  0xe8   :  { %v663_v32 = vld [vmem:[#allocation2] sm:$0x3]  ;;  %v342_v60 = vpop.f32.mrb[2].mxu1  ;;  %v779_v9 = vld [vmem:[#allocation2 + $0x2] sm:$0x3] }
  0xe9   :  { %270 = vst [vmem:[#allocation2 + $0x4] sm:$0x3] %v266_v24  ;;  %v343_v61 = vadd.f32 %v4285_v19, %v342_v60  ;;  %v3445_v62 = vpop.f32.mrb[3].mxu1 }
  0xeb   :  { %347 = vst [vmem:[#allocation2 + $0x6] sm:$0x3] %v343_v61 }
  0xee   :  { %v419_v26 = vpop.f32.mrb[4].mxu0 }
  0xef   :  { %v420_v27 = vadd.f32 %v4285_v19, %v419_v26  ;;  %v3456_v28 = vpop.f32.mrb[5].mxu0 }
  0xf0   :  { %v496_v63 = vpop.f32.mrb[4].mxu1 }
  0xf1   :  { %424 = vst [vmem:[#allocation2 + $0x8] sm:$0x3] %v420_v27  ;;  %v497_v0 = vadd.f32 %v4285_v19, %v496_v63  ;;  %v3467_v1 = vpop.f32.mrb[5].mxu1 }
  0xf3   :  { %501 = vst [vmem:[#allocation2 + $0xa] sm:$0x3] %v497_v0 }
  0xf6   :  { %v573_v29 = vpop.f32.mrb[6].mxu0 }
  0xf7   :  { %v574_v30 = vadd.f32 %v4285_v19, %v573_v29  ;;  %v3478_v31 = vpop.f32.mrb[7].mxu0 }
  0xf8   :  { %v650_v5 = vpop.f32.mrb[6].mxu1 }
  0xf9   :  { %578 = vst [vmem:[#allocation2 + $0xc] sm:$0x3] %v574_v30  ;;  %v651_v7 = vadd.f32 %v4285_v19, %v650_v5  ;;  %v3489_v8 = vpop.f32.mrb[7].mxu1 }
  0xfb   :  { %655 = vst [vmem:[#allocation2 + $0xe] sm:$0x3] %v651_v7 }
  0xfe   :  { %v734_v33 = vpop.f32.mrb[8].mxu0 }
  0xff   :  { %v738_v34 = vadd.f32 %v734_v33, %v663_v32  ;;  %v3500_v35 = vpop.f32.mrb[9].mxu0  ;;  %v896_v33 = vld [vmem:[#allocation2 + $0x4] sm:$0x3] }
 0x101   :  { %3955 = vtanh.f32 %v738_v34  ;;  %v3202_v38 = vmul.f32 -1.442695, %v738_v34 }
 0x103   :  { %3957 = vpow2.f32 %v3202_v38 }
 0x10b   :  { %v3956_v36 = vpop.eup %3955 }
 0x10c   :  { %753 = vrot.lane.b32.xlu0 %v3956_v36, %s4134_s3 }
 0x10d   :  { %v3958_v39 = vpop.eup %3957 }
 0x10e   :  { %v742_v40 = vadd.f32 1.0, %v3958_v39 }
 0x110   :  { %748 = vrot.lane.b32.xlu0 %v746_v37, %s4134_s3  ;;  %3959 = vrcp.f32 %v742_v40 }
 0x11a   :  { %v3960_v41 = vpop.eup %3959 }
 0x17e   :  { %v754_v42 = vpop.permute.xlu0 %753 }
 0x17f   :  { %v756_v43 = vmul.f32 %v3960_v41, %v754_v42 }
 0x181   :  { %758 = vrot.lane.b32.xlu1 %v756_v43, %s4134_s3 }
 0x182   :  { %v749_v44 = vpop.permute.xlu0 %748 }
 0x183   :  { %v751_v45 = vmul.f32 %v3960_v41, %v749_v44 }
 0x1f3   :  { %v759_v46 = vpop.permute.xlu1 %758 }
 0x1f4   :  { %v761_v47 = vadd.f32 %v759_v46, %v751_v45 }
 0x1f6   :  { %3961 = vtanh.f32 %v761_v47 }
 0x200   :  { %v3962_v48 = vpop.eup %3961 }
 0x201   :  { %764 = vrot.lane.b32.xlu1 %v3962_v48, %s4134_s3 }
 0x205   :  { %774 = vrot.lane.b32.xlu1 %v761_v47, %s4135_s9 }
 0x273   :  { %v765_v53 = vpop.permute.xlu1 %764 }
 0x274   :  { %v767_v54 = vmul.f32 %v3960_v41, %v765_v53 }
 0x276   :  { %769 = vrot.lane.b32.xlu0 %v767_v54, %s4136_s15 }
 0x277   :  { %v775_v55 = vpop.permute.xlu1 %774 }
 0x278   :  { %777 = vst.msk [vmem:[#allocation5] sm:$0x3] %vm656_vm1, %v775_v55  ;;  %v1013_v55 = vld [vmem:[#allocation2 + $0x6] sm:$0x3] }
 0x27f   :  { %v862_v56 = vld [vmem:[#allocation5] sm:$0x3] }
 0x280   :  { %864 = vrot.lane.b32.xlu1 %v862_v56, %s4134_s3 }
 0x2e8   :  { %v770_v2 = vpop.permute.xlu0 %769 }
 0x2e9   :  { %772 = vst.msk [vmem:[#allocation4] sm:$0x3] %vm656_vm1, %v770_v2  ;;  %778 = vst.msk [vmem:[#allocation3] sm:$0x3] %vm656_vm1, %v770_v2 }
 0x2f0   :  { %v780_v4 = vld [vmem:[#allocation4] sm:$0x3] }
 0x2f1   :  { %3510 = vmatmul.mubr.msk.f32.vlgmr.msra.gmra.mrb[8].mxu1 %vm42_vm2, %v780_v4 }
 0x2f2   :  { %3822 = vmatpush3.bf16.msra.mxu1 %v4257_v14  ;;  %3531 = vmatprep.mubr.msk.f32.mxu1 %vm4132_vm0, %v4133_v6  ;;  %v865_v19 = vpop.permute.xlu1 %864 }
 0x2f3   :  { %3823 = vmatprep.subr.bf16.mxu1 %v4131_v3 }
 0x2f6   :  { %3825 = vmatpush3.bf16.msra.mxu1 %v4268_v17 }
 0x2f7   :  { %3832 = vmatprep.subr.bf16.mxu1 %v4131_v3 }
 0x3c4   :  { %v850_v10 = vpop.f32.mrb[8].mxu1 }
 0x3c5   :  { %v854_v11 = vadd.f32 %v850_v10, %v779_v9  ;;  %v3511_v12 = vpop.f32.mrb[9].mxu1 }
 0x3c7   :  { %3963 = vtanh.f32 %v854_v11  ;;  %v3204_v15 = vmul.f32 -1.442695, %v854_v11 }
 0x3c9   :  { %3965 = vpow2.f32 %v3204_v15 }
 0x3d1   :  { %v3964_v13 = vpop.eup %3963 }
 0x3d2   :  { %869 = vrot.lane.b32.xlu0 %v3964_v13, %s4134_s3 }
 0x3d3   :  { %v3966_v16 = vpop.eup %3965 }
 0x3d4   :  { %v858_v18 = vadd.f32 1.0, %v3966_v16  ;;  %v1130_v16 = vld [vmem:[#allocation2 + $0x8] sm:$0x3] }
 0x3d6   :  { %3967 = vrcp.f32 %v858_v18 }
 0x3e0   :  { %v3968_v20 = vpop.eup %3967 }
 0x3e1   :  { %v867_v23 = vmul.f32 %v3968_v20, %v865_v19 }
 0x444   :  { %v870_v21 = vpop.permute.xlu0 %869 }
 0x445   :  { %v872_v22 = vmul.f32 %v3968_v20, %v870_v21 }
 0x447   :  { %874 = vrot.lane.b32.xlu0 %v872_v22, %s4134_s3 }
 0x4b9   :  { %v875_v24 = vpop.permute.xlu0 %874 }
 0x4ba   :  { %v877_v25 = vadd.f32 %v875_v24, %v867_v23 }
 0x4bc   :  { %3969 = vtanh.f32 %v877_v25 }
 0x4c6   :  { %v3970_v26 = vpop.eup %3969 }
 0x4c7   :  { %880 = vrot.lane.b32.xlu1 %v3970_v26, %s4134_s3 }
 0x4cb   :  { %890 = vrot.lane.b32.xlu1 %v877_v25, %s4135_s9 }
 0x539   :  { %v881_v27 = vpop.permute.xlu1 %880 }
 0x53a   :  { %v883_v28 = vmul.f32 %v3968_v20, %v881_v27 }
 0x53c   :  { %885 = vrot.lane.b32.xlu0 %v883_v28, %s4136_s15 }
 0x53d   :  { %v891_v29 = vpop.permute.xlu1 %890 }
 0x53e   :  { %893 = vst.msk [vmem:[#allocation5] sm:$0x3] %vm656_vm1, %v891_v29 }
 0x545   :  { %v979_v30 = vld [vmem:[#allocation5] sm:$0x3] }
 0x546   :  { %981 = vrot.lane.b32.xlu1 %v979_v30, %s4134_s3 }
 0x5ae   :  { %v886_v31 = vpop.permute.xlu0 %885 }
 0x5af   :  { %888 = vst.msk [vmem:[#allocation4] sm:$0x3] %vm656_vm1, %v886_v31  ;;  %895 = vst.msk [vmem:[#allocation3 + $0x2] sm:$0x3] %vm656_vm1, %v886_v31 }
 0x5b6   :  { %v897_v32 = vld [vmem:[#allocation4] sm:$0x3] }
 0x5b7   :  { %3521 = vmatmul.mubr.msk.f32.vlgmr.msra.gmra.mrb[10].mxu0 %vm42_vm2, %v897_v32 }
 0x5b8   :  { %3828 = vmatpush3.bf16.msra.mxu0 %v4257_v14  ;;  %3542 = vmatprep.mubr.msk.f32.mxu0 %vm4132_vm0, %v4133_v6  ;;  %v982_v44 = vpop.permute.xlu1 %981 }
 0x5b9   :  { %3829 = vmatprep.subr.bf16.mxu0 %v4131_v3 }
 0x5bc   :  { %3831 = vmatpush3.bf16.msra.mxu0 %v4268_v17 }
 0x5bd   :  { %3838 = vmatprep.subr.bf16.mxu0 %v4131_v3 }
 0x68a   :  { %v967_v34 = vpop.f32.mrb[10].mxu0 }
 0x68b   :  { %v971_v35 = vadd.f32 %v967_v34, %v896_v33  ;;  %v3522_v36 = vpop.f32.mrb[11].mxu0 }
 0x68d   :  { %3971 = vtanh.f32 %v971_v35  ;;  %v3206_v38 = vmul.f32 -1.442695, %v971_v35 }
 0x68f   :  { %3973 = vpow2.f32 %v3206_v38 }
 0x697   :  { %v3972_v37 = vpop.eup %3971 }
 0x698   :  { %986 = vrot.lane.b32.xlu0 %v3972_v37, %s4134_s3 }
 0x699   :  { %v3974_v39 = vpop.eup %3973 }
 0x69a   :  { %v975_v40 = vadd.f32 1.0, %v3974_v39  ;;  %v1247_v39 = vld [vmem:[#allocation2 + $0xa] sm:$0x3] }
 0x69c   :  { %3975 = vrcp.f32 %v975_v40 }
 0x6a6   :  { %v3976_v41 = vpop.eup %3975 }
 0x6a7   :  { %v984_v45 = vmul.f32 %v3976_v41, %v982_v44 }
 0x70a   :  { %v987_v42 = vpop.permute.xlu0 %986 }
 0x70b   :  { %v989_v43 = vmul.f32 %v3976_v41, %v987_v42 }
 0x70d   :  { %991 = vrot.lane.b32.xlu0 %v989_v43, %s4134_s3 }
 0x77f   :  { %v992_v46 = vpop.permute.xlu0 %991 }
 0x780   :  { %v994_v47 = vadd.f32 %v992_v46, %v984_v45 }
 0x782   :  { %3977 = vtanh.f32 %v994_v47 }
 0x78c   :  { %v3978_v48 = vpop.eup %3977 }
 0x78d   :  { %997 = vrot.lane.b32.xlu1 %v3978_v48, %s4134_s3 }
 0x791   :  { %1007 = vrot.lane.b32.xlu1 %v994_v47, %s4135_s9 }
 0x7ff   :  { %v998_v49 = vpop.permute.xlu1 %997 }
 0x800   :  { %v1000_v50 = vmul.f32 %v3976_v41, %v998_v49 }
 0x802   :  { %1002 = vrot.lane.b32.xlu0 %v1000_v50, %s4136_s15 }
 0x803   :  { %v1008_v51 = vpop.permute.xlu1 %1007 }
 0x804   :  { %1010 = vst.msk [vmem:[#allocation5] sm:$0x3] %vm656_vm1, %v1008_v51 }
 0x80b   :  { %v1096_v52 = vld [vmem:[#allocation5] sm:$0x3] }
 0x80c   :  { %1098 = vrot.lane.b32.xlu1 %v1096_v52, %s4134_s3 }
 0x874   :  { %v1003_v53 = vpop.permute.xlu0 %1002 }
 0x875   :  { %1005 = vst.msk [vmem:[#allocation4] sm:$0x3] %vm656_vm1, %v1003_v53  ;;  %1012 = vst.msk [vmem:[#allocation3 + $0x4] sm:$0x3] %vm656_vm1, %v1003_v53 }
 0x87c   :  { %v1014_v54 = vld [vmem:[#allocation4] sm:$0x3] }
 0x87d   :  { %3532 = vmatmul.mubr.msk.f32.vlgmr.msra.gmra.mrb[10].mxu1 %vm42_vm2, %v1014_v54 }
 0x87e   :  { %3834 = vmatpush3.bf16.msra.mxu1 %v4257_v14  ;;  %3553 = vmatprep.mubr.msk.f32.mxu1 %vm4132_vm0, %v4133_v6  ;;  %v1099_v2 = vpop.permute.xlu1 %1098 }
 0x87f   :  { %3835 = vmatprep.subr.bf16.mxu1 %v4131_v3 }
 0x882   :  { %3837 = vmatpush3.bf16.msra.mxu1 %v4268_v17 }
 0x883   :  { %3844 = vmatprep.subr.bf16.mxu1 %v4131_v3 }
 0x950   :  { %v1084_v56 = vpop.f32.mrb[10].mxu1 }
 0x951   :  { %v1088_v57 = vadd.f32 %v1084_v56, %v1013_v55  ;;  %v3533_v58 = vpop.f32.mrb[11].mxu1 }
 0x952   :  { %v1602_v58 = vld [vmem:[%s4711_s4] sm:$0xff] }
 0x953   :  { %3979 = vtanh.f32 %v1088_v57  ;;  %v3208_v60 = vmul.f32 -1.442695, %v1088_v57 }
 0x955   :  { %3981 = vpow2.f32 %v3208_v60 }
 0x95d   :  { %v3980_v59 = vpop.eup %3979 }
 0x95e   :  { %1103 = vrot.lane.b32.xlu0 %v3980_v59, %s4134_s3  ;;  %v1603_v59 = vld [vmem:[%s4711_s4 + $0x8] sm:$0xff] }
 0x95f   :  { %v3982_v61 = vpop.eup %3981  ;;  %v4431_v60 = vpack.c.bf16 %v1603_v59, %v1602_v58 }
 0x960   :  { %v1092_v62 = vadd.f32 1.0, %v3982_v61  ;;  %v1604_v61 = vld [vmem:[%s4711_s4 + $0x10] sm:$0xff] }
 0x962   :  { %3983 = vrcp.f32 %v1092_v62  ;;  %v1605_v62 = vld [vmem:[%s4711_s4 + $0x18] sm:$0xff] }
 0x96c   :  { %v3984_v63 = vpop.eup %3983 }
 0x96d   :  { %v1101_v4 = vmul.f32 %v3984_v63, %v1099_v2  ;;  %v1763_v2 = vld [vmem:[#allocation3 + $0x4] sm:$0x3] }
 0x9d0   :  { %v1104_v0 = vpop.permute.xlu0 %1103 }
 0x9d1   :  { %v1106_v1 = vmul.f32 %v3984_v63, %v1104_v0  ;;  %v4441_v0 = vpack.c.bf16 %v1605_v62, %v1604_v61 }
 0x9d3   :  { %1108 = vrot.lane.b32.xlu0 %v1106_v1, %s4134_s3  ;;  %v1613_v1 = vld [vmem:[#allocation3] sm:$0x3] }
 0xa45   :  { %v1109_v5 = vpop.permute.xlu0 %1108 }
 0xa46   :  { %v1111_v7 = vadd.f32 %v1109_v5, %v1101_v4  ;;  %v1364_v5 = vld [vmem:[#allocation2 + $0xc] sm:$0x3] }
 0xa48   :  { %3985 = vtanh.f32 %v1111_v7 }
 0xa52   :  { %v3986_v8 = vpop.eup %3985 }
 0xa53   :  { %1114 = vrot.lane.b32.xlu1 %v3986_v8, %s4134_s3 }
 0xa57   :  { %1124 = vrot.lane.b32.xlu1 %v1111_v7, %s4135_s9 }
 0xac5   :  { %v1115_v9 = vpop.permute.xlu1 %1114 }
 0xac6   :  { %v1117_v10 = vmul.f32 %v3984_v63, %v1115_v9 }
 0xac8   :  { %1119 = vrot.lane.b32.xlu0 %v1117_v10, %s4136_s15  ;;  %v4472_v10 = vld [vmem:[%s4713_s6] ss:$0 sm:$0xff] }
 0xac9   :  { %v1125_v11 = vpop.permute.xlu1 %1124 }
 0xaca   :  { %1127 = vst.msk [vmem:[#allocation5] sm:$0x3] %vm656_vm1, %v1125_v11 }
 0xad1   :  { %v1213_v12 = vld [vmem:[#allocation5] sm:$0x3] }
 0xad2   :  { %1215 = vrot.lane.b32.xlu1 %v1213_v12, %s4134_s3 }
 0xb3a   :  { %v1120_v13 = vpop.permute.xlu0 %1119 }
 0xb3b   :  { %1122 = vst.msk [vmem:[#allocation4] sm:$0x3] %vm656_vm1, %v1120_v13  ;;  %1129 = vst.msk [vmem:[#allocation3 + $0x6] sm:$0x3] %vm656_vm1, %v1120_v13 }
 0xb42   :  { %v1131_v15 = vld [vmem:[#allocation4] sm:$0x3] }
 0xb43   :  { %3543 = vmatmul.mubr.msk.f32.vlgmr.msra.gmra.mrb[12].mxu0 %vm42_vm2, %v1131_v15 }
 0xb44   :  { %3840 = vmatpush3.bf16.msra.mxu0 %v4257_v14  ;;  %3564 = vmatprep.mubr.msk.f32.mxu0 %vm4132_vm0, %v4133_v6  ;;  %v1216_v28 = vpop.permute.xlu1 %1215 }
 0xb45   :  { %3841 = vmatprep.subr.bf16.mxu0 %v4131_v3 }
 0xb48   :  { %3843 = vmatpush3.bf16.msra.mxu0 %v4268_v17 }
 0xb49   :  { %3850 = vmatprep.subr.bf16.mxu0 %v4131_v3 }
 0xc16   :  { %v1201_v18 = vpop.f32.mrb[12].mxu0 }
 0xc17   :  { %v1205_v20 = vadd.f32 %v1201_v18, %v1130_v16  ;;  %v3544_v21 = vpop.f32.mrb[13].mxu0 }
 0xc19   :  { %3987 = vtanh.f32 %v1205_v20  ;;  %v3210_v19 = vmul.f32 -1.442695, %v1205_v20 }
 0xc1b   :  { %3989 = vpow2.f32 %v3210_v19 }
 0xc23   :  { %v3988_v22 = vpop.eup %3987 }
 0xc24   :  { %1220 = vrot.lane.b32.xlu0 %v3988_v22, %s4134_s3 }
 0xc25   :  { %v3990_v23 = vpop.eup %3989 }
 0xc26   :  { %v1209_v24 = vadd.f32 1.0, %v3990_v23 }
 0xc28   :  { %3991 = vrcp.f32 %v1209_v24 }
 0xc32   :  { %v3992_v25 = vpop.eup %3991 }
 0xc33   :  { %v1218_v29 = vmul.f32 %v3992_v25, %v1216_v28 }
 0xc96   :  { %v1221_v26 = vpop.permute.xlu0 %1220 }
 0xc97   :  { %v1223_v27 = vmul.f32 %v3992_v25, %v1221_v26 }
 0xc99   :  { %1225 = vrot.lane.b32.xlu0 %v1223_v27, %s4134_s3 }
 0xd0b   :  { %v1226_v30 = vpop.permute.xlu0 %1225 }
 0xd0c   :  { %v1228_v31 = vadd.f32 %v1226_v30, %v1218_v29 }
 0xd0e   :  { %3993 = vtanh.f32 %v1228_v31 }
 0xd18   :  { %v3994_v32 = vpop.eup %3993 }
 0xd19   :  { %1231 = vrot.lane.b32.xlu1 %v3994_v32, %s4134_s3 }
 0xd1d   :  { %1241 = vrot.lane.b32.xlu1 %v1228_v31, %s4135_s9 }
 0xd8b   :  { %v1232_v33 = vpop.permute.xlu1 %1231 }
 0xd8c   :  { %v1234_v34 = vmul.f32 %v3992_v25, %v1232_v33 }
 0xd8e   :  { %1236 = vrot.lane.b32.xlu0 %v1234_v34, %s4136_s15 }
 0xd8f   :  { %v1242_v35 = vpop.permute.xlu1 %1241 }
 0xd90   :  { %1244 = vst.msk [vmem:[#allocation5] sm:$0x3] %vm656_vm1, %v1242_v35 }
 0xd97   :  { %v1330_v36 = vld [vmem:[#allocation5] sm:$0x3] }
 0xd98   :  { %1332 = vrot.lane.b32.xlu1 %v1330_v36, %s4134_s3 }
 0xe00   :  { %v1237_v37 = vpop.permute.xlu0 %1236 }
 0xe01   :  { %1239 = vst.msk [vmem:[#allocation4] sm:$0x3] %vm656_vm1, %v1237_v37  ;;  %1246 = vst.msk [vmem:[#allocation3 + $0x8] sm:$0x3] %vm656_vm1, %v1237_v37 }
 0xe08   :  { %v1248_v38 = vld [vmem:[#allocation4] sm:$0x3]  ;;  %v1913_v4 = vld [vmem:[#allocation3 + $0x8] sm:$0x3] }
 0xe09   :  { %3554 = vmatmul.mubr.msk.f32.vlgmr.msra.gmra.mrb[12].mxu1 %vm42_vm2, %v1248_v38 }
 0xe0a   :  { %3846 = vmatpush3.bf16.msra.mxu1 %v4257_v14  ;;  %3575 = vmatprep.mubr.msk.f32.mxu1 %vm4132_vm0, %v4133_v6 }
 0xe0b   :  { %3847 = vmatprep.subr.bf16.mxu1 %v4131_v3 }
 0xe0e   :  { %3849 = vmatpush3.bf16.msra.mxu1 %v4268_v17  ;;  %v1333_v17 = vpop.permute.xlu1 %1332 }
 0xe0f   :  { %3856 = vmatprep.subr.bf16.mxu1 %v4131_v3 }
 0xedc   :  { %v1318_v40 = vpop.f32.mrb[12].mxu1 }
 0xedd   :  { %v1322_v41 = vadd.f32 %v1318_v40, %v1247_v39  ;;  %v3555_v42 = vpop.f32.mrb[13].mxu1 }
 0xede   :  { %v1838_v42 = vld [vmem:[#allocation3 + $0x6] sm:$0x3] }
 0xedf   :  { %3995 = vtanh.f32 %v1322_v41  ;;  %v3212_v44 = vmul.f32 -1.442695, %v1322_v41  ;;  %v1688_v41 = vld [vmem:[#allocation3 + $0x2] sm:$0x3] }
 0xee1   :  { %3997 = vpow2.f32 %v3212_v44  ;;  %v1481_v44 = vld [vmem:[#allocation2 + $0xe] sm:$0x3] }
 0xee9   :  { %v3996_v43 = vpop.eup %3995 }
 0xeea   :  { %1337 = vrot.lane.b32.xlu0 %v3996_v43, %s4134_s3 }
 0xeeb   :  { %v3998_v14 = vpop.eup %3997 }
 0xeec   :  { %v1326_v45 = vadd.f32 1.0, %v3998_v14 }
 0xeee   :  { %3999 = vrcp.f32 %v1326_v45 }
 0xef8   :  { %v4000_v46 = vpop.eup %3999 }
 0xef9   :  { %v1335_v49 = vmul.f32 %v4000_v46, %v1333_v17 }
 0xf5c   :  { %v1338_v47 = vpop.permute.xlu0 %1337 }
 0xf5d   :  { %v1340_v48 = vmul.f32 %v4000_v46, %v1338_v47 }
 0xf5f   :  { %1342 = vrot.lane.b32.xlu0 %v1340_v48, %s4134_s3 }
 0xfd1   :  { %v1343_v50 = vpop.permute.xlu0 %1342 }
 0xfd2   :  { %v1345_v51 = vadd.f32 %v1343_v50, %v1335_v49 }
 0xfd4   :  { %4001 = vtanh.f32 %v1345_v51 }
 0xfde   :  { %v4002_v52 = vpop.eup %4001 }
 0xfdf   :  { %1348 = vrot.lane.b32.xlu1 %v4002_v52, %s4134_s3 }
 0xfe3   :  { %1358 = vrot.lane.b32.xlu1 %v1345_v51, %s4135_s9 }
0x1051   :  { %v1349_v53 = vpop.permute.xlu1 %1348 }
0x1052   :  { %v1351_v54 = vmul.f32 %v4000_v46, %v1349_v53 }
0x1054   :  { %1353 = vrot.lane.b32.xlu0 %v1351_v54, %s4136_s15 }
0x1055   :  { %v1359_v55 = vpop.permute.xlu1 %1358 }
0x1056   :  { %1361 = vst.msk [vmem:[#allocation5] sm:$0x3] %vm656_vm1, %v1359_v55 }
0x105d   :  { %v1447_v56 = vld [vmem:[#allocation5] sm:$0x3] }
0x105e   :  { %1449 = vrot.lane.b32.xlu1 %v1447_v56, %s4134_s3 }
0x10c6   :  { %v1354_v57 = vpop.permute.xlu0 %1353 }
0x10c7   :  { %1356 = vst.msk [vmem:[#allocation4] sm:$0x3] %vm656_vm1, %v1354_v57  ;;  %1363 = vst.msk [vmem:[#allocation3 + $0xa] sm:$0x3] %vm656_vm1, %v1354_v57 }
0x10ce   :  { %v1365_v63 = vld [vmem:[#allocation4] sm:$0x3]  ;;  %v1988_v43 = vld [vmem:[#allocation3 + $0xa] sm:$0x3] }
0x10cf   :  { %3565 = vmatmul.mubr.msk.f32.vlgmr.msra.gmra.mrb[14].mxu0 %vm42_vm2, %v1365_v63 }
0x10d0   :  { %3852 = vmatpush3.bf16.msra.mxu0 %v4431_v60  ;;  %3586 = vmatprep.mubr.msk.f32.mxu0 %vm4132_vm0, %v4133_v6  ;;  %v1450_v29 = vpop.permute.xlu1 %1449 }
0x10d1   :  { %3853 = vmatprep.subr.bf16.mxu0 %v4131_v3 }
0x10d4   :  { %3855 = vmatpush3.bf16.msra.mxu0 %v4441_v0 }
0x10d5   :  { %3862 = vmatprep.subr.bf16.mxu0 %v4131_v3 }
0x10d7   :  { %3587 = vmatmul.mubr.msk.f32.vlgmr.msra.gmra.mrb[16].mxu0 %vm42_vm2, %v1613_v1 }
0x10d8   :  { %3864 = vmatpush3.bf16.msra.mxu0 %v4431_v60  ;;  %3608 = vmatprep.mubr.msk.f32.mxu0 %vm4132_vm0, %v4133_v6 }
0x10d9   :  { %3865 = vmatprep.subr.bf16.mxu0 %v4131_v3 }
0x10dc   :  { %3867 = vmatpush3.bf16.msra.mxu0 %v4441_v0 }
0x10dd   :  { %3874 = vmatprep.subr.bf16.mxu0 %v4131_v3 }
0x10df   :  { %3609 = vmatmul.mubr.msk.f32.vlgmr.msra.gmra.mrb[18].mxu0 %vm42_vm2, %v1763_v2 }
0x10e0   :  { %3876 = vmatpush3.bf16.msra.mxu0 %v4431_v60  ;;  %3630 = vmatprep.mubr.msk.f32.mxu0 %vm4132_vm0, %v4133_v6 }
0x10e1   :  { %3877 = vmatprep.subr.bf16.mxu0 %v4131_v3 }
0x10e4   :  { %3879 = vmatpush3.bf16.msra.mxu0 %v4441_v0 }
0x10e5   :  { %3886 = vmatprep.subr.bf16.mxu0 %v4131_v3 }
0x10e7   :  { %3631 = vmatmul.mubr.msk.f32.vlgmr.msra.gmra.mrb[20].mxu0 %vm42_vm2, %v1913_v4 }
0x10e8   :  { %3888 = vmatpush3.bf16.msra.mxu0 %v4431_v60  ;;  %3652 = vmatprep.mubr.msk.f32.mxu0 %vm4132_vm0, %v4133_v6 }
0x10e9   :  { %3889 = vmatprep.subr.bf16.mxu0 %v4131_v3 }
0x10ec   :  { %3891 = vmatpush3.bf16.msra.mxu0 %v4441_v0 }
0x10ed   :  { %3898 = vmatprep.subr.bf16.mxu0 %v4131_v3 }
0x11a2   :  { %v1435_v7 = vpop.f32.mrb[14].mxu0 }
0x11a3   :  { %v1439_v8 = vadd.f32 %v1435_v7, %v1364_v5  ;;  %v3566_v9 = vpop.f32.mrb[15].mxu0 }
0x11a4   :  { %v2216_v9 = vld [vmem:[%s4712_s5 + $0x8] sm:$0xff] }
0x11a5   :  { %4003 = vtanh.f32 %v1439_v8  ;;  %v3214_v23 = vmul.f32 -1.442695, %v1439_v8  ;;  %v2215_v8 = vld [vmem:[%s4712_s5] sm:$0xff] }
0x11a7   :  { %4005 = vpow2.f32 %v3214_v23 }
0x11aa   :  { %v1683_v11 = vpop.f32.mrb[16].mxu0 }
0x11ab   :  { %v1684_v12 = vadd.f32 %v4472_v10, %v1683_v11  ;;  %v3588_v13 = vpop.f32.mrb[17].mxu0  ;;  %v4531_v11 = vpack.c.bf16 %v2216_v9, %v2215_v8 }
0x11ac   :  { %v2218_v13 = vld [vmem:[%s4712_s5 + $0x18] sm:$0xff] }
0x11ad   :  { %1687 = vst [vmem:[#allocation2] sm:$0x3] %v1684_v12  ;;  %v2217_v12 = vld [vmem:[%s4712_s5 + $0x10] sm:$0xff]  ;;  %s4137_s5 = smov [#allocation8]  }
0x11ae   :  { %s3170_s30 = sshll.u32 %s4137_s5, 4  ;;  %s3171_s30 = int_to_ptr.vmem [resolvable:$true] %s3170_s30 }
0x11af   :  { %v4004_v15 = vpop.eup %4003  ;;  %s4083_s10 = scalar_lea.vmem %s3171_s30, 64  ;;  %p4088_p1 = scmp.lt.s32.totalorder %s3171_s30, %s3171_s30 }
0x11b0   :  { %1454 = vrot.lane.b32.xlu0 %v4004_v15, %s4134_s3  ;;  %p4084_p0 = scmp.ne.s32.totalorder %s3171_s30, %s4083_s10  ;;  %p4089_p2 = scmp.lt.s32.totalorder %s4083_s10, %s4083_s10 }
0x11b1   :  { %v4006_v24 = vpop.eup %4005 }
0x11b2   :  { %v1833_v16 = vpop.f32.mrb[18].mxu0  ;;  %v1443_v25 = vadd.f32 1.0, %v4006_v24  ;;  %p4090_p3 = por %p4089_p2, %p4088_p1 }
0x11b3   :  { %v1834_v18 = vadd.f32 %v4472_v10, %v1833_v16  ;;  %v3610_v20 = vpop.f32.mrb[19].mxu0  ;;  %v4540_v16 = vpack.c.bf16 %v2218_v13, %v2217_v12 }
0x11b4   :  { %4007 = vrcp.f32 %v1443_v25  ;;  %p4091_p4 = pnand %p4090_p3, %p4084_p0 }
0x11b5   :  { %1837 = vst [vmem:[#allocation2 + $0x4] sm:$0x3] %v1834_v18 }
0x11ba   :  { %v1983_v21 = vpop.f32.mrb[20].mxu0 }
0x11bb   :  { %v1984_v22 = vadd.f32 %v4472_v10, %v1983_v21  ;;  %v3632_v19 = vpop.f32.mrb[21].mxu0 }
0x11bc   :  { %v2451_v8 = vld [vmem:[#allocation2 + $0x4] sm:$0x3] }
0x11bd   :  { %1987 = vst [vmem:[#allocation2 + $0x8] sm:$0x3] %v1984_v22 }
0x11be   :  { %v4008_v26 = vpop.eup %4007 }
0x11bf   :  { %v1452_v30 = vmul.f32 %v4008_v26, %v1450_v29  ;;  %v2219_v29 = vld [vmem:[#allocation2] sm:$0x3] }
0x1222   :  { %v1455_v27 = vpop.permute.xlu0 %1454 }
0x1223   :  { %v1457_v28 = vmul.f32 %v4008_v26, %v1455_v27 }
0x1225   :  { %1459 = vrot.lane.b32.xlu0 %v1457_v28, %s4134_s3 }
0x1297   :  { %v1460_v31 = vpop.permute.xlu0 %1459 }
0x1298   :  { %v1462_v32 = vadd.f32 %v1460_v31, %v1452_v30 }
0x129a   :  { %4009 = vtanh.f32 %v1462_v32 }
0x12a4   :  { %v4010_v33 = vpop.eup %4009 }
0x12a5   :  { %1465 = vrot.lane.b32.xlu1 %v4010_v33, %s4134_s3 }
0x12a9   :  { %1475 = vrot.lane.b32.xlu1 %v1462_v32, %s4135_s9 }
0x1317   :  { %v1466_v34 = vpop.permute.xlu1 %1465 }
0x1318   :  { %v1468_v35 = vmul.f32 %v4008_v26, %v1466_v34 }
0x131a   :  { %1470 = vrot.lane.b32.xlu0 %v1468_v35, %s4136_s15 }
0x131b   :  { %v1476_v36 = vpop.permute.xlu1 %1475 }
0x131c   :  { %1478 = vst.msk [vmem:[#allocation5] sm:$0x3] %vm656_vm1, %v1476_v36 }
0x1323   :  { %v1564_v37 = vld [vmem:[#allocation5] sm:$0x3] }
0x1324   :  { %1566 = vrot.lane.b32.xlu1 %v1564_v37, %s4134_s3 }
0x138c   :  { %v1471_v38 = vpop.permute.xlu0 %1470 }
0x138d   :  { %1473 = vst.msk [vmem:[#allocation4] sm:$0x3] %vm656_vm1, %v1471_v38  ;;  %1480 = vst.msk [vmem:[#allocation3 + $0xc] sm:$0x3] %vm656_vm1, %v1471_v38 }
0x1394   :  { %v1482_v39 = vld [vmem:[#allocation4] sm:$0x3]  ;;  %v2063_v40 = vld [vmem:[#allocation3 + $0xc] sm:$0x3] }
0x1395   :  { %3576 = vmatmul.mubr.msk.f32.vlgmr.msra.gmra.mrb[14].mxu1 %vm42_vm2, %v1482_v39  ;;  %3653 = vmatmul.mubr.msk.f32.vlgmr.msra.gmra.mrb[22].mxu0 %vm42_vm2, %v2063_v40 }
0x1396   :  { %3858 = vmatpush3.bf16.msra.mxu1 %v4431_v60  ;;  %3597 = vmatprep.mubr.msk.f32.mxu1 %vm4132_vm0, %v4133_v6  ;;  %v1567_v1 = vpop.permute.xlu1 %1566 }
0x1397   :  { %3859 = vmatprep.subr.bf16.mxu1 %v4131_v3  ;;  %3674 = vmatprep.mubr.msk.f32.mxu0 %vm4132_vm0, %v4133_v6 }
0x1398   :  { %3900 = vmatpush3.bf16.msra.mxu0 %v4531_v11 }
0x1399   :  { %3901 = vmatprep.subr.bf16.mxu0 %v4131_v3 }
0x139a   :  { %3861 = vmatpush3.bf16.msra.mxu1 %v4441_v0 }
0x139b   :  { %3868 = vmatprep.subr.bf16.mxu1 %v4131_v3 }
0x139c   :  { %3903 = vmatpush3.bf16.msra.mxu0 %v4540_v16 }
0x139d   :  { %3598 = vmatmul.mubr.msk.f32.vlgmr.msra.gmra.mrb[16].mxu1 %vm42_vm2, %v1688_v41  ;;  %3910 = vmatprep.subr.bf16.mxu0 %v4131_v3 }
0x139e   :  { %3870 = vmatpush3.bf16.msra.mxu1 %v4431_v60  ;;  %3619 = vmatprep.mubr.msk.f32.mxu1 %vm4132_vm0, %v4133_v6 }
0x139f   :  { %3871 = vmatprep.subr.bf16.mxu1 %v4131_v3 }
0x13a2   :  { %3873 = vmatpush3.bf16.msra.mxu1 %v4441_v0 }
0x13a3   :  { %3880 = vmatprep.subr.bf16.mxu1 %v4131_v3 }
0x13a5   :  { %3620 = vmatmul.mubr.msk.f32.vlgmr.msra.gmra.mrb[18].mxu1 %vm42_vm2, %v1838_v42 }
0x13a6   :  { %3882 = vmatpush3.bf16.msra.mxu1 %v4431_v60  ;;  %3641 = vmatprep.mubr.msk.f32.mxu1 %vm4132_vm0, %v4133_v6 }
0x13a7   :  { %3883 = vmatprep.subr.bf16.mxu1 %v4131_v3 }
0x13aa   :  { %3885 = vmatpush3.bf16.msra.mxu1 %v4441_v0 }
0x13ab   :  { %3892 = vmatprep.subr.bf16.mxu1 %v4131_v3 }
0x13ad   :  { %3642 = vmatmul.mubr.msk.f32.vlgmr.msra.gmra.mrb[20].mxu1 %vm42_vm2, %v1988_v43 }
0x13ae   :  { %3894 = vmatpush3.bf16.msra.mxu1 %v4431_v60  ;;  %3663 = vmatprep.mubr.msk.f32.mxu1 %vm4132_vm0, %v4133_v6 }
0x13af   :  { %3895 = vmatprep.subr.bf16.mxu1 %v4131_v3 }
0x13b2   :  { %3897 = vmatpush3.bf16.msra.mxu1 %v4441_v0 }
0x13b3   :  { %3904 = vmatprep.subr.bf16.mxu1 %v4131_v3 }
0x1468   :  { %v1552_v14 = vpop.f32.mrb[14].mxu1  ;;  %v2133_v45 = vpop.f32.mrb[22].mxu0 }
0x1469   :  { %v1556_v46 = vadd.f32 %v1552_v14, %v1481_v44  ;;  %v2134_v47 = vadd.f32 %v4472_v10, %v2133_v45  ;;  %v3577_v48 = vpop.f32.mrb[15].mxu1  ;;  %v3654_v17 = vpop.f32.mrb[23].mxu0 }
0x146b   :  { %4011 = vtanh.f32 %v1556_v46  ;;  %2137 = vst [vmem:[#allocation2 + $0xc] sm:$0x3] %v2134_v47  ;;  %v3216_v59 = vmul.f32 -1.442695, %v1556_v46 }
0x146d   :  { %4013 = vpow2.f32 %v3216_v59 }
0x1470   :  { %v1758_v49 = vpop.f32.mrb[16].mxu1 }
0x1471   :  { %v1759_v50 = vadd.f32 %v4472_v10, %v1758_v49  ;;  %v3599_v51 = vpop.f32.mrb[17].mxu1 }
0x1473   :  { %1762 = vst [vmem:[#allocation2 + $0x2] sm:$0x3] %v1759_v50 }
0x1475   :  { %v4012_v52 = vpop.eup %4011 }
0x1476   :  { %1571 = vrot.lane.b32.xlu0 %v4012_v52, %s4134_s3 }
0x1477   :  { %v4014_v60 = vpop.eup %4013 }
0x1478   :  { %v1908_v53 = vpop.f32.mrb[18].mxu1  ;;  %v1560_v61 = vadd.f32 1.0, %v4014_v60 }
0x1479   :  { %v1909_v54 = vadd.f32 %v4472_v10, %v1908_v53  ;;  %v3621_v55 = vpop.f32.mrb[19].mxu1 }
0x147a   :  { %4015 = vrcp.f32 %v1560_v61  ;;  %v2335_v17 = vld [vmem:[#allocation2 + $0x2] sm:$0x3] }
0x147b   :  { %1912 = vst [vmem:[#allocation2 + $0x6] sm:$0x3] %v1909_v54 }
0x1480   :  { %v2058_v56 = vpop.f32.mrb[20].mxu1 }
0x1481   :  { %v2059_v57 = vadd.f32 %v4472_v10, %v2058_v56  ;;  %v3643_v58 = vpop.f32.mrb[21].mxu1 }
0x1483   :  { %2062 = vst [vmem:[#allocation2 + $0xa] sm:$0x3] %v2059_v57 }
0x1484   :  { %v4016_v62 = vpop.eup %4015 }
0x1485   :  { %v1569_v2 = vmul.f32 %v4016_v62, %v1567_v1 }
0x14e8   :  { %v1572_v63 = vpop.permute.xlu0 %1571 }
0x14e9   :  { %v1574_v0 = vmul.f32 %v4016_v62, %v1572_v63 }
0x14eb   :  { %1576 = vrot.lane.b32.xlu0 %v1574_v0, %s4134_s3 }
0x155d   :  { %v1577_v4 = vpop.permute.xlu0 %1576 }
0x155e   :  { %v1579_v5 = vadd.f32 %v1577_v4, %v1569_v2 }
0x1560   :  { %4017 = vtanh.f32 %v1579_v5 }
0x156a   :  { %v4018_v7 = vpop.eup %4017 }
0x156b   :  { %1582 = vrot.lane.b32.xlu1 %v4018_v7, %s4134_s3 }
0x156f   :  { %1592 = vrot.lane.b32.xlu1 %v1579_v5, %s4135_s9 }
0x15dd   :  { %v1583_v15 = vpop.permute.xlu1 %1582 }
0x15de   :  { %v1585_v18 = vmul.f32 %v4016_v62, %v1583_v15 }
0x15e0   :  { %1587 = vrot.lane.b32.xlu0 %v1585_v18, %s4136_s15 }
0x15e1   :  { %v1593_v20 = vpop.permute.xlu1 %1592 }
0x15e2   :  { %1595 = vst.msk [vmem:[#allocation5] sm:$0x3] %vm656_vm1, %v1593_v20 }
0x15e9   :  { %v1600_v21 = vld [vmem:[#allocation5] sm:$0x3] }
0x15ea   :  { %1601 = vst.msk [vmem:[#allocation8] sm:$0x3] %vm656_vm1, %v1600_v21  ;;  %2214 = vst.msk [vmem:[#allocation5] sm:$0x3] %vm656_vm1, %v4133_v6 }
0x15f1   :  { %v2302_v22 = vld [vmem:[#allocation5] sm:$0x3] }
0x15f2   :  { %2304 = vrot.lane.b32.xlu1 %v2302_v22, %s4134_s3 }
0x1652   :  { %v1588_v19 = vpop.permute.xlu0 %1587 }
0x1653   :  { %1590 = vst.msk [vmem:[#allocation4] sm:$0x3] %vm656_vm1, %v1588_v19  ;;  %1597 = vst.msk [vmem:[#allocation3 + $0xe] sm:$0x3] %vm656_vm1, %v1588_v19 }
0x165a   :  { %v1598_v23 = vld [vmem:[#allocation4] sm:$0x3]  ;;  %v2138_v24 = vld [vmem:[#allocation3 + $0xe] sm:$0x3] }
0x165b   :  { %1599 = vst.msk [vmem:[#allocation6] sm:$0x3] %vm656_vm1, %v1598_v23  ;;  %2213 = vst.msk [vmem:[#allocation4] sm:$0x3] %vm656_vm1, %v4133_v6  ;;  %3664 = vmatmul.mubr.msk.f32.vlgmr.msra.gmra.mrb[22].mxu1 %vm42_vm2, %v2138_v24 }
0x165c   :  { %3906 = vmatpush3.bf16.msra.mxu1 %v4531_v11  ;;  %3685 = vmatprep.mubr.msk.f32.mxu1 %vm4132_vm0, %v4133_v6 }
0x165d   :  { %3907 = vmatprep.subr.bf16.mxu1 %v4131_v3 }
0x1660   :  { %3909 = vmatpush3.bf16.msra.mxu1 %v4540_v16 }
0x1661   :  { %3916 = vmatprep.subr.bf16.mxu1 %v4131_v3 }
0x1662   :  { %v2220_v25 = vld [vmem:[#allocation4] sm:$0x3] }
0x1663   :  { %3675 = vmatmul.mubr.msk.f32.vlgmr.msra.gmra.mrb[24].mxu0 %vm42_vm2, %v2220_v25 }
0x1664   :  { %3912 = vmatpush3.bf16.msra.mxu0 %v4531_v11  ;;  %3696 = vmatprep.mubr.msk.f32.mxu0 %vm4132_vm0, %v4133_v6 }
0x1665   :  { %3913 = vmatprep.subr.bf16.mxu0 %v4131_v3 }
0x1668   :  { %3915 = vmatpush3.bf16.msra.mxu0 %v4540_v16 }
0x1669   :  { %3922 = vmatprep.subr.bf16.mxu0 %v4131_v3 }
0x172e   :  { %v2208_v26 = vpop.f32.mrb[22].mxu1 }
0x172f   :  { %v2209_v27 = vadd.f32 %v4472_v10, %v2208_v26  ;;  %v3665_v28 = vpop.f32.mrb[23].mxu1  ;;  %v2305_v10 = vpop.permute.xlu1 %2304 }
0x1731   :  { %2212 = vst [vmem:[#allocation2 + $0xe] sm:$0x3] %v2209_v27 }
0x1736   :  { %v2290_v30 = vpop.f32.mrb[24].mxu0 }
0x1737   :  { %v2294_v31 = vadd.f32 %v2290_v30, %v2219_v29  ;;  %v3676_v32 = vpop.f32.mrb[25].mxu0 }
0x1739   :  { %4019 = vtanh.f32 %v2294_v31  ;;  %v3227_v34 = vmul.f32 -1.442695, %v2294_v31 }
0x173b   :  { %4021 = vpow2.f32 %v3227_v34 }
0x1743   :  { %v4020_v33 = vpop.eup %4019 }
0x1744   :  { %2309 = vrot.lane.b32.xlu0 %v4020_v33, %s4134_s3 }
0x1745   :  { %v4022_v35 = vpop.eup %4021 }
0x1746   :  { %v2298_v36 = vadd.f32 1.0, %v4022_v35  ;;  %v2567_v35 = vld [vmem:[#allocation2 + $0x6] sm:$0x3] }
0x1748   :  { %4023 = vrcp.f32 %v2298_v36 }
0x1752   :  { %v4024_v37 = vpop.eup %4023 }
0x1753   :  { %v2307_v40 = vmul.f32 %v4024_v37, %v2305_v10 }
0x17b6   :  { %v2310_v38 = vpop.permute.xlu0 %2309 }
0x17b7   :  { %v2312_v39 = vmul.f32 %v4024_v37, %v2310_v38 }
0x17b9   :  { %2314 = vrot.lane.b32.xlu0 %v2312_v39, %s4134_s3 }
0x182b   :  { %v2315_v41 = vpop.permute.xlu0 %2314 }
0x182c   :  { %v2317_v42 = vadd.f32 %v2315_v41, %v2307_v40 }
0x182e   :  { %4025 = vtanh.f32 %v2317_v42 }
0x1838   :  { %v4026_v43 = vpop.eup %4025 }
0x1839   :  { %2320 = vrot.lane.b32.xlu1 %v4026_v43, %s4134_s3 }
0x183d   :  { %2330 = vrot.lane.b32.xlu1 %v2317_v42, %s4135_s9 }
0x18ab   :  { %v2321_v44 = vpop.permute.xlu1 %2320 }
0x18ac   :  { %v2323_v14 = vmul.f32 %v4024_v37, %v2321_v44 }
0x18ae   :  { %2325 = vrot.lane.b32.xlu0 %v2323_v14, %s4136_s15 }
0x18af   :  { %v2331_v45 = vpop.permute.xlu1 %2330 }
0x18b0   :  { %2333 = vst.msk [vmem:[#allocation5] sm:$0x3] %vm656_vm1, %v2331_v45 }
0x18b7   :  { %v2418_v46 = vld [vmem:[#allocation5] sm:$0x3] }
0x18b8   :  { %2420 = vrot.lane.b32.xlu1 %v2418_v46, %s4134_s3 }
0x1920   :  { %v2326_v47 = vpop.permute.xlu0 %2325 }
0x1921   :  { %2328 = vst.msk [vmem:[#allocation4] sm:$0x3] %vm656_vm1, %v2326_v47  ;;  %2334 = vst.msk [vmem:[#allocation3] sm:$0x3] %vm656_vm1, %v2326_v47 }
0x1928   :  { %v2336_v48 = vld [vmem:[#allocation4] sm:$0x3] }
0x1929   :  { %3686 = vmatmul.mubr.msk.f32.vlgmr.msra.gmra.mrb[24].mxu1 %vm42_vm2, %v2336_v48 }
0x192a   :  { %3918 = vmatpush3.bf16.msra.mxu1 %v4531_v11  ;;  %3707 = vmatprep.mubr.msk.f32.mxu1 %vm4132_vm0, %v4133_v6  ;;  %v2421_v59 = vpop.permute.xlu1 %2420 }
0x192b   :  { %3919 = vmatprep.subr.bf16.mxu1 %v4131_v3 }
0x192e   :  { %3921 = vmatpush3.bf16.msra.mxu1 %v4540_v16 }
0x192f   :  { %3928 = vmatprep.subr.bf16.mxu1 %v4131_v3 }
0x19fc   :  { %v2406_v49 = vpop.f32.mrb[24].mxu1 }
0x19fd   :  { %v2410_v50 = vadd.f32 %v2406_v49, %v2335_v17  ;;  %v3687_v51 = vpop.f32.mrb[25].mxu1 }
0x19ff   :  { %4027 = vtanh.f32 %v2410_v50  ;;  %v3229_v53 = vmul.f32 -1.442695, %v2410_v50 }
0x1a01   :  { %4029 = vpow2.f32 %v3229_v53 }
0x1a09   :  { %v4028_v52 = vpop.eup %4027 }
0x1a0a   :  { %2425 = vrot.lane.b32.xlu0 %v4028_v52, %s4134_s3 }
0x1a0b   :  { %v4030_v54 = vpop.eup %4029 }
0x1a0c   :  { %v2414_v55 = vadd.f32 1.0, %v4030_v54  ;;  %v2683_v54 = vld [vmem:[#allocation2 + $0x8] sm:$0x3] }
0x1a0e   :  { %4031 = vrcp.f32 %v2414_v55 }
0x1a18   :  { %v4032_v56 = vpop.eup %4031 }
0x1a19   :  { %v2423_v60 = vmul.f32 %v4032_v56, %v2421_v59 }
0x1a7c   :  { %v2426_v57 = vpop.permute.xlu0 %2425 }
0x1a7d   :  { %v2428_v58 = vmul.f32 %v4032_v56, %v2426_v57 }
0x1a7f   :  { %2430 = vrot.lane.b32.xlu0 %v2428_v58, %s4134_s3 }
0x1af1   :  { %v2431_v61 = vpop.permute.xlu0 %2430 }
0x1af2   :  { %v2433_v62 = vadd.f32 %v2431_v61, %v2423_v60 }
0x1af4   :  { %4033 = vtanh.f32 %v2433_v62 }
0x1afe   :  { %v4034_v63 = vpop.eup %4033 }
0x1aff   :  { %2436 = vrot.lane.b32.xlu1 %v4034_v63, %s4134_s3 }
0x1b03   :  { %2446 = vrot.lane.b32.xlu1 %v2433_v62, %s4135_s9 }
0x1b71   :  { %v2437_v0 = vpop.permute.xlu1 %2436 }
0x1b72   :  { %v2439_v1 = vmul.f32 %v4032_v56, %v2437_v0 }
0x1b74   :  { %2441 = vrot.lane.b32.xlu0 %v2439_v1, %s4136_s15 }
0x1b75   :  { %v2447_v2 = vpop.permute.xlu1 %2446 }
0x1b76   :  { %2449 = vst.msk [vmem:[#allocation5] sm:$0x3] %vm656_vm1, %v2447_v2 }
0x1b7d   :  { %v2534_v4 = vld [vmem:[#allocation5] sm:$0x3] }
0x1b7e   :  { %2536 = vrot.lane.b32.xlu1 %v2534_v4, %s4134_s3 }
0x1be6   :  { %v2442_v5 = vpop.permute.xlu0 %2441 }
0x1be7   :  { %2450 = vst.msk [vmem:[#allocation3 + $0x2] sm:$0x3] %vm656_vm1, %v2442_v5  ;;  %2444 = vst.msk [vmem:[#allocation4] sm:$0x3] %vm656_vm1, %v2442_v5 }
0x1bee   :  { %v2452_v7 = vld [vmem:[#allocation4] sm:$0x3] }
0x1bef   :  { %3697 = vmatmul.mubr.msk.f32.vlgmr.msra.gmra.mrb[26].mxu0 %vm42_vm2, %v2452_v7 }
0x1bf0   :  { %3924 = vmatpush3.bf16.msra.mxu0 %v4531_v11  ;;  %3718 = vmatprep.mubr.msk.f32.mxu0 %vm4132_vm0, %v4133_v6  ;;  %v2537_v24 = vpop.permute.xlu1 %2536 }
0x1bf1   :  { %3925 = vmatprep.subr.bf16.mxu0 %v4131_v3 }
0x1bf4   :  { %3927 = vmatpush3.bf16.msra.mxu0 %v4540_v16 }
0x1bf5   :  { %3934 = vmatprep.subr.bf16.mxu0 %v4131_v3 }
0x1cc2   :  { %v2522_v9 = vpop.f32.mrb[26].mxu0 }
0x1cc3   :  { %v2526_v12 = vadd.f32 %v2522_v9, %v2451_v8  ;;  %v3698_v13 = vpop.f32.mrb[27].mxu0 }
0x1cc5   :  { %4035 = vtanh.f32 %v2526_v12  ;;  %v3231_v18 = vmul.f32 -1.442695, %v2526_v12 }
0x1cc7   :  { %4037 = vpow2.f32 %v3231_v18 }
0x1ccf   :  { %v4036_v15 = vpop.eup %4035 }
0x1cd0   :  { %2541 = vrot.lane.b32.xlu0 %v4036_v15, %s4134_s3 }
0x1cd1   :  { %v4038_v20 = vpop.eup %4037 }
0x1cd2   :  { %v2530_v21 = vadd.f32 1.0, %v4038_v20  ;;  %v2799_v20 = vld [vmem:[#allocation2 + $0xa] sm:$0x3] }
0x1cd4   :  { %4039 = vrcp.f32 %v2530_v21 }
0x1cde   :  { %v4040_v22 = vpop.eup %4039 }
0x1cdf   :  { %v2539_v25 = vmul.f32 %v4040_v22, %v2537_v24 }
0x1d42   :  { %v2542_v19 = vpop.permute.xlu0 %2541 }
0x1d43   :  { %v2544_v23 = vmul.f32 %v4040_v22, %v2542_v19 }
0x1d45   :  { %2546 = vrot.lane.b32.xlu0 %v2544_v23, %s4134_s3 }
0x1db7   :  { %v2547_v26 = vpop.permute.xlu0 %2546 }
0x1db8   :  { %v2549_v27 = vadd.f32 %v2547_v26, %v2539_v25 }
0x1dba   :  { %4041 = vtanh.f32 %v2549_v27 }
0x1dc4   :  { %v4042_v28 = vpop.eup %4041 }
0x1dc5   :  { %2552 = vrot.lane.b32.xlu1 %v4042_v28, %s4134_s3 }
0x1dc9   :  { %2562 = vrot.lane.b32.xlu1 %v2549_v27, %s4135_s9 }
0x1e37   :  { %v2553_v29 = vpop.permute.xlu1 %2552 }
0x1e38   :  { %v2555_v30 = vmul.f32 %v4040_v22, %v2553_v29 }
0x1e3a   :  { %2557 = vrot.lane.b32.xlu0 %v2555_v30, %s4136_s15 }
0x1e3b   :  { %v2563_v31 = vpop.permute.xlu1 %2562 }
0x1e3c   :  { %2565 = vst.msk [vmem:[#allocation5] sm:$0x3] %vm656_vm1, %v2563_v31 }
0x1e43   :  { %v2650_v32 = vld [vmem:[#allocation5] sm:$0x3] }
0x1e44   :  { %2652 = vrot.lane.b32.xlu1 %v2650_v32, %s4134_s3 }
0x1eac   :  { %v2558_v33 = vpop.permute.xlu0 %2557 }
0x1ead   :  { %2566 = vst.msk [vmem:[#allocation3 + $0x4] sm:$0x3] %vm656_vm1, %v2558_v33  ;;  %2560 = vst.msk [vmem:[#allocation4] sm:$0x3] %vm656_vm1, %v2558_v33 }
0x1eb4   :  { %v2568_v34 = vld [vmem:[#allocation4] sm:$0x3] }
0x1eb5   :  { %3708 = vmatmul.mubr.msk.f32.vlgmr.msra.gmra.mrb[26].mxu1 %vm42_vm2, %v2568_v34 }
0x1eb6   :  { %3930 = vmatpush3.bf16.msra.mxu1 %v4531_v11  ;;  %3729 = vmatprep.mubr.msk.f32.mxu1 %vm4132_vm0, %v4133_v6  ;;  %v2653_v14 = vpop.permute.xlu1 %2652 }
0x1eb7   :  { %3931 = vmatprep.subr.bf16.mxu1 %v4131_v3 }
0x1eba   :  { %3933 = vmatpush3.bf16.msra.mxu1 %v4540_v16 }
0x1ebb   :  { %3940 = vmatprep.subr.bf16.mxu1 %v4131_v3 }
0x1f88   :  { %v2638_v36 = vpop.f32.mrb[26].mxu1 }
0x1f89   :  { %v2642_v37 = vadd.f32 %v2638_v36, %v2567_v35  ;;  %v3709_v38 = vpop.f32.mrb[27].mxu1 }
0x1f8b   :  { %4043 = vtanh.f32 %v2642_v37  ;;  %v3233_v10 = vmul.f32 -1.442695, %v2642_v37  ;;  %v2915_v37 = vld [vmem:[#allocation2 + $0xc] sm:$0x3] }
0x1f8d   :  { %4045 = vpow2.f32 %v3233_v10 }
0x1f95   :  { %v4044_v39 = vpop.eup %4043 }
0x1f96   :  { %2657 = vrot.lane.b32.xlu0 %v4044_v39, %s4134_s3 }
0x1f97   :  { %v4046_v40 = vpop.eup %4045 }
0x1f98   :  { %v2646_v41 = vadd.f32 1.0, %v4046_v40 }
0x1f9a   :  { %4047 = vrcp.f32 %v2646_v41 }
0x1fa4   :  { %v4048_v42 = vpop.eup %4047 }
0x1fa5   :  { %v2655_v45 = vmul.f32 %v4048_v42, %v2653_v14 }
0x2008   :  { %v2658_v43 = vpop.permute.xlu0 %2657 }
0x2009   :  { %v2660_v44 = vmul.f32 %v4048_v42, %v2658_v43 }
0x200b   :  { %2662 = vrot.lane.b32.xlu0 %v2660_v44, %s4134_s3 }
0x207d   :  { %v2663_v46 = vpop.permute.xlu0 %2662 }
0x207e   :  { %v2665_v47 = vadd.f32 %v2663_v46, %v2655_v45 }
0x2080   :  { %4049 = vtanh.f32 %v2665_v47 }
0x208a   :  { %v4050_v48 = vpop.eup %4049 }
0x208b   :  { %2668 = vrot.lane.b32.xlu1 %v4050_v48, %s4134_s3 }
0x208f   :  { %2678 = vrot.lane.b32.xlu1 %v2665_v47, %s4135_s9 }
0x20fd   :  { %v2669_v17 = vpop.permute.xlu1 %2668 }
0x20fe   :  { %v2671_v49 = vmul.f32 %v4048_v42, %v2669_v17 }
0x2100   :  { %2673 = vrot.lane.b32.xlu0 %v2671_v49, %s4136_s15 }
0x2101   :  { %v2679_v50 = vpop.permute.xlu1 %2678 }
0x2102   :  { %2681 = vst.msk [vmem:[#allocation5] sm:$0x3] %vm656_vm1, %v2679_v50 }
0x2109   :  { %v2766_v51 = vld [vmem:[#allocation5] sm:$0x3] }
0x210a   :  { %2768 = vrot.lane.b32.xlu1 %v2766_v51, %s4134_s3 }
0x2172   :  { %v2674_v52 = vpop.permute.xlu0 %2673 }
0x2173   :  { %2682 = vst.msk [vmem:[#allocation3 + $0x6] sm:$0x3] %vm656_vm1, %v2674_v52  ;;  %2676 = vst.msk [vmem:[#allocation4] sm:$0x3] %vm656_vm1, %v2674_v52 }
0x217a   :  { %v2684_v53 = vld [vmem:[#allocation4] sm:$0x3] }
0x217b   :  { %3719 = vmatmul.mubr.msk.f32.vlgmr.msra.gmra.mrb[28].mxu0 %vm42_vm2, %v2684_v53 }
0x217c   :  { %3936 = vmatpush3.bf16.msra.mxu0 %v4531_v11  ;;  %3740 = vmatprep.mubr.msk.f32.mxu0 %vm4132_vm0, %v4133_v6  ;;  %v2769_v1 = vpop.permute.xlu1 %2768 }
0x217d   :  { %3937 = vmatprep.subr.bf16.mxu0 %v4131_v3 }
0x2180   :  { %3939 = vmatpush3.bf16.msra.mxu0 %v4540_v16 }
0x224e   :  { %v2754_v55 = vpop.f32.mrb[28].mxu0 }
0x224f   :  { %v2758_v56 = vadd.f32 %v2754_v55, %v2683_v54  ;;  %v3720_v57 = vpop.f32.mrb[29].mxu0 }
0x2251   :  { %4051 = vtanh.f32 %v2758_v56  ;;  %v3235_v59 = vmul.f32 -1.442695, %v2758_v56  ;;  %v3031_v56 = vld [vmem:[#allocation2 + $0xe] sm:$0x3] }
0x2253   :  { %4053 = vpow2.f32 %v3235_v59 }
0x225b   :  { %v4052_v58 = vpop.eup %4051 }
0x225c   :  { %2773 = vrot.lane.b32.xlu0 %v4052_v58, %s4134_s3 }
0x225d   :  { %v4054_v60 = vpop.eup %4053 }
0x225e   :  { %v2762_v61 = vadd.f32 1.0, %v4054_v60 }
0x2260   :  { %4055 = vrcp.f32 %v2762_v61 }
0x226a   :  { %v4056_v62 = vpop.eup %4055 }
0x226b   :  { %v2771_v2 = vmul.f32 %v4056_v62, %v2769_v1 }
0x22ce   :  { %v2774_v63 = vpop.permute.xlu0 %2773 }
0x22cf   :  { %v2776_v0 = vmul.f32 %v4056_v62, %v2774_v63 }
0x22d1   :  { %2778 = vrot.lane.b32.xlu0 %v2776_v0, %s4134_s3 }
0x2343   :  { %v2779_v4 = vpop.permute.xlu0 %2778 }
0x2344   :  { %v2781_v5 = vadd.f32 %v2779_v4, %v2771_v2 }
0x2346   :  { %4057 = vtanh.f32 %v2781_v5 }
0x2350   :  { %v4058_v7 = vpop.eup %4057 }
0x2351   :  { %2784 = vrot.lane.b32.xlu1 %v4058_v7, %s4134_s3 }
0x2355   :  { %2794 = vrot.lane.b32.xlu1 %v2781_v5, %s4135_s9 }
0x23c3   :  { %v2785_v8 = vpop.permute.xlu1 %2784 }
0x23c4   :  { %v2787_v9 = vmul.f32 %v4056_v62, %v2785_v8 }
0x23c6   :  { %2789 = vrot.lane.b32.xlu0 %v2787_v9, %s4136_s15 }
0x23c7   :  { %v2795_v12 = vpop.permute.xlu1 %2794 }
0x23c8   :  { %2797 = vst.msk [vmem:[#allocation5] sm:$0x3] %vm656_vm1, %v2795_v12 }
0x23cf   :  { %v2882_v13 = vld [vmem:[#allocation5] sm:$0x3] }
0x23d0   :  { %2884 = vrot.lane.b32.xlu1 %v2882_v13, %s4134_s3 }
0x2438   :  { %v2790_v15 = vpop.permute.xlu0 %2789 }
0x2439   :  { %2798 = vst.msk [vmem:[#allocation3 + $0x8] sm:$0x3] %vm656_vm1, %v2790_v15  ;;  %2792 = vst.msk [vmem:[#allocation4] sm:$0x3] %vm656_vm1, %v2790_v15 }
0x2440   :  { %v2800_v18 = vld [vmem:[#allocation4] sm:$0x3] }
0x2441   :  { %3730 = vmatmul.mubr.msk.f32.vlgmr.msra.gmra.mrb[28].mxu1 %vm42_vm2, %v2800_v18 }
0x2442   :  { %3942 = vmatpush3.bf16.msra.mxu1 %v4531_v11  ;;  %3751 = vmatprep.mubr.msk.f32.mxu1 %vm4132_vm0, %v4133_v6 }
0x2443   :  { %3943 = vmatprep.subr.bf16.mxu1 %v4131_v3  ;;  %v2885_v3 = vpop.permute.xlu1 %2884 }
0x2446   :  { %3945 = vmatpush3.bf16.msra.mxu1 %v4540_v16 }
0x2514   :  { %v2870_v21 = vpop.f32.mrb[28].mxu1 }
0x2515   :  { %v2874_v22 = vadd.f32 %v2870_v21, %v2799_v20  ;;  %v3731_v19 = vpop.f32.mrb[29].mxu1 }
0x2517   :  { %4059 = vtanh.f32 %v2874_v22  ;;  %v3237_v24 = vmul.f32 -1.442695, %v2874_v22 }
0x2519   :  { %4061 = vpow2.f32 %v3237_v24 }
0x2521   :  { %v4060_v23 = vpop.eup %4059 }
0x2522   :  { %2889 = vrot.lane.b32.xlu0 %v4060_v23, %s4134_s3 }
0x2523   :  { %v4062_v25 = vpop.eup %4061 }
0x2524   :  { %v2878_v26 = vadd.f32 1.0, %v4062_v25 }
0x2526   :  { %4063 = vrcp.f32 %v2878_v26 }
0x2530   :  { %v4064_v11 = vpop.eup %4063 }
0x2531   :  { %v2887_v16 = vmul.f32 %v4064_v11, %v2885_v3 }
0x2594   :  { %v2890_v27 = vpop.permute.xlu0 %2889 }
0x2595   :  { %v2892_v6 = vmul.f32 %v4064_v11, %v2890_v27 }
0x2597   :  { %2894 = vrot.lane.b32.xlu0 %v2892_v6, %s4134_s3 }
0x2609   :  { %v2895_v28 = vpop.permute.xlu0 %2894 }
0x260a   :  { %v2897_v29 = vadd.f32 %v2895_v28, %v2887_v16 }
0x260c   :  { %4065 = vtanh.f32 %v2897_v29 }
0x2616   :  { %v4066_v30 = vpop.eup %4065 }
0x2617   :  { %2900 = vrot.lane.b32.xlu1 %v4066_v30, %s4134_s3 }
0x261b   :  { %2910 = vrot.lane.b32.xlu1 %v2897_v29, %s4135_s9 }
0x2689   :  { %v2901_v31 = vpop.permute.xlu1 %2900 }
0x268a   :  { %v2903_v32 = vmul.f32 %v4064_v11, %v2901_v31 }
0x268c   :  { %2905 = vrot.lane.b32.xlu0 %v2903_v32, %s4136_s15 }
0x268d   :  { %v2911_v33 = vpop.permute.xlu1 %2910 }
0x268e   :  { %2913 = vst.msk [vmem:[#allocation5] sm:$0x3] %vm656_vm1, %v2911_v33 }
0x2695   :  { %v2998_v34 = vld [vmem:[#allocation5] sm:$0x3] }
0x2696   :  { %3000 = vrot.lane.b32.xlu1 %v2998_v34, %s4134_s3 }
0x26fe   :  { %v2906_v35 = vpop.permute.xlu0 %2905 }
0x26ff   :  { %2914 = vst.msk [vmem:[#allocation3 + $0xa] sm:$0x3] %vm656_vm1, %v2906_v35  ;;  %2908 = vst.msk [vmem:[#allocation4] sm:$0x3] %vm656_vm1, %v2906_v35 }
0x2706   :  { %v2916_v36 = vld [vmem:[#allocation4] sm:$0x3] }
0x2707   :  { %3741 = vmatmul.mubr.msk.f32.vlgmr.msra.gmra.mrb[30].mxu0 %vm42_vm2, %v2916_v36 }
0x2708   :  { %v3001_v46 = vpop.permute.xlu1 %3000 }
0x27da   :  { %v2986_v38 = vpop.f32.mrb[30].mxu0 }
0x27db   :  { %v2990_v39 = vadd.f32 %v2986_v38, %v2915_v37  ;;  %v3742_v10 = vpop.f32.mrb[31].mxu0 }
0x27dd   :  { %4067 = vtanh.f32 %v2990_v39  ;;  %v3239_v41 = vmul.f32 -1.442695, %v2990_v39 }
0x27df   :  { %4069 = vpow2.f32 %v3239_v41 }
0x27e7   :  { %v4068_v40 = vpop.eup %4067 }
0x27e8   :  { %3005 = vrot.lane.b32.xlu0 %v4068_v40, %s4134_s3 }
0x27e9   :  { %v4070_v42 = vpop.eup %4069 }
0x27ea   :  { %v2994_v43 = vadd.f32 1.0, %v4070_v42 }
0x27ec   :  { %4071 = vrcp.f32 %v2994_v43 }
0x27f6   :  { %v4072_v44 = vpop.eup %4071 }
0x27f7   :  { %v3003_v47 = vmul.f32 %v4072_v44, %v3001_v46 }
0x285a   :  { %v3006_v14 = vpop.permute.xlu0 %3005 }
0x285b   :  { %v3008_v45 = vmul.f32 %v4072_v44, %v3006_v14 }
0x285d   :  { %3010 = vrot.lane.b32.xlu0 %v3008_v45, %s4134_s3 }
0x28cf   :  { %v3011_v48 = vpop.permute.xlu0 %3010 }
0x28d0   :  { %v3013_v17 = vadd.f32 %v3011_v48, %v3003_v47 }
0x28d2   :  { %4073 = vtanh.f32 %v3013_v17 }
0x28dc   :  { %v4074_v49 = vpop.eup %4073 }
0x28dd   :  { %3016 = vrot.lane.b32.xlu1 %v4074_v49, %s4134_s3 }
0x28e1   :  { %3026 = vrot.lane.b32.xlu1 %v3013_v17, %s4135_s9 }
0x294f   :  { %v3017_v50 = vpop.permute.xlu1 %3016 }
0x2950   :  { %v3019_v51 = vmul.f32 %v4072_v44, %v3017_v50 }
0x2952   :  { %3021 = vrot.lane.b32.xlu0 %v3019_v51, %s4136_s15 }
0x2953   :  { %v3027_v52 = vpop.permute.xlu1 %3026 }
0x2954   :  { %3029 = vst.msk [vmem:[#allocation5] sm:$0x3] %vm656_vm1, %v3027_v52 }
0x295b   :  { %v3114_v53 = vld [vmem:[#allocation5] sm:$0x3] }
0x295c   :  { %3116 = vrot.lane.b32.xlu1 %v3114_v53, %s4134_s3 }
0x29c4   :  { %v3022_v54 = vpop.permute.xlu0 %3021 }
0x29c5   :  { %3030 = vst.msk [vmem:[#allocation3 + $0xc] sm:$0x3] %vm656_vm1, %v3022_v54  ;;  %3024 = vst.msk [vmem:[#allocation4] sm:$0x3] %vm656_vm1, %v3022_v54 }
0x29cc   :  { %v3032_v55 = vld [vmem:[#allocation4] sm:$0x3] }
0x29cd   :  { %3752 = vmatmul.mubr.msk.f32.vlgmr.msra.gmra.mrb[30].mxu1 %vm42_vm2, %v3032_v55 }
0x29ce   :  { %v3117_v4 = vpop.permute.xlu1 %3116 }
0x2aa0   :  { %v3102_v57 = vpop.f32.mrb[30].mxu1 }
0x2aa1   :  { %v3106_v58 = vadd.f32 %v3102_v57, %v3031_v56  ;;  %v3753_v59 = vpop.f32.mrb[31].mxu1 }
0x2aa3   :  { %4075 = vtanh.f32 %v3106_v58  ;;  %v3241_v61 = vmul.f32 -1.442695, %v3106_v58 }
0x2aa5   :  { %4077 = vpow2.f32 %v3241_v61 }
0x2aad   :  { %v4076_v60 = vpop.eup %4075 }
0x2aae   :  { %3121 = vrot.lane.b32.xlu0 %v4076_v60, %s4134_s3 }
0x2aaf   :  { %v4078_v62 = vpop.eup %4077 }
0x2ab0   :  { %v3110_v63 = vadd.f32 1.0, %v4078_v62 }
0x2ab2   :  { %4079 = vrcp.f32 %v3110_v63 }
0x2abc   :  { %v4080_v0 = vpop.eup %4079 }
0x2abd   :  { %v3119_v5 = vmul.f32 %v4080_v0, %v3117_v4 }
0x2b20   :  { %v3122_v1 = vpop.permute.xlu0 %3121 }
0x2b21   :  { %v3124_v2 = vmul.f32 %v4080_v0, %v3122_v1 }
0x2b23   :  { %3126 = vrot.lane.b32.xlu0 %v3124_v2, %s4134_s3 }
0x2b95   :  { %v3127_v7 = vpop.permute.xlu0 %3126 }
0x2b96   :  { %v3129_v8 = vadd.f32 %v3127_v7, %v3119_v5 }
0x2b98   :  { %4081 = vtanh.f32 %v3129_v8 }
0x2ba2   :  { %v4082_v9 = vpop.eup %4081 }
0x2ba3   :  { %3132 = vrot.lane.b32.xlu1 %v4082_v9, %s4134_s3 }
0x2ba7   :  { %3142 = vrot.lane.b32.xlu1 %v3129_v8, %s4135_s9 }
0x2c15   :  { %v3133_v12 = vpop.permute.xlu1 %3132 }
0x2c16   :  { %v3135_v13 = vmul.f32 %v4080_v0, %v3133_v12 }
0x2c18   :  { %3137 = vrot.lane.b32.xlu0 %v3135_v13, %s4136_s15 }
0x2c19   :  { %v3143_v15 = vpop.permute.xlu1 %3142 }
0x2c1a   :  { %3145 = vst.msk [vmem:[#allocation5] sm:$0x3] %vm656_vm1, %v3143_v15 }
0x2c21   :  { %v3150_v18 = vld [vmem:[#allocation5] sm:$0x3] }
0x2c22   :  { %3152 = vst.msk [vmem:[#allocation8 + $0x2] sm:$0x3] %vm656_vm1, %v3150_v18 }
0x2c23   :  { %4094 = shalt.err (!%p4091_p4)
}
0x2c24   :  { %s4095_s12 = scalar_lea.hbm %s4715_s8, 64 }
0x2c25   :  { %p4096_p5 = scmp.ne.s32.totalorder %s4715_s8, %s4095_s12  ;;  %p4099_p6 = scmp.lt.u32.totalorder %s4095_s12, %s4715_s8 }
0x2c27   :  { %p4101_p7 = pnand %p4099_p6, %p4096_p5 }
0x2c29   :  { %4104 = shalt.err (!%p4101_p7)
}
0x2c2a   :  { %s4138_s0 = smov 2   ;;  %s4139_s18 = smov [#allocation6]  }
0x2c2b   :  { %3176 = dma.vmem_to_hbm [thread:$0]  %s3171_s30, 64, %s4715_s8, [#allocation9], %s4134_s3, %s4134_s3, %s4138_s0  }
0x2c2c   :  { %s3158_s19 = sshll.u32 %s4139_s18, 4  ;;  %s3159_s19 = int_to_ptr.vmem [resolvable:$true] %s3158_s19 }
0x2c2d   :  { %s4105_s20 = scalar_lea.vmem %s3159_s19, 64  ;;  %p4110_p9 = scmp.lt.s32.totalorder %s3159_s19, %s3159_s19 }
0x2c2e   :  { %p4106_p8 = scmp.ne.s32.totalorder %s3159_s19, %s4105_s20  ;;  %p4111_p10 = scmp.lt.s32.totalorder %s4105_s20, %s4105_s20 }
0x2c30   :  { %p4112_p11 = por %p4111_p10, %p4110_p9 }
0x2c32   :  { %p4113_p12 = pnand %p4112_p11, %p4106_p8 }
0x2c8a   :  { %v3138_v20 = vpop.permute.xlu0 %3137 }
0x2c8b   :  { %3146 = vst.msk [vmem:[#allocation3 + $0xe] sm:$0x3] %vm656_vm1, %v3138_v20  ;;  %3140 = vst.msk [vmem:[#allocation4] sm:$0x3] %vm656_vm1, %v3138_v20 }
0x2c92   :  { %v3147_v21 = vld [vmem:[#allocation4] sm:$0x3] }
0x2c93   :  { %3149 = vst.msk [vmem:[#allocation6 + $0x2] sm:$0x3] %vm656_vm1, %v3147_v21 }
0x2c94   :  { %4116 = shalt.err (!%p4113_p12)
}
0x2c95   :  { %s4117_s22 = scalar_lea.hbm %s4714_s7, 64 }
0x2c96   :  { %p4118_p13 = scmp.ne.s32.totalorder %s4714_s7, %s4117_s22  ;;  %p4121_p0 = scmp.lt.u32.totalorder %s4117_s22, %s4714_s7 }
0x2c98   :  { %p4123_p1 = pnand %p4121_p0, %p4118_p13 }
0x2c9a   :  { %4126 = shalt.err (!%p4123_p1)
}
0x2c9b   :  { %3164 = dma.vmem_to_hbm [thread:$0]  %s3159_s19, 64, %s4714_s7, [#allocation7], %s4134_s3, %s4134_s3, %s4138_s0  }
0x2c9c   :  { %4127 = dma.done.wait [#allocation7], 64  }
0x2c9d   :  { %4128 = vsyncadd [#allocation7], 4294967232 }
0x2c9e   :  { %4129 = dma.done.wait [#allocation9], 64  }
0x2c9f   :  { %4130 = vsyncadd [#allocation9], 4294967232 }
0x2ca0   :  { %3183 = vsyncpa [#allocation7], 1 }
0x2ca1   :  { %3184 = vsyncpa [#allocation9], 1 }

</bundles_post_ra>
